<compile_context>
chip_gen: v7x
topology: tpu7x:2x2x1
jax: 0.10.0
libtpu: 0.0.40
codegen_flags: <defaults>
</compile_context>

<pallas_src>
import functools
import math

import jax
import jax.numpy as jnp
from jax.experimental import pallas as pl
from jax.experimental.pallas import tpu as pltpu


# Generation-aware VMEM budget (v7x has only 64 MiB/TC; v5e/v6e have 128 MiB).
try:
    _VMEM_CAP_BYTES = int(pltpu.get_tpu_info().vmem_capacity_bytes)
except Exception:  # conservative fallback = v7x capacity
    _VMEM_CAP_BYTES = 64 * 1024 * 1024
_VMEM_LIMIT_BYTES = min(_VMEM_CAP_BYTES * 3 // 4, 100 * 1024 * 1024)
_TILE_VMEM_BUDGET = int(_VMEM_LIMIT_BYTES * 0.6)

_HIGHEST = jax.lax.Precision.HIGHEST


def _round_up(x, m):
    return (x + m - 1) // m * m


# ---------------------------------------------------------------------------
# Pass 1: running per-query (max, exp-sum) over (heads, spatial tiles).
# Grid: (B, nQ, n_hw); (B, nQ) parallel, hw is the reduction ('arbitrary').
# ---------------------------------------------------------------------------
def _stats_kernel(a_ref, bias_ref, k_ref, m_ref, l_ref, *,
                  num_heads, hw, hw_tile, mask_last):
    t = pl.program_id(2)

    @pl.when(t == 0)
    def _init():
        m_ref[...] = jnp.full(m_ref.shape, -jnp.inf, jnp.float32)
        l_ref[...] = jnp.zeros(l_ref.shape, jnp.float32)

    k_tile = k_ref[0]                                           # [D, hw_tile]
    if mask_last:
        lane = (jax.lax.broadcasted_iota(jnp.int32, (1, hw_tile), 1)
                + t * hw_tile)
        valid = lane < hw                                       # [1, hw_tile]

    m_cur = m_ref[0]                                            # [q_tile, 1]
    l_cur = l_ref[0]
    for h in range(num_heads):       # static unroll; all heads share k_tile
        logits = (jnp.dot(a_ref[0, h], k_tile,
                          preferred_element_type=jnp.float32)
                  + bias_ref[0, h])                             # [q_tile, hw_tile]
        if mask_last:
            # padded lanes of the ragged last tile must not affect max / sum
            logits = jnp.where(valid, logits, -jnp.inf)
        m_new = jnp.maximum(m_cur, jnp.max(logits, axis=-1, keepdims=True))
        l_cur = (l_cur * jnp.exp(m_cur - m_new)
                 + jnp.sum(jnp.exp(logits - m_new), axis=-1, keepdims=True))
        m_cur = m_new
    m_ref[0] = m_cur
    l_ref[0] = l_cur


# ---------------------------------------------------------------------------
# Pass 2: normalized probabilities for one (batch, q-tile, spatial-tile)
# block.  Rows are already interleaved as q*num_heads + h, so a single dense
# MXU matmul produces the whole lane-dense output slab.  Out-of-bounds rows /
# lanes of partial boundary blocks are masked by Pallas on the write.
# ---------------------------------------------------------------------------
def _prob_kernel(a_ref, shift_ref, inv_ref, k_ref, out_ref):
    logits = jnp.dot(a_ref[0], k_ref[0], preferred_element_type=jnp.float32)
    out_ref[0] = (jnp.exp(logits - shift_ref[0])
                  * inv_ref[0]).astype(out_ref.dtype)


# ---------------------------------------------------------------------------
# Tiling helpers.
# ---------------------------------------------------------------------------
def _pick_q_tile(q, q_block):
    if q_block is None or q <= q_block:
        return q                      # full dim: always layout-legal
    qt = max(16, q_block - q_block % 16)   # mult of 16 -> legal for bf16 too
    return q if qt >= q else qt


def _pick_hw_tile(hw, max_hw_tile, qh_rows, d, out_bytes, k_bytes):
    tile = min(_round_up(hw, 128), max(128, max_hw_tile - max_hw_tile % 128))
    while tile > 128:
        step = (2 * d * tile * k_bytes            # double-buffered k tile
                + 2 * qh_rows * tile * out_bytes  # double-buffered out tile
                + 2 * qh_rows * tile * 4          # f32 logits / exp temps
                + 2 * qh_rows * d * k_bytes)      # A block
        if step <= _TILE_VMEM_BUDGET:
            break
        tile -= 128
    if tile >= hw:
        return hw          # single full tile: no padding / masking needed
    return tile


# ---------------------------------------------------------------------------
# One level: reassociated projections (tiny XLA glue) + two Pallas passes.
# ---------------------------------------------------------------------------
def _level_attention(q, k_lvl, wq_t, bq_row, wk_h, bk_h, *, num_heads,
                     out_dtype, compute_dtype, max_hw_tile, q_block):
    B, Q, D = q.shape
    _, _, H, W = k_lvl.shape
    HW = H * W
    nH = num_heads
    c = wq_t.shape[1] // nH

    k_flat = k_lvl.reshape(B, D, HW).astype(compute_dtype)     # lane-dense HW

    # Reassociation:  logits_h = (qp_h @ Wk_h) @ k + qp_h . bk_h
    # (O(B*Q*Hd*D) -- negligible vs. the HW-sized work in the kernels.)
    qp = jnp.einsum('bqd,de->bqe', q, wq_t, precision=_HIGHEST) + bq_row
    qp = qp.reshape(B, Q, nH, c)
    A = jnp.einsum('bqhc,hcd->bqhd', qp, wk_h, precision=_HIGHEST)  # [B,Q,nH,D]
    bias = jnp.einsum('bqhc,hc->bqh', qp, bk_h, precision=_HIGHEST)  # [B,Q,nH]

    a1 = A.transpose(0, 2, 1, 3).astype(compute_dtype)         # [B,nH,Q,D]
    bias1 = bias.transpose(0, 2, 1)[..., None]                 # [B,nH,Q,1] f32
    a2 = A.reshape(B, Q * nH, D).astype(compute_dtype)         # rows q*nH+h
    bias2 = bias.reshape(B, Q * nH, 1)

    # Query tiling: split Q at B == 1 so both v7x TensorCores get work.
    if q_block is None:
        q_block_eff = Q if (B > 1 or Q <= 32) else min(
            Q, _round_up(-(-Q // 2), 16))
    else:
        q_block_eff = q_block
    q_tile = _pick_q_tile(Q, q_block_eff)
    nQ = pl.cdiv(Q, q_tile)
    qh_tile = q_tile * nH

    out_bytes = jnp.dtype(out_dtype).itemsize
    k_bytes = jnp.dtype(compute_dtype).itemsize
    hw_tile = _pick_hw_tile(HW, max_hw_tile, qh_tile, D, out_bytes, k_bytes)
    n_hw = pl.cdiv(HW, hw_tile)
    mask_last = (HW % hw_tile) != 0

    # ---- pass 1: per-query (max, exp-sum) over heads x spatial ----
    m, l = pl.pallas_call(
        functools.partial(_stats_kernel, num_heads=nH, hw=HW,
                          hw_tile=hw_tile, mask_last=mask_last),
        out_shape=(jax.ShapeDtypeStruct((B, Q, 1), jnp.float32),
                   jax.ShapeDtypeStruct((B, Q, 1), jnp.float32)),
        grid_spec=pltpu.PrefetchScalarGridSpec(
            num_scalar_prefetch=0,
            grid=(B, nQ, n_hw),
            in_specs=[
                pl.BlockSpec((1, nH, q_tile, D), lambda b, qi, t: (b, 0, qi, 0)),
                pl.BlockSpec((1, nH, q_tile, 1), lambda b, qi, t: (b, 0, qi, 0)),
                pl.BlockSpec((1, D, hw_tile), lambda b, qi, t: (b, 0, t)),
            ],
            out_specs=(pl.BlockSpec((1, q_tile, 1), lambda b, qi, t: (b, qi, 0)),
                       pl.BlockSpec((1, q_tile, 1), lambda b, qi, t: (b, qi, 0))),
        ),
        compiler_params=pltpu.CompilerParams(
            dimension_semantics=("parallel", "parallel", "arbitrary"),
            vmem_limit_bytes=_VMEM_LIMIT_BYTES),
    )(a1, bias1, k_flat)

    # Per-row shift / exact reciprocal (tiny, row order q*nH + h).
    m_rows = jnp.repeat(m, nH, axis=1)                          # [B, Q*nH, 1]
    inv_rows = jnp.repeat(1.0 / l, nH, axis=1)                  # exact recip
    shift = m_rows - bias2          # exp(A@k + bias - m) == exp(A@k - shift)

    # ---- pass 2: normalized probabilities, fully parallel grid ----
    out_flat = pl.pallas_call(
        _prob_kernel,
        out_shape=jax.ShapeDtypeStruct((B, Q * nH, HW), out_dtype),
        grid_spec=pltpu.PrefetchScalarGridSpec(
            num_scalar_prefetch=0,
            grid=(B, nQ, n_hw),
            in_specs=[
                pl.BlockSpec((1, qh_tile, D), lambda b, qi, t: (b, qi, 0)),
                pl.BlockSpec((1, qh_tile, 1), lambda b, qi, t: (b, qi, 0)),
                pl.BlockSpec((1, qh_tile, 1), lambda b, qi, t: (b, qi, 0)),
                pl.BlockSpec((1, D, hw_tile), lambda b, qi, t: (b, 0, t)),
            ],
            out_specs=pl.BlockSpec((1, qh_tile, hw_tile),
                                   lambda b, qi, t: (b, qi, t)),
        ),
        compiler_params=pltpu.CompilerParams(
            dimension_semantics=("parallel", "parallel", "parallel"),
            vmem_limit_bytes=_VMEM_LIMIT_BYTES),
    )(a2, shift, inv_rows, k_flat)

    # Row order q*nH + h makes this a free reshape (no transpose / copy).
    return out_flat.reshape(B, Q, nH, H, W)


class MultiScaleMHAttentionMapPallas:
    """JAX/Pallas port of trackformer's MultiScaleMHAttentionMap (dropout=0).

    out_dtype / compute_dtype default to bfloat16 (halves the dominant HBM
    streams; ~1e-2-level perturbation of the probabilities).  Pass float32
    for a bit-faithful path.
    """

    def __init__(self, query_dim, hidden_dim, num_heads, num_levels, key,
                 out_dtype=jnp.bfloat16, compute_dtype=jnp.bfloat16,
                 max_hw_tile=4096, q_block=None):
        assert hidden_dim % num_heads == 0
        self.num_heads = num_heads
        self.num_levels = num_levels
        self.hidden_dim = hidden_dim
        self.out_dtype = out_dtype
        self.compute_dtype = compute_dtype
        self.max_hw_tile = max_hw_tile
        self.q_block = q_block
        self.normalize_fact = float(hidden_dim / num_heads) ** (-0.5)
        c = hidden_dim // num_heads

        # xavier_uniform weights, zero biases (deterministic from key).
        limit = math.sqrt(6.0 / (query_dim + hidden_dim))
        self.params = []     # raw (wq, bq, wk, bk) in PyTorch layout (for ref)
        self._kparams = []   # kernel-layout params (fact folded into q proj)
        for _ in range(num_levels):
            key, kq, kk = jax.random.split(key, 3)
            wq = jax.random.uniform(kq, (hidden_dim, query_dim), jnp.float32,
                                    -limit, limit)
            wk = jax.random.uniform(kk, (hidden_dim, query_dim), jnp.float32,
                                    -limit, limit)
            bq = jnp.zeros((hidden_dim,), jnp.float32)
            bk = jnp.zeros((hidden_dim,), jnp.float32)
            self.params.append((wq, bq, wk, bk))
            self._kparams.append(dict(
                wq_t=(wq * self.normalize_fact).T,                # [D, Hd]
                bq_row=(bq * self.normalize_fact)[None, :],       # [1, Hd]
                wk_h=wk.reshape(num_heads, c, query_dim),         # [nH, c, D]
                bk_h=bk.reshape(num_heads, c),                    # [nH, c]
            ))

        # jit the whole multi-level forward so the per-level kernels overlap.
        self._forward = jax.jit(self._forward_impl)

    def _forward_impl(self, q, k_tuple):
        outs = []
        for i, k_lvl in enumerate(k_tuple):
            p = self._kparams[i]
            outs.append(_level_attention(
                q, k_lvl, p['wq_t'], p['bq_row'], p['wk_h'], p['bk_h'],
                num_heads=self.num_heads, out_dtype=self.out_dtype,
                compute_dtype=self.compute_dtype,
                max_hw_tile=self.max_hw_tile, q_block=self.q_block))
        return outs

    def __call__(self, q, k_list, mask=None):
        assert len(k_list) == self.num_levels
        # TODO(synk): mask (masked_fill -inf before softmax) not implemented;
        # only the mask=None path is supported (needs all-masked-row guard).
        assert mask is None
        return self._forward(q, tuple(k_list))


def _reference_level(q, k_nchw, wq, bq, wk, bk, num_heads, normalize_fact):
    """Pure-JAX reference matching the PyTorch forward for one level."""
    B, D, H, W = k_nchw.shape
    q_proj = jnp.einsum('bqd,ed->bqe', q, wq, precision=_HIGHEST) + bq
    k_proj = (jnp.einsum('bdhw,ed->behw', k_nchw, wk, precision=_HIGHEST)
              + bk[None, :, None, None])
    Hd = q_proj.shape[-1]
    c = Hd // num_heads
    qh = q_proj.reshape(B, -1, num_heads, c)
    kh = k_proj.reshape(B, num_heads, c, H, W)
    logits = jnp.einsum('bqnc,bnchw->bqnhw', qh * normalize_fact, kh,
                        precision=_HIGHEST)
    flat = logits.reshape(B, logits.shape[1], -1)
    probs = jax.nn.softmax(flat, axis=-1)
    return probs.reshape(logits.shape)


if __name__ == "__main__":
    key = jax.random.PRNGKey(0)

    batch = 2
    num_queries = 20
    query_dim = 32
    hidden_dim = 32
    num_heads = 4
    num_levels = 3
    # HW = 256 (divides 128), 143 (ragged last tile), 63 (single partial tile)
    spatial = [(16, 16), (13, 11), (7, 9)]

    key, kq, *klist = jax.random.split(key, 2 + num_levels)
    q = jax.random.normal(kq, (batch, num_queries, query_dim), jnp.float32)
    k = [jax.random.normal(klist[i],
                           (batch, query_dim, spatial[i][0], spatial[i][1]),
                           jnp.float32)
         for i in range(num_levels)]

    key, kparams = jax.random.split(key)

    # f32 compute / f32 output: tight check against the reference.
    module_f32 = MultiScaleMHAttentionMapPallas(
        query_dim, hidden_dim, num_heads, num_levels, kparams,
        out_dtype=jnp.float32, compute_dtype=jnp.float32)
    outs_f32 = [jax.block_until_ready(o) for o in module_f32(q, k)]
    refs = []
    for i in range(num_levels):
        wq, bq, wk, bk = module_f32.params[i]
        ref = _reference_level(q, k[i], wq, bq, wk, bk,
                               num_heads, module_f32.normalize_fact)
        refs.append(ref)
        H, W = spatial[i]
        assert outs_f32[i].shape == (batch, num_queries, num_heads, H, W)
        got = outs_f32[i].astype(jnp.float32)
        err = float(jnp.max(jnp.abs(got - ref)))
        assert bool(jnp.allclose(got, ref, atol=2e-3, rtol=2e-3)), err
        sums = got.reshape(batch, num_queries, -1).sum(-1)
        assert bool(jnp.allclose(sums, 1.0, atol=2e-3)), "row sums off"

    # Default bf16 compute / bf16 output + explicit query tiling (exercises
    # the partial q-tile and ragged-HW boundary paths).  Looser tolerance.
    module_bf16 = MultiScaleMHAttentionMapPallas(
        query_dim, hidden_dim, num_heads, num_levels, kparams, q_block=16)
    outs_bf16 = [jax.block_until_ready(o) for o in module_bf16(q, k)]
    for i in range(num_levels):
        got = outs_bf16[i].astype(jnp.float32)
        err = float(jnp.max(jnp.abs(got - refs[i])))
        assert bool(jnp.allclose(got, refs[i], atol=3e-2, rtol=3e-2)), err
        sums = got.reshape(batch, num_queries, -1).sum(-1)
        assert bool(jnp.allclose(sums, 1.0, atol=2e-2)), "row sums off (bf16)"

    print("KERNEL_OK")
</pallas_src>

<mosaic_0001>
module attributes {stable_mosaic.version = 11 : i64} {
  func.func @_stats_kernel(%arg0: i32, %arg1: i32, %arg2: i32, %arg3: memref<1x4x20x32xf32, #tpu.memory_space<vmem>>, %arg4: memref<1x4x20x1xf32, #tpu.memory_space<vmem>>, %arg5: memref<1x32x143xf32, #tpu.memory_space<vmem>>, %arg6: memref<1x20x1xf32, #tpu.memory_space<vmem>>, %arg7: memref<1x20x1xf32, #tpu.memory_space<vmem>>) attributes {dimension_semantics = [#tpu.dimension_semantics<parallel>, #tpu.dimension_semantics<parallel>, #tpu.dimension_semantics<arbitrary>], iteration_bounds = array<i64: 2, 1, 1>, scalar_prefetch = 0 : i64, scratch_operands = 0 : i64, tpu.core_type = #tpu.core_type<tc>, window_params = [{transform_indices = @transform_0, window_bounds = array<i64: 1, 4, 20, 32>}, {transform_indices = @transform_1, window_bounds = array<i64: 1, 4, 20, 1>}, {transform_indices = @transform_2, window_bounds = array<i64: 1, 32, 143>}, {transform_indices = @transform_3, window_bounds = array<i64: 1, 20, 1>}, {transform_indices = @transform_4, window_bounds = array<i64: 1, 20, 1>}]} {
    %c0_i32 = arith.constant 0 : i32
    %0 = arith.cmpi eq, %arg2, %c0_i32 : i32
    %1 = arith.extui %0 : i1 to i32
    %c0_i32_0 = arith.constant 0 : i32
    %2 = arith.cmpi ne, %1, %c0_i32_0 : i32
    scf.if %2 {
      %cst_55 = arith.constant 0xFF800000 : f32
      %91 = vector.broadcast %cst_55 : f32 to vector<1x20x1xf32>
      %c0_56 = arith.constant 0 : index
      %c0_57 = arith.constant 0 : index
      %c0_58 = arith.constant 0 : index
      %92 = vector.load %arg6[%c0_56, %c0_57, %c0_58] : memref<1x20x1xf32, #tpu.memory_space<vmem>>, vector<1x20x1xf32>
      tpu.vector_store %arg6[%c0_56, %c0_57, %c0_58], %91 {strides = array<i32>} : memref<1x20x1xf32, #tpu.memory_space<vmem>>, vector<1x20x1xf32>,
      %cst_59 = arith.constant 0.000000e+00 : f32
      %93 = vector.broadcast %cst_59 : f32 to vector<1x20x1xf32>
      %c0_60 = arith.constant 0 : index
      %c0_61 = arith.constant 0 : index
      %c0_62 = arith.constant 0 : index
      %94 = vector.load %arg7[%c0_60, %c0_61, %c0_62] : memref<1x20x1xf32, #tpu.memory_space<vmem>>, vector<1x20x1xf32>
      tpu.vector_store %arg7[%c0_60, %c0_61, %c0_62], %93 {strides = array<i32>} : memref<1x20x1xf32, #tpu.memory_space<vmem>>, vector<1x20x1xf32>,
    } else {
    }
    %c0 = arith.constant 0 : index
    %c0_1 = arith.constant 0 : index
    %c0_2 = arith.constant 0 : index
    %3 = vector.load %arg5[%c0, %c0_1, %c0_2] : memref<1x32x143xf32, #tpu.memory_space<vmem>>, vector<1x32x143xf32>
    %4 = vector.shape_cast %3 : vector<1x32x143xf32> to vector<32x143xf32>
    %c0_3 = arith.constant 0 : index
    %c0_4 = arith.constant 0 : index
    %c0_5 = arith.constant 0 : index
    %5 = vector.load %arg6[%c0_3, %c0_4, %c0_5] : memref<1x20x1xf32, #tpu.memory_space<vmem>>, vector<1x20x1xf32>
    %6 = vector.shape_cast %5 : vector<1x20x1xf32> to vector<20x1xf32>
    %c0_6 = arith.constant 0 : index
    %c0_7 = arith.constant 0 : index
    %c0_8 = arith.constant 0 : index
    %7 = vector.load %arg7[%c0_6, %c0_7, %c0_8] : memref<1x20x1xf32, #tpu.memory_space<vmem>>, vector<1x20x1xf32>
    %8 = vector.shape_cast %7 : vector<1x20x1xf32> to vector<20x1xf32>
    %c0_9 = arith.constant 0 : index
    %c0_10 = arith.constant 0 : index
    %c0_11 = arith.constant 0 : index
    %c0_12 = arith.constant 0 : index
    %9 = vector.load %arg3[%c0_9, %c0_10, %c0_11, %c0_12] : memref<1x4x20x32xf32, #tpu.memory_space<vmem>>, vector<1x1x20x32xf32>
    %10 = vector.shape_cast %9 : vector<1x1x20x32xf32> to vector<20x32xf32>
    %cst = arith.constant dense<0.000000e+00> : vector<20x143xf32>
    %11 = tpu.matmul %10, %4, %cst {dimension_numbers = #tpu.dot_dimension_numbers<[1], [0], [0], [1], [0, 0, 1, 1], [], []>} : vector<20x32xf32>, vector<32x143xf32>, vector<20x143xf32> -> vector<20x143xf32>
    %c0_13 = arith.constant 0 : index
    %c0_14 = arith.constant 0 : index
    %c0_15 = arith.constant 0 : index
    %c0_16 = arith.constant 0 : index
    %12 = vector.load %arg4[%c0_13, %c0_14, %c0_15, %c0_16] : memref<1x4x20x1xf32, #tpu.memory_space<vmem>>, vector<1x1x20x1xf32>
    %13 = vector.shape_cast %12 : vector<1x1x20x1xf32> to vector<20x1xf32>
    %14 = vector.broadcast %13 : vector<20x1xf32> to vector<20x143xf32>
    %15 = arith.addf %11, %14 : vector<20x143xf32>
    %cst_17 = arith.constant dense<0xFF800000> : vector<20xf32>
    %16 = vector.multi_reduction <maximumf>, %15, %cst_17 [1] : vector<20x143xf32> to vector<20xf32>
    %17 = vector.shape_cast %16 : vector<20xf32> to vector<20x1xf32>
    %18 = arith.maximumf %6, %17 : vector<20x1xf32>
    %19 = arith.subf %6, %18 : vector<20x1xf32>
    %20 = math.exp %19 : vector<20x1xf32>
    %21 = arith.mulf %8, %20 : vector<20x1xf32>
    %22 = vector.broadcast %18 : vector<20x1xf32> to vector<20x143xf32>
    %23 = arith.subf %15, %22 : vector<20x143xf32>
    %24 = math.exp %23 : vector<20x143xf32>
    %cst_18 = arith.constant dense<0.000000e+00> : vector<20xf32>
    %25 = vector.multi_reduction <add>, %24, %cst_18 [1] : vector<20x143xf32> to vector<20xf32>
    %26 = vector.shape_cast %25 : vector<20xf32> to vector<20x1xf32>
    %27 = arith.addf %21, %26 : vector<20x1xf32>
    %c0_19 = arith.constant 0 : index
    %c1 = arith.constant 1 : index
    %c0_20 = arith.constant 0 : index
    %c0_21 = arith.constant 0 : index
    %28 = vector.load %arg3[%c0_19, %c1, %c0_20, %c0_21] : memref<1x4x20x32xf32, #tpu.memory_space<vmem>>, vector<1x1x20x32xf32>
    %29 = vector.shape_cast %28 : vector<1x1x20x32xf32> to vector<20x32xf32>
    %cst_22 = arith.constant dense<0.000000e+00> : vector<20x143xf32>
    %30 = tpu.matmul %29, %4, %cst_22 {dimension_numbers = #tpu.dot_dimension_numbers<[1], [0], [0], [1], [0, 0, 1, 1], [], []>} : vector<20x32xf32>, vector<32x143xf32>, vector<20x143xf32> -> vector<20x143xf32>
    %c0_23 = arith.constant 0 : index
    %c1_24 = arith.constant 1 : index
    %c0_25 = arith.constant 0 : index
    %c0_26 = arith.constant 0 : index
    %31 = vector.load %arg4[%c0_23, %c1_24, %c0_25, %c0_26] : memref<1x4x20x1xf32, #tpu.memory_space<vmem>>, vector<1x1x20x1xf32>
    %32 = vector.shape_cast %31 : vector<1x1x20x1xf32> to vector<20x1xf32>
    %33 = vector.broadcast %32 : vector<20x1xf32> to vector<20x143xf32>
    %34 = arith.addf %30, %33 : vector<20x143xf32>
    %cst_27 = arith.constant dense<0xFF800000> : vector<20xf32>
    %35 = vector.multi_reduction <maximumf>, %34, %cst_27 [1] : vector<20x143xf32> to vector<20xf32>
    %36 = vector.shape_cast %35 : vector<20xf32> to vector<20x1xf32>
    %37 = arith.maximumf %18, %36 : vector<20x1xf32>
    %38 = arith.subf %18, %37 : vector<20x1xf32>
    %39 = math.exp %38 : vector<20x1xf32>
    %40 = arith.mulf %27, %39 : vector<20x1xf32>
    %41 = vector.broadcast %37 : vector<20x1xf32> to vector<20x143xf32>
    %42 = arith.subf %34, %41 : vector<20x143xf32>
    %43 = math.exp %42 : vector<20x143xf32>
    %cst_28 = arith.constant dense<0.000000e+00> : vector<20xf32>
    %44 = vector.multi_reduction <add>, %43, %cst_28 [1] : vector<20x143xf32> to vector<20xf32>
    %45 = vector.shape_cast %44 : vector<20xf32> to vector<20x1xf32>
    %46 = arith.addf %40, %45 : vector<20x1xf32>
    %c0_29 = arith.constant 0 : index
    %c2 = arith.constant 2 : index
    %c0_30 = arith.constant 0 : index
    %c0_31 = arith.constant 0 : index
    %47 = vector.load %arg3[%c0_29, %c2, %c0_30, %c0_31] : memref<1x4x20x32xf32, #tpu.memory_space<vmem>>, vector<1x1x20x32xf32>
    %48 = vector.shape_cast %47 : vector<1x1x20x32xf32> to vector<20x32xf32>
    %cst_32 = arith.constant dense<0.000000e+00> : vector<20x143xf32>
    %49 = tpu.matmul %48, %4, %cst_32 {dimension_numbers = #tpu.dot_dimension_numbers<[1], [0], [0], [1], [0, 0, 1, 1], [], []>} : vector<20x32xf32>, vector<32x143xf32>, vector<20x143xf32> -> vector<20x143xf32>
    %c0_33 = arith.constant 0 : index
    %c2_34 = arith.constant 2 : index
    %c0_35 = arith.constant 0 : index
    %c0_36 = arith.constant 0 : index
    %50 = vector.load %arg4[%c0_33, %c2_34, %c0_35, %c0_36] : memref<1x4x20x1xf32, #tpu.memory_space<vmem>>, vector<1x1x20x1xf32>
    %51 = vector.shape_cast %50 : vector<1x1x20x1xf32> to vector<20x1xf32>
    %52 = vector.broadcast %51 : vector<20x1xf32> to vector<20x143xf32>
    %53 = arith.addf %49, %52 : vector<20x143xf32>
    %cst_37 = arith.constant dense<0xFF800000> : vector<20xf32>
    %54 = vector.multi_reduction <maximumf>, %53, %cst_37 [1] : vector<20x143xf32> to vector<20xf32>
    %55 = vector.shape_cast %54 : vector<20xf32> to vector<20x1xf32>
    %56 = arith.maximumf %37, %55 : vector<20x1xf32>
    %57 = arith.subf %37, %56 : vector<20x1xf32>
    %58 = math.exp %57 : vector<20x1xf32>
    %59 = arith.mulf %46, %58 : vector<20x1xf32>
    %60 = vector.broadcast %56 : vector<20x1xf32> to vector<20x143xf32>
    %61 = arith.subf %53, %60 : vector<20x143xf32>
    %62 = math.exp %61 : vector<20x143xf32>
    %cst_38 = arith.constant dense<0.000000e+00> : vector<20xf32>
    %63 = vector.multi_reduction <add>, %62, %cst_38 [1] : vector<20x143xf32> to vector<20xf32>
    %64 = vector.shape_cast %63 : vector<20xf32> to vector<20x1xf32>
    %65 = arith.addf %59, %64 : vector<20x1xf32>
    %c0_39 = arith.constant 0 : index
    %c3 = arith.constant 3 : index
    %c0_40 = arith.constant 0 : index
    %c0_41 = arith.constant 0 : index
    %66 = vector.load %arg3[%c0_39, %c3, %c0_40, %c0_41] : memref<1x4x20x32xf32, #tpu.memory_space<vmem>>, vector<1x1x20x32xf32>
    %67 = vector.shape_cast %66 : vector<1x1x20x32xf32> to vector<20x32xf32>
    %cst_42 = arith.constant dense<0.000000e+00> : vector<20x143xf32>
    %68 = tpu.matmul %67, %4, %cst_42 {dimension_numbers = #tpu.dot_dimension_numbers<[1], [0], [0], [1], [0, 0, 1, 1], [], []>} : vector<20x32xf32>, vector<32x143xf32>, vector<20x143xf32> -> vector<20x143xf32>
    %c0_43 = arith.constant 0 : index
    %c3_44 = arith.constant 3 : index
    %c0_45 = arith.constant 0 : index
    %c0_46 = arith.constant 0 : index
    %69 = vector.load %arg4[%c0_43, %c3_44, %c0_45, %c0_46] : memref<1x4x20x1xf32, #tpu.memory_space<vmem>>, vector<1x1x20x1xf32>
    %70 = vector.shape_cast %69 : vector<1x1x20x1xf32> to vector<20x1xf32>
    %71 = vector.broadcast %70 : vector<20x1xf32> to vector<20x143xf32>
    %72 = arith.addf %68, %71 : vector<20x143xf32>
    %cst_47 = arith.constant dense<0xFF800000> : vector<20xf32>
    %73 = vector.multi_reduction <maximumf>, %72, %cst_47 [1] : vector<20x143xf32> to vector<20xf32>
    %74 = vector.shape_cast %73 : vector<20xf32> to vector<20x1xf32>
    %75 = arith.maximumf %56, %74 : vector<20x1xf32>
    %76 = arith.subf %56, %75 : vector<20x1xf32>
    %77 = math.exp %76 : vector<20x1xf32>
    %78 = arith.mulf %65, %77 : vector<20x1xf32>
    %79 = vector.broadcast %75 : vector<20x1xf32> to vector<20x143xf32>
    %80 = arith.subf %72, %79 : vector<20x143xf32>
    %81 = math.exp %80 : vector<20x143xf32>
    %cst_48 = arith.constant dense<0.000000e+00> : vector<20xf32>
    %82 = vector.multi_reduction <add>, %81, %cst_48 [1] : vector<20x143xf32> to vector<20xf32>
    %83 = vector.shape_cast %82 : vector<20xf32> to vector<20x1xf32>
    %84 = arith.addf %78, %83 : vector<20x1xf32>
    %c0_49 = arith.constant 0 : index
    %c0_50 = arith.constant 0 : index
    %c0_51 = arith.constant 0 : index
    %85 = vector.load %arg6[%c0_49, %c0_50, %c0_51] : memref<1x20x1xf32, #tpu.memory_space<vmem>>, vector<1x20x1xf32>
    %86 = vector.shape_cast %85 : vector<1x20x1xf32> to vector<20x1xf32>
    %87 = vector.shape_cast %75 : vector<20x1xf32> to vector<1x20x1xf32>
    tpu.vector_store %arg6[%c0_49, %c0_50, %c0_51], %87 {strides = array<i32>} : memref<1x20x1xf32, #tpu.memory_space<vmem>>, vector<1x20x1xf32>,
    %c0_52 = arith.constant 0 : index
    %c0_53 = arith.constant 0 : index
    %c0_54 = arith.constant 0 : index
    %88 = vector.load %arg7[%c0_52, %c0_53, %c0_54] : memref<1x20x1xf32, #tpu.memory_space<vmem>>, vector<1x20x1xf32>
    %89 = vector.shape_cast %88 : vector<1x20x1xf32> to vector<20x1xf32>
    %90 = vector.shape_cast %84 : vector<20x1xf32> to vector<1x20x1xf32>
    tpu.vector_store %arg7[%c0_52, %c0_53, %c0_54], %90 {strides = array<i32>} : memref<1x20x1xf32, #tpu.memory_space<vmem>>, vector<1x20x1xf32>,
    return
  }
  func.func @transform_0(%arg0: i32, %arg1: i32, %arg2: i32) -> (i32, i32, i32, i32) {
    %c0_i32 = arith.constant 0 : i32
    %c0_i32_0 = arith.constant 0 : i32
    %c0_i32_1 = arith.constant 0 : i32
    return %arg0, %c0_i32, %arg1, %c0_i32_0 : i32, i32, i32, i32
  }
  func.func @transform_1(%arg0: i32, %arg1: i32, %arg2: i32) -> (i32, i32, i32, i32) {
    %c0_i32 = arith.constant 0 : i32
    %c0_i32_0 = arith.constant 0 : i32
    %c0_i32_1 = arith.constant 0 : i32
    return %arg0, %c0_i32, %arg1, %c0_i32_0 : i32, i32, i32, i32
  }
  func.func @transform_2(%arg0: i32, %arg1: i32, %arg2: i32) -> (i32, i32, i32) {
    %c0_i32 = arith.constant 0 : i32
    %c0_i32_0 = arith.constant 0 : i32
    return %arg0, %c0_i32, %arg2 : i32, i32, i32
  }
  func.func @transform_3(%arg0: i32, %arg1: i32, %arg2: i32) -> (i32, i32, i32) {
    %c0_i32 = arith.constant 0 : i32
    %c0_i32_0 = arith.constant 0 : i32
    return %arg0, %arg1, %c0_i32 : i32, i32, i32
  }
  func.func @transform_4(%arg0: i32, %arg1: i32, %arg2: i32) -> (i32, i32, i32) {
    %c0_i32 = arith.constant 0 : i32
    %c0_i32_0 = arith.constant 0 : i32
    return %arg0, %arg1, %c0_i32 : i32, i32, i32
  }
}

module attributes {stable_mosaic.version = 11 : i64} {
  func.func @_prob_kernel(%arg0: i32, %arg1: i32, %arg2: i32, %arg3: memref<1x80x32xf32, #tpu.memory_space<vmem>>, %arg4: memref<1x80x1xf32, #tpu.memory_space<vmem>>, %arg5: memref<1x80x1xf32, #tpu.memory_space<vmem>>, %arg6: memref<1x32x143xf32, #tpu.memory_space<vmem>>, %arg7: memref<1x80x143xf32, #tpu.memory_space<vmem>>) attributes {dimension_semantics = [#tpu.dimension_semantics<parallel>, #tpu.dimension_semantics<parallel>, #tpu.dimension_semantics<parallel>], iteration_bounds = array<i64: 2, 1, 1>, scalar_prefetch = 0 : i64, scratch_operands = 0 : i64, tpu.core_type = #tpu.core_type<tc>, window_params = [{transform_indices = @transform_0, window_bounds = array<i64: 1, 80, 32>}, {transform_indices = @transform_1, window_bounds = array<i64: 1, 80, 1>}, {transform_indices = @transform_2, window_bounds = array<i64: 1, 80, 1>}, {transform_indices = @transform_3, window_bounds = array<i64: 1, 32, 143>}, {transform_indices = @transform_4, window_bounds = array<i64: 1, 80, 143>}]} {
    %c0 = arith.constant 0 : index
    %c0_0 = arith.constant 0 : index
    %c0_1 = arith.constant 0 : index
    %0 = vector.load %arg3[%c0, %c0_0, %c0_1] : memref<1x80x32xf32, #tpu.memory_space<vmem>>, vector<1x80x32xf32>
    %1 = vector.shape_cast %0 : vector<1x80x32xf32> to vector<80x32xf32>
    %c0_2 = arith.constant 0 : index
    %c0_3 = arith.constant 0 : index
    %c0_4 = arith.constant 0 : index
    %2 = vector.load %arg6[%c0_2, %c0_3, %c0_4] : memref<1x32x143xf32, #tpu.memory_space<vmem>>, vector<1x32x143xf32>
    %3 = vector.shape_cast %2 : vector<1x32x143xf32> to vector<32x143xf32>
    %cst = arith.constant dense<0.000000e+00> : vector<80x143xf32>
    %4 = tpu.matmul %1, %3, %cst {dimension_numbers = #tpu.dot_dimension_numbers<[1], [0], [0], [1], [0, 0, 1, 1], [], []>} : vector<80x32xf32>, vector<32x143xf32>, vector<80x143xf32> -> vector<80x143xf32>
    %c0_5 = arith.constant 0 : index
    %c0_6 = arith.constant 0 : index
    %c0_7 = arith.constant 0 : index
    %5 = vector.load %arg4[%c0_5, %c0_6, %c0_7] : memref<1x80x1xf32, #tpu.memory_space<vmem>>, vector<1x80x1xf32>
    %6 = vector.shape_cast %5 : vector<1x80x1xf32> to vector<80x1xf32>
    %7 = vector.broadcast %6 : vector<80x1xf32> to vector<80x143xf32>
    %8 = arith.subf %4, %7 : vector<80x143xf32>
    %9 = math.exp %8 : vector<80x143xf32>
    %c0_8 = arith.constant 0 : index
    %c0_9 = arith.constant 0 : index
    %c0_10 = arith.constant 0 : index
    %10 = vector.load %arg5[%c0_8, %c0_9, %c0_10] : memref<1x80x1xf32, #tpu.memory_space<vmem>>, vector<1x80x1xf32>
    %11 = vector.shape_cast %10 : vector<1x80x1xf32> to vector<80x1xf32>
    %12 = vector.broadcast %11 : vector<80x1xf32> to vector<80x143xf32>
    %13 = arith.mulf %9, %12 : vector<80x143xf32>
    %c0_11 = arith.constant 0 : index
    %c0_12 = arith.constant 0 : index
    %c0_13 = arith.constant 0 : index
    %14 = vector.load %arg7[%c0_11, %c0_12, %c0_13] : memref<1x80x143xf32, #tpu.memory_space<vmem>>, vector<1x80x143xf32>
    %15 = vector.shape_cast %14 : vector<1x80x143xf32> to vector<80x143xf32>
    %16 = vector.shape_cast %13 : vector<80x143xf32> to vector<1x80x143xf32>
    tpu.vector_store %arg7[%c0_11, %c0_12, %c0_13], %16 {strides = array<i32>} : memref<1x80x143xf32, #tpu.memory_space<vmem>>, vector<1x80x143xf32>,
    return
  }
  func.func @transform_0(%arg0: i32, %arg1: i32, %arg2: i32) -> (i32, i32, i32) {
    %c0_i32 = arith.constant 0 : i32
    %c0_i32_0 = arith.constant 0 : i32
    return %arg0, %arg1, %c0_i32 : i32, i32, i32
  }
  func.func @transform_1(%arg0: i32, %arg1: i32, %arg2: i32) -> (i32, i32, i32) {
    %c0_i32 = arith.constant 0 : i32
    %c0_i32_0 = arith.constant 0 : i32
    return %arg0, %arg1, %c0_i32 : i32, i32, i32
  }
  func.func @transform_2(%arg0: i32, %arg1: i32, %arg2: i32) -> (i32, i32, i32) {
    %c0_i32 = arith.constant 0 : i32
    %c0_i32_0 = arith.constant 0 : i32
    return %arg0, %arg1, %c0_i32 : i32, i32, i32
  }
  func.func @transform_3(%arg0: i32, %arg1: i32, %arg2: i32) -> (i32, i32, i32) {
    %c0_i32 = arith.constant 0 : i32
    %c0_i32_0 = arith.constant 0 : i32
    return %arg0, %c0_i32, %arg2 : i32, i32, i32
  }
  func.func @transform_4(%arg0: i32, %arg1: i32, %arg2: i32) -> (i32, i32, i32) {
    %c0_i32 = arith.constant 0 : i32
    return %arg0, %arg1, %arg2 : i32, i32, i32
  }
}

module attributes {stable_mosaic.version = 11 : i64} {
  func.func @_stats_kernel(%arg0: i32, %arg1: i32, %arg2: i32, %arg3: memref<1x4x20x32xf32, #tpu.memory_space<vmem>>, %arg4: memref<1x4x20x1xf32, #tpu.memory_space<vmem>>, %arg5: memref<1x32x256xf32, #tpu.memory_space<vmem>>, %arg6: memref<1x20x1xf32, #tpu.memory_space<vmem>>, %arg7: memref<1x20x1xf32, #tpu.memory_space<vmem>>) attributes {dimension_semantics = [#tpu.dimension_semantics<parallel>, #tpu.dimension_semantics<parallel>, #tpu.dimension_semantics<arbitrary>], iteration_bounds = array<i64: 2, 1, 1>, scalar_prefetch = 0 : i64, scratch_operands = 0 : i64, tpu.core_type = #tpu.core_type<tc>, window_params = [{transform_indices = @transform_0, window_bounds = array<i64: 1, 4, 20, 32>}, {transform_indices = @transform_1, window_bounds = array<i64: 1, 4, 20, 1>}, {transform_indices = @transform_2, window_bounds = array<i64: 1, 32, 256>}, {transform_indices = @transform_3, window_bounds = array<i64: 1, 20, 1>}, {transform_indices = @transform_4, window_bounds = array<i64: 1, 20, 1>}]} {
    %c0_i32 = arith.constant 0 : i32
    %0 = arith.cmpi eq, %arg2, %c0_i32 : i32
    %1 = arith.extui %0 : i1 to i32
    %c0_i32_0 = arith.constant 0 : i32
    %2 = arith.cmpi ne, %1, %c0_i32_0 : i32
    scf.if %2 {
      %cst_55 = arith.constant 0xFF800000 : f32
      %91 = vector.broadcast %cst_55 : f32 to vector<1x20x1xf32>
      %c0_56 = arith.constant 0 : index
      %c0_57 = arith.constant 0 : index
      %c0_58 = arith.constant 0 : index
      %92 = vector.load %arg6[%c0_56, %c0_57, %c0_58] : memref<1x20x1xf32, #tpu.memory_space<vmem>>, vector<1x20x1xf32>
      tpu.vector_store %arg6[%c0_56, %c0_57, %c0_58], %91 {strides = array<i32>} : memref<1x20x1xf32, #tpu.memory_space<vmem>>, vector<1x20x1xf32>,
      %cst_59 = arith.constant 0.000000e+00 : f32
      %93 = vector.broadcast %cst_59 : f32 to vector<1x20x1xf32>
      %c0_60 = arith.constant 0 : index
      %c0_61 = arith.constant 0 : index
      %c0_62 = arith.constant 0 : index
      %94 = vector.load %arg7[%c0_60, %c0_61, %c0_62] : memref<1x20x1xf32, #tpu.memory_space<vmem>>, vector<1x20x1xf32>
      tpu.vector_store %arg7[%c0_60, %c0_61, %c0_62], %93 {strides = array<i32>} : memref<1x20x1xf32, #tpu.memory_space<vmem>>, vector<1x20x1xf32>,
    } else {
    }
    %c0 = arith.constant 0 : index
    %c0_1 = arith.constant 0 : index
    %c0_2 = arith.constant 0 : index
    %3 = vector.load %arg5[%c0, %c0_1, %c0_2] : memref<1x32x256xf32, #tpu.memory_space<vmem>>, vector<1x32x256xf32>
    %4 = vector.shape_cast %3 : vector<1x32x256xf32> to vector<32x256xf32>
    %c0_3 = arith.constant 0 : index
    %c0_4 = arith.constant 0 : index
    %c0_5 = arith.constant 0 : index
    %5 = vector.load %arg6[%c0_3, %c0_4, %c0_5] : memref<1x20x1xf32, #tpu.memory_space<vmem>>, vector<1x20x1xf32>
    %6 = vector.shape_cast %5 : vector<1x20x1xf32> to vector<20x1xf32>
    %c0_6 = arith.constant 0 : index
    %c0_7 = arith.constant 0 : index
    %c0_8 = arith.constant 0 : index
    %7 = vector.load %arg7[%c0_6, %c0_7, %c0_8] : memref<1x20x1xf32, #tpu.memory_space<vmem>>, vector<1x20x1xf32>
    %8 = vector.shape_cast %7 : vector<1x20x1xf32> to vector<20x1xf32>
    %c0_9 = arith.constant 0 : index
    %c0_10 = arith.constant 0 : index
    %c0_11 = arith.constant 0 : index
    %c0_12 = arith.constant 0 : index
    %9 = vector.load %arg3[%c0_9, %c0_10, %c0_11, %c0_12] : memref<1x4x20x32xf32, #tpu.memory_space<vmem>>, vector<1x1x20x32xf32>
    %10 = vector.shape_cast %9 : vector<1x1x20x32xf32> to vector<20x32xf32>
    %cst = arith.constant dense<0.000000e+00> : vector<20x256xf32>
    %11 = tpu.matmul %10, %4, %cst {dimension_numbers = #tpu.dot_dimension_numbers<[1], [0], [0], [1], [0, 0, 1, 1], [], []>} : vector<20x32xf32>, vector<32x256xf32>, vector<20x256xf32> -> vector<20x256xf32>
    %c0_13 = arith.constant 0 : index
    %c0_14 = arith.constant 0 : index
    %c0_15 = arith.constant 0 : index
    %c0_16 = arith.constant 0 : index
    %12 = vector.load %arg4[%c0_13, %c0_14, %c0_15, %c0_16] : memref<1x4x20x1xf32, #tpu.memory_space<vmem>>, vector<1x1x20x1xf32>
    %13 = vector.shape_cast %12 : vector<1x1x20x1xf32> to vector<20x1xf32>
    %14 = vector.broadcast %13 : vector<20x1xf32> to vector<20x256xf32>
    %15 = arith.addf %11, %14 : vector<20x256xf32>
    %cst_17 = arith.constant dense<0xFF800000> : vector<20xf32>
    %16 = vector.multi_reduction <maximumf>, %15, %cst_17 [1] : vector<20x256xf32> to vector<20xf32>
    %17 = vector.shape_cast %16 : vector<20xf32> to vector<20x1xf32>
    %18 = arith.maximumf %6, %17 : vector<20x1xf32>
    %19 = arith.subf %6, %18 : vector<20x1xf32>
    %20 = math.exp %19 : vector<20x1xf32>
    %21 = arith.mulf %8, %20 : vector<20x1xf32>
    %22 = vector.broadcast %18 : vector<20x1xf32> to vector<20x256xf32>
    %23 = arith.subf %15, %22 : vector<20x256xf32>
    %24 = math.exp %23 : vector<20x256xf32>
    %cst_18 = arith.constant dense<0.000000e+00> : vector<20xf32>
    %25 = vector.multi_reduction <add>, %24, %cst_18 [1] : vector<20x256xf32> to vector<20xf32>
    %26 = vector.shape_cast %25 : vector<20xf32> to vector<20x1xf32>
    %27 = arith.addf %21, %26 : vector<20x1xf32>
    %c0_19 = arith.constant 0 : index
    %c1 = arith.constant 1 : index
    %c0_20 = arith.constant 0 : index
    %c0_21 = arith.constant 0 : index
    %28 = vector.load %arg3[%c0_19, %c1, %c0_20, %c0_21] : memref<1x4x20x32xf32, #tpu.memory_space<vmem>>, vector<1x1x20x32xf32>
    %29 = vector.shape_cast %28 : vector<1x1x20x32xf32> to vector<20x32xf32>
    %cst_22 = arith.constant dense<0.000000e+00> : vector<20x256xf32>
    %30 = tpu.matmul %29, %4, %cst_22 {dimension_numbers = #tpu.dot_dimension_numbers<[1], [0], [0], [1], [0, 0, 1, 1], [], []>} : vector<20x32xf32>, vector<32x256xf32>, vector<20x256xf32> -> vector<20x256xf32>
    %c0_23 = arith.constant 0 : index
    %c1_24 = arith.constant 1 : index
    %c0_25 = arith.constant 0 : index
    %c0_26 = arith.constant 0 : index
    %31 = vector.load %arg4[%c0_23, %c1_24, %c0_25, %c0_26] : memref<1x4x20x1xf32, #tpu.memory_space<vmem>>, vector<1x1x20x1xf32>
    %32 = vector.shape_cast %31 : vector<1x1x20x1xf32> to vector<20x1xf32>
    %33 = vector.broadcast %32 : vector<20x1xf32> to vector<20x256xf32>
    %34 = arith.addf %30, %33 : vector<20x256xf32>
    %cst_27 = arith.constant dense<0xFF800000> : vector<20xf32>
    %35 = vector.multi_reduction <maximumf>, %34, %cst_27 [1] : vector<20x256xf32> to vector<20xf32>
    %36 = vector.shape_cast %35 : vector<20xf32> to vector<20x1xf32>
    %37 = arith.maximumf %18, %36 : vector<20x1xf32>
    %38 = arith.subf %18, %37 : vector<20x1xf32>
    %39 = math.exp %38 : vector<20x1xf32>
    %40 = arith.mulf %27, %39 : vector<20x1xf32>
    %41 = vector.broadcast %37 : vector<20x1xf32> to vector<20x256xf32>
    %42 = arith.subf %34, %41 : vector<20x256xf32>
    %43 = math.exp %42 : vector<20x256xf32>
    %cst_28 = arith.constant dense<0.000000e+00> : vector<20xf32>
    %44 = vector.multi_reduction <add>, %43, %cst_28 [1] : vector<20x256xf32> to vector<20xf32>
    %45 = vector.shape_cast %44 : vector<20xf32> to vector<20x1xf32>
    %46 = arith.addf %40, %45 : vector<20x1xf32>
    %c0_29 = arith.constant 0 : index
    %c2 = arith.constant 2 : index
    %c0_30 = arith.constant 0 : index
    %c0_31 = arith.constant 0 : index
    %47 = vector.load %arg3[%c0_29, %c2, %c0_30, %c0_31] : memref<1x4x20x32xf32, #tpu.memory_space<vmem>>, vector<1x1x20x32xf32>
    %48 = vector.shape_cast %47 : vector<1x1x20x32xf32> to vector<20x32xf32>
    %cst_32 = arith.constant dense<0.000000e+00> : vector<20x256xf32>
    %49 = tpu.matmul %48, %4, %cst_32 {dimension_numbers = #tpu.dot_dimension_numbers<[1], [0], [0], [1], [0, 0, 1, 1], [], []>} : vector<20x32xf32>, vector<32x256xf32>, vector<20x256xf32> -> vector<20x256xf32>
    %c0_33 = arith.constant 0 : index
    %c2_34 = arith.constant 2 : index
    %c0_35 = arith.constant 0 : index
    %c0_36 = arith.constant 0 : index
    %50 = vector.load %arg4[%c0_33, %c2_34, %c0_35, %c0_36] : memref<1x4x20x1xf32, #tpu.memory_space<vmem>>, vector<1x1x20x1xf32>
    %51 = vector.shape_cast %50 : vector<1x1x20x1xf32> to vector<20x1xf32>
    %52 = vector.broadcast %51 : vector<20x1xf32> to vector<20x256xf32>
    %53 = arith.addf %49, %52 : vector<20x256xf32>
    %cst_37 = arith.constant dense<0xFF800000> : vector<20xf32>
    %54 = vector.multi_reduction <maximumf>, %53, %cst_37 [1] : vector<20x256xf32> to vector<20xf32>
    %55 = vector.shape_cast %54 : vector<20xf32> to vector<20x1xf32>
    %56 = arith.maximumf %37, %55 : vector<20x1xf32>
    %57 = arith.subf %37, %56 : vector<20x1xf32>
    %58 = math.exp %57 : vector<20x1xf32>
    %59 = arith.mulf %46, %58 : vector<20x1xf32>
    %60 = vector.broadcast %56 : vector<20x1xf32> to vector<20x256xf32>
    %61 = arith.subf %53, %60 : vector<20x256xf32>
    %62 = math.exp %61 : vector<20x256xf32>
    %cst_38 = arith.constant dense<0.000000e+00> : vector<20xf32>
    %63 = vector.multi_reduction <add>, %62, %cst_38 [1] : vector<20x256xf32> to vector<20xf32>
    %64 = vector.shape_cast %63 : vector<20xf32> to vector<20x1xf32>
    %65 = arith.addf %59, %64 : vector<20x1xf32>
    %c0_39 = arith.constant 0 : index
    %c3 = arith.constant 3 : index
    %c0_40 = arith.constant 0 : index
    %c0_41 = arith.constant 0 : index
    %66 = vector.load %arg3[%c0_39, %c3, %c0_40, %c0_41] : memref<1x4x20x32xf32, #tpu.memory_space<vmem>>, vector<1x1x20x32xf32>
    %67 = vector.shape_cast %66 : vector<1x1x20x32xf32> to vector<20x32xf32>
    %cst_42 = arith.constant dense<0.000000e+00> : vector<20x256xf32>
    %68 = tpu.matmul %67, %4, %cst_42 {dimension_numbers = #tpu.dot_dimension_numbers<[1], [0], [0], [1], [0, 0, 1, 1], [], []>} : vector<20x32xf32>, vector<32x256xf32>, vector<20x256xf32> -> vector<20x256xf32>
    %c0_43 = arith.constant 0 : index
    %c3_44 = arith.constant 3 : index
    %c0_45 = arith.constant 0 : index
    %c0_46 = arith.constant 0 : index
    %69 = vector.load %arg4[%c0_43, %c3_44, %c0_45, %c0_46] : memref<1x4x20x1xf32, #tpu.memory_space<vmem>>, vector<1x1x20x1xf32>
    %70 = vector.shape_cast %69 : vector<1x1x20x1xf32> to vector<20x1xf32>
    %71 = vector.broadcast %70 : vector<20x1xf32> to vector<20x256xf32>
    %72 = arith.addf %68, %71 : vector<20x256xf32>
    %cst_47 = arith.constant dense<0xFF800000> : vector<20xf32>
    %73 = vector.multi_reduction <maximumf>, %72, %cst_47 [1] : vector<20x256xf32> to vector<20xf32>
    %74 = vector.shape_cast %73 : vector<20xf32> to vector<20x1xf32>
    %75 = arith.maximumf %56, %74 : vector<20x1xf32>
    %76 = arith.subf %56, %75 : vector<20x1xf32>
    %77 = math.exp %76 : vector<20x1xf32>
    %78 = arith.mulf %65, %77 : vector<20x1xf32>
    %79 = vector.broadcast %75 : vector<20x1xf32> to vector<20x256xf32>
    %80 = arith.subf %72, %79 : vector<20x256xf32>
    %81 = math.exp %80 : vector<20x256xf32>
    %cst_48 = arith.constant dense<0.000000e+00> : vector<20xf32>
    %82 = vector.multi_reduction <add>, %81, %cst_48 [1] : vector<20x256xf32> to vector<20xf32>
    %83 = vector.shape_cast %82 : vector<20xf32> to vector<20x1xf32>
    %84 = arith.addf %78, %83 : vector<20x1xf32>
    %c0_49 = arith.constant 0 : index
    %c0_50 = arith.constant 0 : index
    %c0_51 = arith.constant 0 : index
    %85 = vector.load %arg6[%c0_49, %c0_50, %c0_51] : memref<1x20x1xf32, #tpu.memory_space<vmem>>, vector<1x20x1xf32>
    %86 = vector.shape_cast %85 : vector<1x20x1xf32> to vector<20x1xf32>
    %87 = vector.shape_cast %75 : vector<20x1xf32> to vector<1x20x1xf32>
    tpu.vector_store %arg6[%c0_49, %c0_50, %c0_51], %87 {strides = array<i32>} : memref<1x20x1xf32, #tpu.memory_space<vmem>>, vector<1x20x1xf32>,
    %c0_52 = arith.constant 0 : index
    %c0_53 = arith.constant 0 : index
    %c0_54 = arith.constant 0 : index
    %88 = vector.load %arg7[%c0_52, %c0_53, %c0_54] : memref<1x20x1xf32, #tpu.memory_space<vmem>>, vector<1x20x1xf32>
    %89 = vector.shape_cast %88 : vector<1x20x1xf32> to vector<20x1xf32>
    %90 = vector.shape_cast %84 : vector<20x1xf32> to vector<1x20x1xf32>
    tpu.vector_store %arg7[%c0_52, %c0_53, %c0_54], %90 {strides = array<i32>} : memref<1x20x1xf32, #tpu.memory_space<vmem>>, vector<1x20x1xf32>,
    return
  }
  func.func @transform_0(%arg0: i32, %arg1: i32, %arg2: i32) -> (i32, i32, i32, i32) {
    %c0_i32 = arith.constant 0 : i32
    %c0_i32_0 = arith.constant 0 : i32
    %c0_i32_1 = arith.constant 0 : i32
    return %arg0, %c0_i32, %arg1, %c0_i32_0 : i32, i32, i32, i32
  }
  func.func @transform_1(%arg0: i32, %arg1: i32, %arg2: i32) -> (i32, i32, i32, i32) {
    %c0_i32 = arith.constant 0 : i32
    %c0_i32_0 = arith.constant 0 : i32
    %c0_i32_1 = arith.constant 0 : i32
    return %arg0, %c0_i32, %arg1, %c0_i32_0 : i32, i32, i32, i32
  }
  func.func @transform_2(%arg0: i32, %arg1: i32, %arg2: i32) -> (i32, i32, i32) {
    %c0_i32 = arith.constant 0 : i32
    %c0_i32_0 = arith.constant 0 : i32
    return %arg0, %c0_i32, %arg2 : i32, i32, i32
  }
  func.func @transform_3(%arg0: i32, %arg1: i32, %arg2: i32) -> (i32, i32, i32) {
    %c0_i32 = arith.constant 0 : i32
    %c0_i32_0 = arith.constant 0 : i32
    return %arg0, %arg1, %c0_i32 : i32, i32, i32
  }
  func.func @transform_4(%arg0: i32, %arg1: i32, %arg2: i32) -> (i32, i32, i32) {
    %c0_i32 = arith.constant 0 : i32
    %c0_i32_0 = arith.constant 0 : i32
    return %arg0, %arg1, %c0_i32 : i32, i32, i32
  }
}

module attributes {stable_mosaic.version = 11 : i64} {
  func.func @_prob_kernel(%arg0: i32, %arg1: i32, %arg2: i32, %arg3: memref<1x80x32xf32, #tpu.memory_space<vmem>>, %arg4: memref<1x80x1xf32, #tpu.memory_space<vmem>>, %arg5: memref<1x80x1xf32, #tpu.memory_space<vmem>>, %arg6: memref<1x32x256xf32, #tpu.memory_space<vmem>>, %arg7: memref<1x80x256xf32, #tpu.memory_space<vmem>>) attributes {dimension_semantics = [#tpu.dimension_semantics<parallel>, #tpu.dimension_semantics<parallel>, #tpu.dimension_semantics<parallel>], iteration_bounds = array<i64: 2, 1, 1>, scalar_prefetch = 0 : i64, scratch_operands = 0 : i64, tpu.core_type = #tpu.core_type<tc>, window_params = [{transform_indices = @transform_0, window_bounds = array<i64: 1, 80, 32>}, {transform_indices = @transform_1, window_bounds = array<i64: 1, 80, 1>}, {transform_indices = @transform_2, window_bounds = array<i64: 1, 80, 1>}, {transform_indices = @transform_3, window_bounds = array<i64: 1, 32, 256>}, {transform_indices = @transform_4, window_bounds = array<i64: 1, 80, 256>}]} {
    %c0 = arith.constant 0 : index
    %c0_0 = arith.constant 0 : index
    %c0_1 = arith.constant 0 : index
    %0 = vector.load %arg3[%c0, %c0_0, %c0_1] : memref<1x80x32xf32, #tpu.memory_space<vmem>>, vector<1x80x32xf32>
    %1 = vector.shape_cast %0 : vector<1x80x32xf32> to vector<80x32xf32>
    %c0_2 = arith.constant 0 : index
    %c0_3 = arith.constant 0 : index
    %c0_4 = arith.constant 0 : index
    %2 = vector.load %arg6[%c0_2, %c0_3, %c0_4] : memref<1x32x256xf32, #tpu.memory_space<vmem>>, vector<1x32x256xf32>
    %3 = vector.shape_cast %2 : vector<1x32x256xf32> to vector<32x256xf32>
    %cst = arith.constant dense<0.000000e+00> : vector<80x256xf32>
    %4 = tpu.matmul %1, %3, %cst {dimension_numbers = #tpu.dot_dimension_numbers<[1], [0], [0], [1], [0, 0, 1, 1], [], []>} : vector<80x32xf32>, vector<32x256xf32>, vector<80x256xf32> -> vector<80x256xf32>
    %c0_5 = arith.constant 0 : index
    %c0_6 = arith.constant 0 : index
    %c0_7 = arith.constant 0 : index
    %5 = vector.load %arg4[%c0_5, %c0_6, %c0_7] : memref<1x80x1xf32, #tpu.memory_space<vmem>>, vector<1x80x1xf32>
    %6 = vector.shape_cast %5 : vector<1x80x1xf32> to vector<80x1xf32>
    %7 = vector.broadcast %6 : vector<80x1xf32> to vector<80x256xf32>
    %8 = arith.subf %4, %7 : vector<80x256xf32>
    %9 = math.exp %8 : vector<80x256xf32>
    %c0_8 = arith.constant 0 : index
    %c0_9 = arith.constant 0 : index
    %c0_10 = arith.constant 0 : index
    %10 = vector.load %arg5[%c0_8, %c0_9, %c0_10] : memref<1x80x1xf32, #tpu.memory_space<vmem>>, vector<1x80x1xf32>
    %11 = vector.shape_cast %10 : vector<1x80x1xf32> to vector<80x1xf32>
    %12 = vector.broadcast %11 : vector<80x1xf32> to vector<80x256xf32>
    %13 = arith.mulf %9, %12 : vector<80x256xf32>
    %c0_11 = arith.constant 0 : index
    %c0_12 = arith.constant 0 : index
    %c0_13 = arith.constant 0 : index
    %14 = vector.load %arg7[%c0_11, %c0_12, %c0_13] : memref<1x80x256xf32, #tpu.memory_space<vmem>>, vector<1x80x256xf32>
    %15 = vector.shape_cast %14 : vector<1x80x256xf32> to vector<80x256xf32>
    %16 = vector.shape_cast %13 : vector<80x256xf32> to vector<1x80x256xf32>
    tpu.vector_store %arg7[%c0_11, %c0_12, %c0_13], %16 {strides = array<i32>} : memref<1x80x256xf32, #tpu.memory_space<vmem>>, vector<1x80x256xf32>,
    return
  }
  func.func @transform_0(%arg0: i32, %arg1: i32, %arg2: i32) -> (i32, i32, i32) {
    %c0_i32 = arith.constant 0 : i32
    %c0_i32_0 = arith.constant 0 : i32
    return %arg0, %arg1, %c0_i32 : i32, i32, i32
  }
  func.func @transform_1(%arg0: i32, %arg1: i32, %arg2: i32) -> (i32, i32, i32) {
    %c0_i32 = arith.constant 0 : i32
    %c0_i32_0 = arith.constant 0 : i32
    return %arg0, %arg1, %c0_i32 : i32, i32, i32
  }
  func.func @transform_2(%arg0: i32, %arg1: i32, %arg2: i32) -> (i32, i32, i32) {
    %c0_i32 = arith.constant 0 : i32
    %c0_i32_0 = arith.constant 0 : i32
    return %arg0, %arg1, %c0_i32 : i32, i32, i32
  }
  func.func @transform_3(%arg0: i32, %arg1: i32, %arg2: i32) -> (i32, i32, i32) {
    %c0_i32 = arith.constant 0 : i32
    %c0_i32_0 = arith.constant 0 : i32
    return %arg0, %c0_i32, %arg2 : i32, i32, i32
  }
  func.func @transform_4(%arg0: i32, %arg1: i32, %arg2: i32) -> (i32, i32, i32) {
    %c0_i32 = arith.constant 0 : i32
    return %arg0, %arg1, %arg2 : i32, i32, i32
  }
}

module attributes {stable_mosaic.version = 11 : i64} {
  func.func @_prob_kernel(%arg0: i32, %arg1: i32, %arg2: i32, %arg3: memref<1x80x32xf32, #tpu.memory_space<vmem>>, %arg4: memref<1x80x1xf32, #tpu.memory_space<vmem>>, %arg5: memref<1x80x1xf32, #tpu.memory_space<vmem>>, %arg6: memref<1x32x63xf32, #tpu.memory_space<vmem>>, %arg7: memref<1x80x63xf32, #tpu.memory_space<vmem>>) attributes {dimension_semantics = [#tpu.dimension_semantics<parallel>, #tpu.dimension_semantics<parallel>, #tpu.dimension_semantics<parallel>], iteration_bounds = array<i64: 2, 1, 1>, scalar_prefetch = 0 : i64, scratch_operands = 0 : i64, tpu.core_type = #tpu.core_type<tc>, window_params = [{transform_indices = @transform_0, window_bounds = array<i64: 1, 80, 32>}, {transform_indices = @transform_1, window_bounds = array<i64: 1, 80, 1>}, {transform_indices = @transform_2, window_bounds = array<i64: 1, 80, 1>}, {transform_indices = @transform_3, window_bounds = array<i64: 1, 32, 63>}, {transform_indices = @transform_4, window_bounds = array<i64: 1, 80, 63>}]} {
    %c0 = arith.constant 0 : index
    %c0_0 = arith.constant 0 : index
    %c0_1 = arith.constant 0 : index
    %0 = vector.load %arg3[%c0, %c0_0, %c0_1] : memref<1x80x32xf32, #tpu.memory_space<vmem>>, vector<1x80x32xf32>
    %1 = vector.shape_cast %0 : vector<1x80x32xf32> to vector<80x32xf32>
    %c0_2 = arith.constant 0 : index
    %c0_3 = arith.constant 0 : index
    %c0_4 = arith.constant 0 : index
    %2 = vector.load %arg6[%c0_2, %c0_3, %c0_4] : memref<1x32x63xf32, #tpu.memory_space<vmem>>, vector<1x32x63xf32>
    %3 = vector.shape_cast %2 : vector<1x32x63xf32> to vector<32x63xf32>
    %cst = arith.constant dense<0.000000e+00> : vector<80x63xf32>
    %4 = tpu.matmul %1, %3, %cst {dimension_numbers = #tpu.dot_dimension_numbers<[1], [0], [0], [1], [0, 0, 1, 1], [], []>} : vector<80x32xf32>, vector<32x63xf32>, vector<80x63xf32> -> vector<80x63xf32>
    %c0_5 = arith.constant 0 : index
    %c0_6 = arith.constant 0 : index
    %c0_7 = arith.constant 0 : index
    %5 = vector.load %arg4[%c0_5, %c0_6, %c0_7] : memref<1x80x1xf32, #tpu.memory_space<vmem>>, vector<1x80x1xf32>
    %6 = vector.shape_cast %5 : vector<1x80x1xf32> to vector<80x1xf32>
    %7 = vector.broadcast %6 : vector<80x1xf32> to vector<80x63xf32>
    %8 = arith.subf %4, %7 : vector<80x63xf32>
    %9 = math.exp %8 : vector<80x63xf32>
    %c0_8 = arith.constant 0 : index
    %c0_9 = arith.constant 0 : index
    %c0_10 = arith.constant 0 : index
    %10 = vector.load %arg5[%c0_8, %c0_9, %c0_10] : memref<1x80x1xf32, #tpu.memory_space<vmem>>, vector<1x80x1xf32>
    %11 = vector.shape_cast %10 : vector<1x80x1xf32> to vector<80x1xf32>
    %12 = vector.broadcast %11 : vector<80x1xf32> to vector<80x63xf32>
    %13 = arith.mulf %9, %12 : vector<80x63xf32>
    %c0_11 = arith.constant 0 : index
    %c0_12 = arith.constant 0 : index
    %c0_13 = arith.constant 0 : index
    %14 = vector.load %arg7[%c0_11, %c0_12, %c0_13] : memref<1x80x63xf32, #tpu.memory_space<vmem>>, vector<1x80x63xf32>
    %15 = vector.shape_cast %14 : vector<1x80x63xf32> to vector<80x63xf32>
    %16 = vector.shape_cast %13 : vector<80x63xf32> to vector<1x80x63xf32>
    tpu.vector_store %arg7[%c0_11, %c0_12, %c0_13], %16 {strides = array<i32>} : memref<1x80x63xf32, #tpu.memory_space<vmem>>, vector<1x80x63xf32>,
    return
  }
  func.func @transform_0(%arg0: i32, %arg1: i32, %arg2: i32) -> (i32, i32, i32) {
    %c0_i32 = arith.constant 0 : i32
    %c0_i32_0 = arith.constant 0 : i32
    return %arg0, %arg1, %c0_i32 : i32, i32, i32
  }
  func.func @transform_1(%arg0: i32, %arg1: i32, %arg2: i32) -> (i32, i32, i32) {
    %c0_i32 = arith.constant 0 : i32
    %c0_i32_0 = arith.constant 0 : i32
    return %arg0, %arg1, %c0_i32 : i32, i32, i32
  }
  func.func @transform_2(%arg0: i32, %arg1: i32, %arg2: i32) -> (i32, i32, i32) {
    %c0_i32 = arith.constant 0 : i32
    %c0_i32_0 = arith.constant 0 : i32
    return %arg0, %arg1, %c0_i32 : i32, i32, i32
  }
  func.func @transform_3(%arg0: i32, %arg1: i32, %arg2: i32) -> (i32, i32, i32) {
    %c0_i32 = arith.constant 0 : i32
    %c0_i32_0 = arith.constant 0 : i32
    return %arg0, %c0_i32, %arg2 : i32, i32, i32
  }
  func.func @transform_4(%arg0: i32, %arg1: i32, %arg2: i32) -> (i32, i32, i32) {
    %c0_i32 = arith.constant 0 : i32
    return %arg0, %arg1, %arg2 : i32, i32, i32
  }
}

module attributes {stable_mosaic.version = 11 : i64} {
  func.func @_stats_kernel(%arg0: i32, %arg1: i32, %arg2: i32, %arg3: memref<1x4x20x32xf32, #tpu.memory_space<vmem>>, %arg4: memref<1x4x20x1xf32, #tpu.memory_space<vmem>>, %arg5: memref<1x32x63xf32, #tpu.memory_space<vmem>>, %arg6: memref<1x20x1xf32, #tpu.memory_space<vmem>>, %arg7: memref<1x20x1xf32, #tpu.memory_space<vmem>>) attributes {dimension_semantics = [#tpu.dimension_semantics<parallel>, #tpu.dimension_semantics<parallel>, #tpu.dimension_semantics<arbitrary>], iteration_bounds = array<i64: 2, 1, 1>, scalar_prefetch = 0 : i64, scratch_operands = 0 : i64, tpu.core_type = #tpu.core_type<tc>, window_params = [{transform_indices = @transform_0, window_bounds = array<i64: 1, 4, 20, 32>}, {transform_indices = @transform_1, window_bounds = array<i64: 1, 4, 20, 1>}, {transform_indices = @transform_2, window_bounds = array<i64: 1, 32, 63>}, {transform_indices = @transform_3, window_bounds = array<i64: 1, 20, 1>}, {transform_indices = @transform_4, window_bounds = array<i64: 1, 20, 1>}]} {
    %c0_i32 = arith.constant 0 : i32
    %0 = arith.cmpi eq, %arg2, %c0_i32 : i32
    %1 = arith.extui %0 : i1 to i32
    %c0_i32_0 = arith.constant 0 : i32
    %2 = arith.cmpi ne, %1, %c0_i32_0 : i32
    scf.if %2 {
      %cst_55 = arith.constant 0xFF800000 : f32
      %91 = vector.broadcast %cst_55 : f32 to vector<1x20x1xf32>
      %c0_56 = arith.constant 0 : index
      %c0_57 = arith.constant 0 : index
      %c0_58 = arith.constant 0 : index
      %92 = vector.load %arg6[%c0_56, %c0_57, %c0_58] : memref<1x20x1xf32, #tpu.memory_space<vmem>>, vector<1x20x1xf32>
      tpu.vector_store %arg6[%c0_56, %c0_57, %c0_58], %91 {strides = array<i32>} : memref<1x20x1xf32, #tpu.memory_space<vmem>>, vector<1x20x1xf32>,
      %cst_59 = arith.constant 0.000000e+00 : f32
      %93 = vector.broadcast %cst_59 : f32 to vector<1x20x1xf32>
      %c0_60 = arith.constant 0 : index
      %c0_61 = arith.constant 0 : index
      %c0_62 = arith.constant 0 : index
      %94 = vector.load %arg7[%c0_60, %c0_61, %c0_62] : memref<1x20x1xf32, #tpu.memory_space<vmem>>, vector<1x20x1xf32>
      tpu.vector_store %arg7[%c0_60, %c0_61, %c0_62], %93 {strides = array<i32>} : memref<1x20x1xf32, #tpu.memory_space<vmem>>, vector<1x20x1xf32>,
    } else {
    }
    %c0 = arith.constant 0 : index
    %c0_1 = arith.constant 0 : index
    %c0_2 = arith.constant 0 : index
    %3 = vector.load %arg5[%c0, %c0_1, %c0_2] : memref<1x32x63xf32, #tpu.memory_space<vmem>>, vector<1x32x63xf32>
    %4 = vector.shape_cast %3 : vector<1x32x63xf32> to vector<32x63xf32>
    %c0_3 = arith.constant 0 : index
    %c0_4 = arith.constant 0 : index
    %c0_5 = arith.constant 0 : index
    %5 = vector.load %arg6[%c0_3, %c0_4, %c0_5] : memref<1x20x1xf32, #tpu.memory_space<vmem>>, vector<1x20x1xf32>
    %6 = vector.shape_cast %5 : vector<1x20x1xf32> to vector<20x1xf32>
    %c0_6 = arith.constant 0 : index
    %c0_7 = arith.constant 0 : index
    %c0_8 = arith.constant 0 : index
    %7 = vector.load %arg7[%c0_6, %c0_7, %c0_8] : memref<1x20x1xf32, #tpu.memory_space<vmem>>, vector<1x20x1xf32>
    %8 = vector.shape_cast %7 : vector<1x20x1xf32> to vector<20x1xf32>
    %c0_9 = arith.constant 0 : index
    %c0_10 = arith.constant 0 : index
    %c0_11 = arith.constant 0 : index
    %c0_12 = arith.constant 0 : index
    %9 = vector.load %arg3[%c0_9, %c0_10, %c0_11, %c0_12] : memref<1x4x20x32xf32, #tpu.memory_space<vmem>>, vector<1x1x20x32xf32>
    %10 = vector.shape_cast %9 : vector<1x1x20x32xf32> to vector<20x32xf32>
    %cst = arith.constant dense<0.000000e+00> : vector<20x63xf32>
    %11 = tpu.matmul %10, %4, %cst {dimension_numbers = #tpu.dot_dimension_numbers<[1], [0], [0], [1], [0, 0, 1, 1], [], []>} : vector<20x32xf32>, vector<32x63xf32>, vector<20x63xf32> -> vector<20x63xf32>
    %c0_13 = arith.constant 0 : index
    %c0_14 = arith.constant 0 : index
    %c0_15 = arith.constant 0 : index
    %c0_16 = arith.constant 0 : index
    %12 = vector.load %arg4[%c0_13, %c0_14, %c0_15, %c0_16] : memref<1x4x20x1xf32, #tpu.memory_space<vmem>>, vector<1x1x20x1xf32>
    %13 = vector.shape_cast %12 : vector<1x1x20x1xf32> to vector<20x1xf32>
    %14 = vector.broadcast %13 : vector<20x1xf32> to vector<20x63xf32>
    %15 = arith.addf %11, %14 : vector<20x63xf32>
    %cst_17 = arith.constant dense<0xFF800000> : vector<20xf32>
    %16 = vector.multi_reduction <maximumf>, %15, %cst_17 [1] : vector<20x63xf32> to vector<20xf32>
    %17 = vector.shape_cast %16 : vector<20xf32> to vector<20x1xf32>
    %18 = arith.maximumf %6, %17 : vector<20x1xf32>
    %19 = arith.subf %6, %18 : vector<20x1xf32>
    %20 = math.exp %19 : vector<20x1xf32>
    %21 = arith.mulf %8, %20 : vector<20x1xf32>
    %22 = vector.broadcast %18 : vector<20x1xf32> to vector<20x63xf32>
    %23 = arith.subf %15, %22 : vector<20x63xf32>
    %24 = math.exp %23 : vector<20x63xf32>
    %cst_18 = arith.constant dense<0.000000e+00> : vector<20xf32>
    %25 = vector.multi_reduction <add>, %24, %cst_18 [1] : vector<20x63xf32> to vector<20xf32>
    %26 = vector.shape_cast %25 : vector<20xf32> to vector<20x1xf32>
    %27 = arith.addf %21, %26 : vector<20x1xf32>
    %c0_19 = arith.constant 0 : index
    %c1 = arith.constant 1 : index
    %c0_20 = arith.constant 0 : index
    %c0_21 = arith.constant 0 : index
    %28 = vector.load %arg3[%c0_19, %c1, %c0_20, %c0_21] : memref<1x4x20x32xf32, #tpu.memory_space<vmem>>, vector<1x1x20x32xf32>
    %29 = vector.shape_cast %28 : vector<1x1x20x32xf32> to vector<20x32xf32>
    %cst_22 = arith.constant dense<0.000000e+00> : vector<20x63xf32>
    %30 = tpu.matmul %29, %4, %cst_22 {dimension_numbers = #tpu.dot_dimension_numbers<[1], [0], [0], [1], [0, 0, 1, 1], [], []>} : vector<20x32xf32>, vector<32x63xf32>, vector<20x63xf32> -> vector<20x63xf32>
    %c0_23 = arith.constant 0 : index
    %c1_24 = arith.constant 1 : index
    %c0_25 = arith.constant 0 : index
    %c0_26 = arith.constant 0 : index
    %31 = vector.load %arg4[%c0_23, %c1_24, %c0_25, %c0_26] : memref<1x4x20x1xf32, #tpu.memory_space<vmem>>, vector<1x1x20x1xf32>
    %32 = vector.shape_cast %31 : vector<1x1x20x1xf32> to vector<20x1xf32>
    %33 = vector.broadcast %32 : vector<20x1xf32> to vector<20x63xf32>
    %34 = arith.addf %30, %33 : vector<20x63xf32>
    %cst_27 = arith.constant dense<0xFF800000> : vector<20xf32>
    %35 = vector.multi_reduction <maximumf>, %34, %cst_27 [1] : vector<20x63xf32> to vector<20xf32>
    %36 = vector.shape_cast %35 : vector<20xf32> to vector<20x1xf32>
    %37 = arith.maximumf %18, %36 : vector<20x1xf32>
    %38 = arith.subf %18, %37 : vector<20x1xf32>
    %39 = math.exp %38 : vector<20x1xf32>
    %40 = arith.mulf %27, %39 : vector<20x1xf32>
    %41 = vector.broadcast %37 : vector<20x1xf32> to vector<20x63xf32>
    %42 = arith.subf %34, %41 : vector<20x63xf32>
    %43 = math.exp %42 : vector<20x63xf32>
    %cst_28 = arith.constant dense<0.000000e+00> : vector<20xf32>
    %44 = vector.multi_reduction <add>, %43, %cst_28 [1] : vector<20x63xf32> to vector<20xf32>
    %45 = vector.shape_cast %44 : vector<20xf32> to vector<20x1xf32>
    %46 = arith.addf %40, %45 : vector<20x1xf32>
    %c0_29 = arith.constant 0 : index
    %c2 = arith.constant 2 : index
    %c0_30 = arith.constant 0 : index
    %c0_31 = arith.constant 0 : index
    %47 = vector.load %arg3[%c0_29, %c2, %c0_30, %c0_31] : memref<1x4x20x32xf32, #tpu.memory_space<vmem>>, vector<1x1x20x32xf32>
    %48 = vector.shape_cast %47 : vector<1x1x20x32xf32> to vector<20x32xf32>
    %cst_32 = arith.constant dense<0.000000e+00> : vector<20x63xf32>
    %49 = tpu.matmul %48, %4, %cst_32 {dimension_numbers = #tpu.dot_dimension_numbers<[1], [0], [0], [1], [0, 0, 1, 1], [], []>} : vector<20x32xf32>, vector<32x63xf32>, vector<20x63xf32> -> vector<20x63xf32>
    %c0_33 = arith.constant 0 : index
    %c2_34 = arith.constant 2 : index
    %c0_35 = arith.constant 0 : index
    %c0_36 = arith.constant 0 : index
    %50 = vector.load %arg4[%c0_33, %c2_34, %c0_35, %c0_36] : memref<1x4x20x1xf32, #tpu.memory_space<vmem>>, vector<1x1x20x1xf32>
    %51 = vector.shape_cast %50 : vector<1x1x20x1xf32> to vector<20x1xf32>
    %52 = vector.broadcast %51 : vector<20x1xf32> to vector<20x63xf32>
    %53 = arith.addf %49, %52 : vector<20x63xf32>
    %cst_37 = arith.constant dense<0xFF800000> : vector<20xf32>
    %54 = vector.multi_reduction <maximumf>, %53, %cst_37 [1] : vector<20x63xf32> to vector<20xf32>
    %55 = vector.shape_cast %54 : vector<20xf32> to vector<20x1xf32>
    %56 = arith.maximumf %37, %55 : vector<20x1xf32>
    %57 = arith.subf %37, %56 : vector<20x1xf32>
    %58 = math.exp %57 : vector<20x1xf32>
    %59 = arith.mulf %46, %58 : vector<20x1xf32>
    %60 = vector.broadcast %56 : vector<20x1xf32> to vector<20x63xf32>
    %61 = arith.subf %53, %60 : vector<20x63xf32>
    %62 = math.exp %61 : vector<20x63xf32>
    %cst_38 = arith.constant dense<0.000000e+00> : vector<20xf32>
    %63 = vector.multi_reduction <add>, %62, %cst_38 [1] : vector<20x63xf32> to vector<20xf32>
    %64 = vector.shape_cast %63 : vector<20xf32> to vector<20x1xf32>
    %65 = arith.addf %59, %64 : vector<20x1xf32>
    %c0_39 = arith.constant 0 : index
    %c3 = arith.constant 3 : index
    %c0_40 = arith.constant 0 : index
    %c0_41 = arith.constant 0 : index
    %66 = vector.load %arg3[%c0_39, %c3, %c0_40, %c0_41] : memref<1x4x20x32xf32, #tpu.memory_space<vmem>>, vector<1x1x20x32xf32>
    %67 = vector.shape_cast %66 : vector<1x1x20x32xf32> to vector<20x32xf32>
    %cst_42 = arith.constant dense<0.000000e+00> : vector<20x63xf32>
    %68 = tpu.matmul %67, %4, %cst_42 {dimension_numbers = #tpu.dot_dimension_numbers<[1], [0], [0], [1], [0, 0, 1, 1], [], []>} : vector<20x32xf32>, vector<32x63xf32>, vector<20x63xf32> -> vector<20x63xf32>
    %c0_43 = arith.constant 0 : index
    %c3_44 = arith.constant 3 : index
    %c0_45 = arith.constant 0 : index
    %c0_46 = arith.constant 0 : index
    %69 = vector.load %arg4[%c0_43, %c3_44, %c0_45, %c0_46] : memref<1x4x20x1xf32, #tpu.memory_space<vmem>>, vector<1x1x20x1xf32>
    %70 = vector.shape_cast %69 : vector<1x1x20x1xf32> to vector<20x1xf32>
    %71 = vector.broadcast %70 : vector<20x1xf32> to vector<20x63xf32>
    %72 = arith.addf %68, %71 : vector<20x63xf32>
    %cst_47 = arith.constant dense<0xFF800000> : vector<20xf32>
    %73 = vector.multi_reduction <maximumf>, %72, %cst_47 [1] : vector<20x63xf32> to vector<20xf32>
    %74 = vector.shape_cast %73 : vector<20xf32> to vector<20x1xf32>
    %75 = arith.maximumf %56, %74 : vector<20x1xf32>
    %76 = arith.subf %56, %75 : vector<20x1xf32>
    %77 = math.exp %76 : vector<20x1xf32>
    %78 = arith.mulf %65, %77 : vector<20x1xf32>
    %79 = vector.broadcast %75 : vector<20x1xf32> to vector<20x63xf32>
    %80 = arith.subf %72, %79 : vector<20x63xf32>
    %81 = math.exp %80 : vector<20x63xf32>
    %cst_48 = arith.constant dense<0.000000e+00> : vector<20xf32>
    %82 = vector.multi_reduction <add>, %81, %cst_48 [1] : vector<20x63xf32> to vector<20xf32>
    %83 = vector.shape_cast %82 : vector<20xf32> to vector<20x1xf32>
    %84 = arith.addf %78, %83 : vector<20x1xf32>
    %c0_49 = arith.constant 0 : index
    %c0_50 = arith.constant 0 : index
    %c0_51 = arith.constant 0 : index
    %85 = vector.load %arg6[%c0_49, %c0_50, %c0_51] : memref<1x20x1xf32, #tpu.memory_space<vmem>>, vector<1x20x1xf32>
    %86 = vector.shape_cast %85 : vector<1x20x1xf32> to vector<20x1xf32>
    %87 = vector.shape_cast %75 : vector<20x1xf32> to vector<1x20x1xf32>
    tpu.vector_store %arg6[%c0_49, %c0_50, %c0_51], %87 {strides = array<i32>} : memref<1x20x1xf32, #tpu.memory_space<vmem>>, vector<1x20x1xf32>,
    %c0_52 = arith.constant 0 : index
    %c0_53 = arith.constant 0 : index
    %c0_54 = arith.constant 0 : index
    %88 = vector.load %arg7[%c0_52, %c0_53, %c0_54] : memref<1x20x1xf32, #tpu.memory_space<vmem>>, vector<1x20x1xf32>
    %89 = vector.shape_cast %88 : vector<1x20x1xf32> to vector<20x1xf32>
    %90 = vector.shape_cast %84 : vector<20x1xf32> to vector<1x20x1xf32>
    tpu.vector_store %arg7[%c0_52, %c0_53, %c0_54], %90 {strides = array<i32>} : memref<1x20x1xf32, #tpu.memory_space<vmem>>, vector<1x20x1xf32>,
    return
  }
  func.func @transform_0(%arg0: i32, %arg1: i32, %arg2: i32) -> (i32, i32, i32, i32) {
    %c0_i32 = arith.constant 0 : i32
    %c0_i32_0 = arith.constant 0 : i32
    %c0_i32_1 = arith.constant 0 : i32
    return %arg0, %c0_i32, %arg1, %c0_i32_0 : i32, i32, i32, i32
  }
  func.func @transform_1(%arg0: i32, %arg1: i32, %arg2: i32) -> (i32, i32, i32, i32) {
    %c0_i32 = arith.constant 0 : i32
    %c0_i32_0 = arith.constant 0 : i32
    %c0_i32_1 = arith.constant 0 : i32
    return %arg0, %c0_i32, %arg1, %c0_i32_0 : i32, i32, i32, i32
  }
  func.func @transform_2(%arg0: i32, %arg1: i32, %arg2: i32) -> (i32, i32, i32) {
    %c0_i32 = arith.constant 0 : i32
    %c0_i32_0 = arith.constant 0 : i32
    return %arg0, %c0_i32, %arg2 : i32, i32, i32
  }
  func.func @transform_3(%arg0: i32, %arg1: i32, %arg2: i32) -> (i32, i32, i32) {
    %c0_i32 = arith.constant 0 : i32
    %c0_i32_0 = arith.constant 0 : i32
    return %arg0, %arg1, %c0_i32 : i32, i32, i32
  }
  func.func @transform_4(%arg0: i32, %arg1: i32, %arg2: i32) -> (i32, i32, i32) {
    %c0_i32 = arith.constant 0 : i32
    %c0_i32_0 = arith.constant 0 : i32
    return %arg0, %arg1, %c0_i32 : i32, i32, i32
  }
}

</mosaic_0001>

<bundles_post_ra>
// kernel: _forward_impl.9
= control target key start
LH: loop header
LB: loop body
LE: loop exit
PB: predicated region body
PF: predicated region fallthrough
CT: control target
= control target key end

     0   :  { %s1080_s15 = smov 0   ;;  %s1082_s16 = smov 0   ;;  %s1244_s0 = inlined_call_operand.vmem [shape: f32[2,80,32], index: 0, kind: input, shape index: {}]   ;;  %s1245_s1 = inlined_call_operand.vmem [shape: f32[2,80,1], index: 1, kind: input, shape index: {}]   ;;  %s1246_s2 = inlined_call_operand.vmem [shape: f32[2,80,1], index: 2, kind: input, shape index: {}]   ;;  %s1247_s3 = inlined_call_operand.vmem [shape: f32[2,32,143], index: 3, kind: input, shape index: {}]   ;;  %s1248_s4 = inlined_call_operand.vmem [shape: f32[2,80,143], index: 4, kind: output, shape index: {}]  }
   0x1   :  { %s1084_s17 = smov 0  }
   0x2 LB: > { %s33_s18 = sadd.s32 1, %s1047_s16  ;;  %p927_p0 = scmp.ge.s32.totalorder %s1051_s17, 1  ;;  %s1051_s17 = sphi %s1084_s17, %s14_s17   ;;  %s1047_s16 = sphi %s1082_s16, %s1250_s16   ;;  %s1043_s15 = sphi %s1080_s15, %s1249_s15  }
   0x3   : > { %p35_p1 = scmp.ge.s32.totalorder %s33_s18, 2  ;;  %p243_p2 = scmp.lt.s32.totalorder %s1051_s17, 3 }
   0x5   : > { %s1252_s18 = smov (%p35_p1, %s33_s18), 0  ;;  %p244_p3 = pnand %p927_p0, %p243_p2 }
   0x6   : > { %p310_p4 = scmp.lt.s32.totalorder (!%p244_p3), %s1043_s15, 1  ;;  %v1053_v0 = vmov (!%p244_p3), 0.0   ;;  %v1054_v1 = vmov (!%p244_p3), 0   ;;  %vm383_vm0 = vcmask (!%p244_p3), 261120   ;;  %vm740_vm1 = vcmask (!%p244_p3), 121856  }
   0x7   : > { %247 = sbr.rel (%p244_p3) target bundleno = 278 (0x116), region = 36  ;;  %478 = vmatprep.mubr.f32.mxu0 (!%p244_p3), %v1053_v0  ;;  %508 = vmatprep.mubr.f32.mxu1 (!%p244_p3), %v1053_v0 }
   0x8   : > { %988 = vset.pattern.permute.xlu1 (!%p244_p3), %v1054_v1  ;;  %987 = vset.pattern.permute.xlu0 (!%p244_p3), %v1054_v1 }
   0xe   : > { %s1254_s15 = smov (!%p310_p4, %s1043_s15), 1 }
   0xf   : > { %s946_s19 = sshll.u32 %s1254_s15, 6  ;;  %s1107_s23 = smul.u32 80, %s1254_s15 }
  0x10   : > { %s347_s22 = scalar_lea.vmem %s1247_s3, %s946_s19  ;;  %s960_s7 = smul.u32 160, %s1254_s15 }
  0x11   : > { %v376_v2 = vld [vmem:[%s347_s22 + $0x8] sm:$0xff]  ;;  %v378_v3 = vld [vmem:[%s347_s22 + $0x18] sm:$0xff]  ;;  %v375_v4 = vld [vmem:[%s347_s22] sm:$0xff]  ;;  %s1113_s26 = scalar_lea.vmem %s1245_s1, %s1107_s23  ;;  %s1119_s29 = scalar_lea.vmem %s1244_s0, %s1107_s23 }
  0x12   : > { %v947_v5 = vpack.c.bf16 %v378_v3, %v376_v2  ;;  %v377_v6 = vld [vmem:[%s347_s22 + $0x10] sm:$0xff]  ;;  %v380_v7 = vld [vmem:[%s347_s22 + $0x28] sm:$0xff]  ;;  %v382_v8 = vld [vmem:[%s347_s22 + $0x38] sm:$0xff]  ;;  %s337_s6 = scalar_lea.vmem %s1246_s2, %s1107_s23  ;;  %s1189_s10 = scalar_lea.vmem %s1248_s4, %s960_s7 }
  0x13   : > { %v949_v9 = vpack.c.bf16 %v377_v6, %v375_v4  ;;  %v951_v10 = vpack.c.bf16 %v382_v8, %v380_v7  ;;  %v379_v11 = vld [vmem:[%s347_s22 + $0x20] sm:$0xff]  ;;  %v381_v12 = vld [vmem:[%s347_s22 + $0x30] sm:$0xff]  ;;  %v370_v17 = vld [vmem:[%s1119_s29 + $0x28] sm:$0xff] }
  0x14   : > { %948 = vmatprep.subr.bf16.mxu0 %v947_v5  ;;  %955 = vmatprep.subr.bf16.mxu1 %v947_v5  ;;  %v953_v13 = vpack.c.bf16 %v381_v12, %v379_v11  ;;  %v541_v14 = vld [vmem:[%s1113_s26 + $0x10] sm:$0xff]  ;;  %v539_v15 = vld [vmem:[%s1113_s26] sm:$0xff]  ;;  %v542_v18 = vld [vmem:[%s1113_s26 + $0x18] sm:$0xff] }
  0x15   : > { %950 = vmatpush1.bf16.msra.mxu0 %v949_v9  ;;  %957 = vmatpush1.bf16.msra.mxu1 %v949_v9  ;;  %v365_v16 = vld [vmem:[%s1119_s29] sm:$0xff]  ;;  %v540_v19 = vld [vmem:[%s1113_s26 + $0x8] sm:$0xff]  ;;  %v371_v21 = vld [vmem:[%s1119_s29 + $0x30] sm:$0xff] }
  0x16   : > { %952 = vmatprep.subr.bf16.mxu0 %v951_v10  ;;  %956 = vmatprep.subr.bf16.mxu1 %v951_v10  ;;  %v366_v20 = vld [vmem:[%s1119_s29 + $0x8] sm:$0xff]  ;;  %v543_v23 = vld [vmem:[%s1113_s26 + $0x20] sm:$0xff]  ;;  %v367_v24 = vld [vmem:[%s1119_s29 + $0x10] sm:$0xff] }
  0x17   : > { %561 = vperm.xlu1 %988, %v541_v14   ;;  %551 = vperm.xlu0 %987, %v539_v15   ;;  %v544_v22 = vld [vmem:[%s1113_s26 + $0x28] sm:$0xff]  ;;  %v372_v25 = vld [vmem:[%s1119_s29 + $0x38] sm:$0xff]  ;;  %v545_v27 = vld [vmem:[%s1113_s26 + $0x30] sm:$0xff] }
  0x18   : > { %v546_v26 = vld [vmem:[%s1113_s26 + $0x38] sm:$0xff]  ;;  %v373_v29 = vld [vmem:[%s1119_s29 + $0x40] sm:$0xff]  ;;  %v548_v30 = vld [vmem:[%s1113_s26 + $0x48] sm:$0xff] }
  0x19   : > { %954 = vmatpush1.bf16.msra.mxu0 %v953_v13  ;;  %958 = vmatpush1.bf16.msra.mxu1 %v953_v13  ;;  %v368_v28 = vld [vmem:[%s1119_s29 + $0x18] sm:$0xff]  ;;  %v547_v31 = vld [vmem:[%s1113_s26 + $0x40] sm:$0xff]  ;;  %v374_v33 = vld [vmem:[%s1119_s29 + $0x48] sm:$0xff] }
  0x1a   : > { %v369_v32 = vld [vmem:[%s1119_s29 + $0x20] sm:$0xff]  ;;  %v660_v34 = vld [vmem:[%s337_s6 + $0x8] sm:$0xff]  ;;  %v662_v36 = vld [vmem:[%s337_s6 + $0x18] sm:$0xff] }
  0x1b   : > { %566 = vperm.xlu1 %988, %v542_v18   ;;  %556 = vperm.xlu0 %987, %v540_v19   ;;  %v659_v35 = vld [vmem:[%s337_s6] sm:$0xff]  ;;  %v661_v37 = vld [vmem:[%s337_s6 + $0x10] sm:$0xff]  ;;  %v664_v38 = vld [vmem:[%s337_s6 + $0x28] sm:$0xff] }
  0x1c   : > { %934 = vmatmul.mubr.msk.f32.vlgmr.msra.gmra.mrb[0].mxu0 %vm383_vm0, %v365_v16  ;;  %939 = vmatmul.mubr.msk.f32.vlgmr.msra.gmra.mrb[0].mxu1 %vm383_vm0, %v370_v17  ;;  %v663_v39 = vld [vmem:[%s337_s6 + $0x20] sm:$0xff]  ;;  %v666_v40 = vld [vmem:[%s337_s6 + $0x38] sm:$0xff]  ;;  %v665_v41 = vld [vmem:[%s337_s6 + $0x30] sm:$0xff] }
  0x1d   : > { %484 = vmatprep.mubr.f32.mxu0 %v1053_v0  ;;  %514 = vmatprep.mubr.f32.mxu1 %v1053_v0  ;;  %v668_v42 = vld [vmem:[%s337_s6 + $0x48] sm:$0xff]  ;;  %v667_v43 = vld [vmem:[%s337_s6 + $0x40] sm:$0xff] }
  0x1f   : > { %576 = vperm.xlu1 %988, %v544_v22   ;;  %571 = vperm.xlu0 %987, %v543_v23  }
  0x20   : > { %935 = vmatmul.mubr.msk.f32.gmra.mrb[2].mxu0 %vm383_vm0, %v366_v20  ;;  %940 = vmatmul.mubr.msk.f32.gmra.mrb[2].mxu1 %vm383_vm0, %v371_v21 }
  0x21   : > { %490 = vmatprep.mubr.f32.mxu0 %v1053_v0  ;;  %520 = vmatprep.mubr.f32.mxu1 %v1053_v0 }
  0x23   : > { %586 = vperm.xlu1 %988, %v546_v26   ;;  %581 = vperm.xlu0 %987, %v545_v27  }
  0x24   : > { %936 = vmatmul.mubr.msk.f32.gmra.mrb[4].mxu0 %vm383_vm0, %v367_v24  ;;  %941 = vmatmul.mubr.msk.f32.gmra.mrb[4].mxu1 %vm383_vm0, %v372_v25 }
  0x25   : > { %496 = vmatprep.mubr.f32.mxu0 %v1053_v0  ;;  %526 = vmatprep.mubr.f32.mxu1 %v1053_v0 }
  0x27   : > { %596 = vperm.xlu1 %988, %v548_v30   ;;  %591 = vperm.xlu0 %987, %v547_v31  }
  0x28   : > { %937 = vmatmul.mubr.msk.f32.gmra.mrb[6].mxu0 %vm383_vm0, %v368_v28  ;;  %942 = vmatmul.mubr.msk.f32.gmra.mrb[6].mxu1 %vm383_vm0, %v373_v29 }
  0x29   : > { %502 = vmatprep.mubr.f32.mxu0 %v1053_v0  ;;  %532 = vmatprep.mubr.f32.mxu1 %v1053_v0 }
  0x2b   : > { %676 = vperm.xlu1 %988, %v660_v34   ;;  %671 = vperm.xlu0 %987, %v659_v35  }
  0x2c   : > { %938 = vmatmul.mubr.msk.f32.gmra.mrb[8].mxu0 %vm383_vm0, %v369_v32  ;;  %943 = vmatmul.mubr.msk.f32.gmra.mrb[8].mxu1 %vm383_vm0, %v374_v33 }
  0x2f   : > { %686 = vperm.xlu1 %988, %v662_v36   ;;  %681 = vperm.xlu0 %987, %v661_v37  }
  0x33   : > { %696 = vperm.xlu1 %988, %v664_v38   ;;  %691 = vperm.xlu0 %987, %v663_v39  }
  0x37   : > { %706 = vperm.xlu1 %988, %v666_v40   ;;  %701 = vperm.xlu0 %987, %v665_v41  }
  0x3b   : > { %716 = vperm.xlu1 %988, %v668_v42   ;;  %711 = vperm.xlu0 %987, %v667_v43  }
  0x96   : > { %v562_v44 = vpop.permute.xlu1 %561  ;;  %v552_v45 = vpop.permute.xlu0 %551 }
  0x9a   : > { %v1163_v46 = vpop.permute.xlu1 %566  ;;  %v557_v47 = vpop.permute.xlu0 %556 }
  0x9e   : > { %v577_v48 = vpop.permute.xlu1 %576  ;;  %v1165_v49 = vpop.permute.xlu0 %571 }
  0xa2   : > { %v587_v50 = vpop.permute.xlu1 %586  ;;  %v582_v51 = vpop.permute.xlu0 %581 }
  0xa6   : > { %v1167_v52 = vpop.permute.xlu1 %596  ;;  %v1169_v53 = vpop.permute.xlu0 %591 }
  0xaa   : > { %v1171_v54 = vpop.permute.xlu1 %676  ;;  %v1173_v55 = vpop.permute.xlu0 %671 }
  0xae   : > { %v1175_v12 = vpop.permute.xlu1 %686  ;;  %v1177_v13 = vpop.permute.xlu0 %681 }
  0xb2   : > { %v1182_v36 = vpop.permute.xlu0 %691  ;;  %v697_v40 = vpop.permute.xlu1 %696 }
  0xef   : > { %v480_v56 = vpop.f32.mrb[0].mxu0  ;;  %v510_v57 = vpop.f32.mrb[0].mxu1 }
  0xf0   : > { %v599_v58 = vsub.f32 %v480_v56, %v552_v45  ;;  %v609_v59 = vsub.f32 %v510_v57, %v577_v48  ;;  %v482_v60 = vpop.f32.mrb[1].mxu0  ;;  %v512_v61 = vpop.f32.mrb[1].mxu1 }
  0xf1   : > { %v600_v62 = vsub.f32 %v482_v60, %v552_v45  ;;  %v610_v63 = vsub.f32 %v512_v61, %v577_v48 }
  0xf2   : > { %v619_v0 = vmul.f32 1.442695, %v599_v58  ;;  %v639_v1 = vmul.f32 1.442695, %v609_v59 }
  0xf3   : > { %v621_v2 = vmul.f32 1.442695, %v600_v62  ;;  %v641_v3 = vmul.f32 1.442695, %v610_v63  ;;  %v486_v4 = vpop.f32.mrb[2].mxu0  ;;  %v516_v5 = vpop.f32.mrb[2].mxu1 }
  0xf4   : > { %989 = vpow2.f32 %v619_v0  ;;  %v601_v6 = vsub.f32 %v486_v4, %v557_v47  ;;  %v611_v7 = vsub.f32 %v516_v5, %v582_v51  ;;  %v488_v8 = vpop.f32.mrb[3].mxu0  ;;  %v518_v9 = vpop.f32.mrb[3].mxu1 }
  0xf5   : > { %991 = vpow2.f32 %v639_v1  ;;  %v602_v10 = vsub.f32 %v488_v8, %v557_v47  ;;  %v612_v11 = vsub.f32 %v518_v9, %v582_v51  ;;  %v702_v4 = vpop.permute.xlu0 %701 }
  0xf6   : > { %993 = vpow2.f32 %v621_v2  ;;  %v623_v14 = vmul.f32 1.442695, %v601_v6  ;;  %v643_v15 = vmul.f32 1.442695, %v611_v7 }
  0xf7   : > { %995 = vpow2.f32 %v641_v3  ;;  %v625_v16 = vmul.f32 1.442695, %v602_v10  ;;  %v645_v17 = vmul.f32 1.442695, %v612_v11  ;;  %v492_v18 = vpop.f32.mrb[4].mxu0  ;;  %v522_v19 = vpop.f32.mrb[4].mxu1 }
  0xf8   : > { %997 = vpow2.f32 %v623_v14  ;;  %v603_v20 = vsub.f32 %v492_v18, %v562_v44  ;;  %v613_v21 = vsub.f32 %v522_v19, %v587_v50  ;;  %v494_v22 = vpop.f32.mrb[5].mxu0  ;;  %v524_v23 = vpop.f32.mrb[5].mxu1 }
  0xf9   : > { %999 = vpow2.f32 %v643_v15  ;;  %v604_v24 = vsub.f32 %v494_v22, %v562_v44  ;;  %v614_v25 = vsub.f32 %v524_v23, %v587_v50  ;;  %v707_v14 = vpop.permute.xlu1 %706  ;;  %v712_v22 = vpop.permute.xlu0 %711 }
  0xfa   : > { %1001 = vpow2.f32 %v625_v16  ;;  %v627_v26 = vmul.f32 1.442695, %v603_v20  ;;  %v647_v27 = vmul.f32 1.442695, %v613_v21 }
  0xfb   : > { %1003 = vpow2.f32 %v645_v17  ;;  %v629_v28 = vmul.f32 1.442695, %v604_v24  ;;  %v649_v29 = vmul.f32 1.442695, %v614_v25  ;;  %v498_v30 = vpop.f32.mrb[6].mxu0  ;;  %v528_v31 = vpop.f32.mrb[6].mxu1 }
  0xfc   : > { %1005 = vpow2.f32 %v627_v26  ;;  %v605_v32 = vsub.f32 %v498_v30, %v1163_v46  ;;  %v615_v33 = vsub.f32 %v528_v31, %v1169_v53  ;;  %v500_v34 = vpop.f32.mrb[7].mxu0  ;;  %v530_v35 = vpop.f32.mrb[7].mxu1 }
  0xfd   : > { %1007 = vpow2.f32 %v647_v27  ;;  %v606_v37 = vsub.f32 %v500_v34, %v1163_v46  ;;  %v616_v38 = vsub.f32 %v530_v35, %v1169_v53  ;;  %v717_v30 = vpop.permute.xlu1 %716 }
  0xfe   : > { %v990_v39 = vpop.eup %989  ;;  %1009 = vpow2.f32 %v629_v28  ;;  %v631_v41 = vmul.f32 1.442695, %v605_v32  ;;  %v651_v42 = vmul.f32 1.442695, %v615_v33 }
  0xff   : > { %v992_v43 = vpop.eup %991  ;;  %v719_v44 = vmul.f32 %v990_v39, %v1173_v55  ;;  %1011 = vpow2.f32 %v649_v29  ;;  %v633_v45 = vmul.f32 1.442695, %v606_v37  ;;  %v653_v46 = vmul.f32 1.442695, %v616_v38  ;;  %v504_v47 = vpop.f32.mrb[8].mxu0 }
 0x100   : > { %v534_v48 = vpop.f32.mrb[8].mxu1  ;;  %v994_v50 = vpop.eup %993  ;;  %v729_v51 = vmul.f32 %v992_v43, %v697_v40  ;;  %1013 = vpow2.f32 %v631_v41  ;;  %v607_v53 = vsub.f32 %v504_v47, %v1165_v49 }
 0x101   : > { %v617_v56 = vsub.f32 %v534_v48, %v1167_v52  ;;  %v506_v57 = vpop.f32.mrb[9].mxu0  ;;  %v536_v58 = vpop.f32.mrb[9].mxu1  ;;  %739 = vst [vmem:[%s1189_s10] sm:$0xff] %v719_v44  ;;  %v720_v60 = vmul.f32 %v994_v50, %v1173_v55  ;;  %1015 = vpow2.f32 %v651_v42 }
 0x102   : > { %v996_v59 = vpop.eup %995  ;;  %v608_v61 = vsub.f32 %v506_v57, %v1165_v49  ;;  %v618_v62 = vsub.f32 %v536_v58, %v1167_v52  ;;  %750 = vst [vmem:[%s1189_s10 + $0x50] sm:$0xff] %v729_v51  ;;  %1017 = vpow2.f32 %v633_v45  ;;  %v635_v1 = vmul.f32 1.442695, %v607_v53 }
 0x103   : > { %v998_v63 = vpop.eup %997  ;;  %v730_v0 = vmul.f32 %v996_v59, %v697_v40  ;;  %v655_v2 = vmul.f32 1.442695, %v617_v56  ;;  %741 = vst.msk [vmem:[%s1189_s10 + $0x8] sm:$0xff] %vm740_vm1, %v720_v60  ;;  %1019 = vpow2.f32 %v653_v46 }
 0x104   : > { %v1000_v3 = vpop.eup %999  ;;  %v721_v55 = vmul.f32 %v998_v63, %v1171_v54  ;;  %v637_v5 = vmul.f32 1.442695, %v608_v61  ;;  %v657_v49 = vmul.f32 1.442695, %v618_v62  ;;  %1021 = vpow2.f32 %v635_v1 }
 0x105   : > { %v1002_v6 = vpop.eup %1001  ;;  %751 = vst.msk [vmem:[%s1189_s10 + $0x58] sm:$0xff] %vm740_vm1, %v730_v0  ;;  %v731_v52 = vmul.f32 %v1000_v3, %v702_v4  ;;  %1023 = vpow2.f32 %v655_v2 }
 0x106   : > { %v1004_v7 = vpop.eup %1003  ;;  %742 = vst [vmem:[%s1189_s10 + $0x10] sm:$0xff] %v721_v55  ;;  %v722_v8 = vmul.f32 %v1002_v6, %v1171_v54  ;;  %1025 = vpow2.f32 %v637_v5 }
 0x107   : > { %v1006_v9 = vpop.eup %1005  ;;  %752 = vst [vmem:[%s1189_s10 + $0x60] sm:$0xff] %v731_v52  ;;  %v732_v10 = vmul.f32 %v1004_v7, %v702_v4  ;;  %1027 = vpow2.f32 %v657_v49 }
 0x108   : > { %v1008_v11 = vpop.eup %1007  ;;  %743 = vst.msk [vmem:[%s1189_s10 + $0x18] sm:$0xff] %vm740_vm1, %v722_v8  ;;  %v723_v15 = vmul.f32 %v1006_v9, %v1177_v13 }
 0x109   : > { %v1010_v16 = vpop.eup %1009  ;;  %753 = vst.msk [vmem:[%s1189_s10 + $0x68] sm:$0xff] %vm740_vm1, %v732_v10  ;;  %v733_v54 = vmul.f32 %v1008_v11, %v707_v14 }
 0x10a   : > { %v1012_v17 = vpop.eup %1011  ;;  %744 = vst [vmem:[%s1189_s10 + $0x20] sm:$0xff] %v723_v15  ;;  %v724_v18 = vmul.f32 %v1010_v16, %v1177_v13 }
 0x10b   : > { %v1014_v19 = vpop.eup %1013  ;;  %754 = vst [vmem:[%s1189_s10 + $0x70] sm:$0xff] %v733_v54  ;;  %v734_v20 = vmul.f32 %v1012_v17, %v707_v14 }
 0x10c   : > { %v1016_v21 = vpop.eup %1015  ;;  %745 = vst.msk [vmem:[%s1189_s10 + $0x28] sm:$0xff] %vm740_vm1, %v724_v18  ;;  %v725_v23 = vmul.f32 %v1014_v19, %v1175_v12 }
 0x10d   : > { %v1018_v24 = vpop.eup %1017  ;;  %755 = vst.msk [vmem:[%s1189_s10 + $0x78] sm:$0xff] %vm740_vm1, %v734_v20  ;;  %v735_v25 = vmul.f32 %v1016_v21, %v712_v22 }
 0x10e   : > { %v1020_v26 = vpop.eup %1019  ;;  %746 = vst [vmem:[%s1189_s10 + $0x30] sm:$0xff] %v725_v23  ;;  %v726_v13 = vmul.f32 %v1018_v24, %v1175_v12 }
 0x10f   : > { %v1022_v27 = vpop.eup %1021  ;;  %756 = vst [vmem:[%s1189_s10 + $0x80] sm:$0xff] %v735_v25  ;;  %v736_v28 = vmul.f32 %v1020_v26, %v712_v22 }
 0x110   : > { %v1024_v29 = vpop.eup %1023  ;;  %747 = vst.msk [vmem:[%s1189_s10 + $0x38] sm:$0xff] %vm740_vm1, %v726_v13  ;;  %v727_v31 = vmul.f32 %v1022_v27, %v1182_v36 }
 0x111   : > { %v1026_v32 = vpop.eup %1025  ;;  %757 = vst.msk [vmem:[%s1189_s10 + $0x88] sm:$0xff] %vm740_vm1, %v736_v28  ;;  %v737_v33 = vmul.f32 %v1024_v29, %v717_v30 }
 0x112   : > { %v1028_v34 = vpop.eup %1027  ;;  %748 = vst [vmem:[%s1189_s10 + $0x40] sm:$0xff] %v727_v31  ;;  %v728_v35 = vmul.f32 %v1026_v32, %v1182_v36 }
 0x113   : > { %758 = vst [vmem:[%s1189_s10 + $0x90] sm:$0xff] %v737_v33  ;;  %v738_v12 = vmul.f32 %v1028_v34, %v717_v30 }
 0x114   : > { %749 = vst.msk [vmem:[%s1189_s10 + $0x48] sm:$0xff] %vm740_vm1, %v728_v35 }
 0x115   : > { %759 = vst.msk [vmem:[%s1189_s10 + $0x98] sm:$0xff] %vm740_vm1, %v738_v12 }
 0x116 PF: > { %s14_s17 = sadd.s32 1, %s1051_s17   ;;  %s1249_s15 = smov %s1047_s16 }
 0x117   : > { %p11_p5 = scmp.ge.s32.totalorder %s14_s17, 4   ;;  %s1250_s16 = smov %s1252_s18 }
 0x119   :  { %13 = sbr.rel (!%p11_p5) target bundleno = 2 (0x2), region = 75 }

// kernel: _forward_impl.8
= control target key start
LH: loop header
LB: loop body
LE: loop exit
PB: predicated region body
PF: predicated region fallthrough
CT: control target
= control target key end

     0   :  { %s1551_s15 = smov 0   ;;  %s1553_s16 = smov 0   ;;  %s1944_s0 = inlined_call_operand.vmem [shape: f32[2,4,20,32], index: 0, kind: input, shape index: {}]   ;;  %s1945_s1 = inlined_call_operand.vmem [shape: f32[2,4,20,1], index: 1, kind: input, shape index: {}]   ;;  %s1946_s2 = inlined_call_operand.vmem [shape: f32[2,32,143], index: 2, kind: input, shape index: {}]   ;;  %s1947_s3 = inlined_call_operand.vmem [shape: f32[2,20,1], index: 3, kind: output, shape index: {0}]   ;;  %s1948_s4 = inlined_call_operand.vmem [shape: f32[2,20,1], index: 4, kind: output, shape index: {1}]  }
   0x1   :  { %s1555_s17 = smov 0  }
   0x2 LB: > { %s34_s18 = sadd.s32 1, %s1517_s16  ;;  %p1324_p0 = scmp.ge.s32.totalorder %s1521_s17, 1  ;;  %s1521_s17 = sphi %s1555_s17, %s15_s17   ;;  %s1517_s16 = sphi %s1553_s16, %s1950_s16   ;;  %s1513_s15 = sphi %s1551_s15, %s1949_s15  }
   0x3   : > { %p36_p1 = scmp.ge.s32.totalorder %s34_s18, 2  ;;  %p229_p2 = scmp.lt.s32.totalorder %s1521_s17, 3 }
   0x5   : > { %s1952_s18 = smov (%p36_p1, %s34_s18), 0  ;;  %p230_p3 = pnand %p1324_p0, %p229_p2 }
   0x6   : > { %p291_p4 = scmp.lt.s32.totalorder (!%p230_p3), %s1513_s15, 1  ;;  %v1523_v0 = vmov (!%p230_p3), 0.0   ;;  %v1524_v1 = vmov (!%p230_p3), 0   ;;  %vm387_vm0 = vcmask (!%p230_p3), 261120   ;;  %vm344_vm1 = vcmask (!%p230_p3), 7168  }
   0x7   : > { %233 = sbr.rel (%p230_p3) target bundleno = 863 (0x35f), region = 32  ;;  %461 = vmatprep.mubr.f32.mxu0 (!%p230_p3), %v1523_v0  ;;  %656 = vmatprep.mubr.f32.mxu1 (!%p230_p3), %v1523_v0  ;;  %v1525_v38 = vmov (!%p230_p3), -inf   ;;  %vm480_vm2 = vcmask (!%p230_p3), 121856   ;;  %vm489_vm3 = vcmask (!%p230_p3), 1043456   ;;  %vm491_vm4 = vcmask (!%p230_p3), 117760  }
   0x8   : > { %1425 = vset.pattern.permute.xlu0 (!%p230_p3), %v1524_v1  ;;  %1426 = vset.pattern.permute.xlu1 (!%p230_p3), %v1524_v1  ;;  %vm347_vm5 = vcmask (!%p230_p3), 3072  }
   0xe   : > { %s1954_s15 = smov (!%p291_p4, %s1513_s15), 1 }
   0xf   : > { %s1363_s19 = sshll.u32 %s1954_s15, 6  ;;  %s1396_s23 = smul.u32 96, %s1954_s15 }
  0x10   : > { %s318_s22 = scalar_lea.vmem %s1946_s2, %s1363_s19  ;;  %s1397_s30 = smul.u32 24, %s1954_s15 }
  0x11   : > { %v353_v2 = vld [vmem:[%s318_s22 + $0x8] sm:$0xff]  ;;  %v355_v3 = vld [vmem:[%s318_s22 + $0x18] sm:$0xff]  ;;  %v352_v4 = vld [vmem:[%s318_s22] sm:$0xff]  ;;  %s1581_s26 = scalar_lea.vmem %s1945_s1, %s1396_s23  ;;  %s1586_s29 = scalar_lea.vmem %s1944_s0, %s1396_s23 }
  0x12   : > { %v1364_v5 = vpack.c.bf16 %v355_v3, %v353_v2  ;;  %v354_v6 = vld [vmem:[%s318_s22 + $0x10] sm:$0xff]  ;;  %v357_v7 = vld [vmem:[%s318_s22 + $0x28] sm:$0xff]  ;;  %v359_v8 = vld [vmem:[%s318_s22 + $0x38] sm:$0xff]  ;;  %s1640_s7 = scalar_lea.vmem %s1947_s3, %s1397_s30  ;;  %s1748_s10 = scalar_lea.vmem %s1948_s4, %s1397_s30 }
  0x13   : > { %v1366_v9 = vpack.c.bf16 %v354_v6, %v352_v4  ;;  %v1368_v10 = vpack.c.bf16 %v359_v8, %v357_v7  ;;  %v356_v11 = vld [vmem:[%s318_s22 + $0x20] sm:$0xff]  ;;  %v358_v12 = vld [vmem:[%s318_s22 + $0x30] sm:$0xff]  ;;  %v1334_v16 = vld [vmem:[%s1586_s29 + $0x18] sm:$0xff]  ;;  %345 = vst.msk [vmem:[%s1640_s7] sm:$0xff] %vm344_vm1, %v1525_v38 }
  0x14   : > { %1365 = vmatprep.subr.bf16.mxu0 %v1364_v5  ;;  %1373 = vmatprep.subr.bf16.mxu1 %v1364_v5  ;;  %v1370_v13 = vpack.c.bf16 %v358_v12, %v356_v11  ;;  %v369_v14 = vld [vmem:[%s1581_s26] sm:$0xff]  ;;  %v367_v17 = vld [vmem:[%s1586_s29 + $0x8] sm:$0xff]  ;;  %v371_v20 = vld [vmem:[%s1581_s26 + $0x10] sm:$0xf]  ;;  %346 = vst.msk [vmem:[%s1640_s7 + $0x8] sm:$0xff] %vm344_vm1, %v1525_v38 }
  0x15   : > { %1367 = vmatpush1.bf16.msra.mxu0 %v1366_v9  ;;  %1375 = vmatpush1.bf16.msra.mxu1 %v1366_v9  ;;  %v366_v15 = vld [vmem:[%s1586_s29] sm:$0xff]  ;;  %v370_v19 = vld [vmem:[%s1581_s26 + $0x8] sm:$0xff]  ;;  %v368_v21 = vld [vmem:[%s1586_s29 + $0x10] sm:$0xf]  ;;  %348 = vst.msk [vmem:[%s1640_s7 + $0x10] sm:$0xf] %vm347_vm5, %v1525_v38 }
  0x16   : > { %1369 = vmatprep.subr.bf16.mxu0 %v1368_v10  ;;  %1377 = vmatprep.subr.bf16.mxu1 %v1368_v10  ;;  %v1335_v18 = vld [vmem:[%s1586_s29 + $0x20] sm:$0xff]  ;;  %v1336_v22 = vld [vmem:[%s1586_s29 + $0x28] sm:$0xf]  ;;  %v1337_v23 = vld [vmem:[%s1581_s26 + $0x18] sm:$0xff]  ;;  %349 = vst.msk [vmem:[%s1748_s10] sm:$0xff] %vm344_vm1, %v1523_v0 }
  0x17   : > { %374 = vperm.xlu0 %1425, %v369_v14   ;;  %384 = vperm.xlu1 %1426, %v371_v20   ;;  %v1343_v24 = vld [vmem:[%s1586_s29 + $0x30] sm:$0xff]  ;;  %v1352_v25 = vld [vmem:[%s1586_s29 + $0x48] sm:$0xff]  ;;  %v1338_v26 = vld [vmem:[%s1581_s26 + $0x20] sm:$0xff]  ;;  %350 = vst.msk [vmem:[%s1748_s10 + $0x8] sm:$0xff] %vm344_vm1, %v1523_v0 }
  0x18   : > { %v1344_v27 = vld [vmem:[%s1586_s29 + $0x38] sm:$0xff]  ;;  %v1353_v28 = vld [vmem:[%s1586_s29 + $0x50] sm:$0xff]  ;;  %v1339_v29 = vld [vmem:[%s1581_s26 + $0x28] sm:$0xf]  ;;  %351 = vst.msk [vmem:[%s1748_s10 + $0x10] sm:$0xf] %vm347_vm5, %v1523_v0 }
  0x19   : > { %1371 = vmatpush1.bf16.msra.mxu0 %v1370_v13  ;;  %1379 = vmatpush1.bf16.msra.mxu1 %v1370_v13  ;;  %v1345_v30 = vld [vmem:[%s1586_s29 + $0x40] sm:$0xf]  ;;  %v1354_v31 = vld [vmem:[%s1586_s29 + $0x58] sm:$0xf]  ;;  %v1346_v32 = vld [vmem:[%s1581_s26 + $0x30] sm:$0xff] }
  0x1a   : > { %1381 = vmatprep.subr.bf16.mxu0 %v1364_v5  ;;  %1389 = vmatprep.subr.bf16.mxu1 %v1364_v5  ;;  %v1347_v33 = vld [vmem:[%s1581_s26 + $0x38] sm:$0xff]  ;;  %v1348_v34 = vld [vmem:[%s1581_s26 + $0x40] sm:$0xf]  ;;  %v1355_v35 = vld [vmem:[%s1581_s26 + $0x48] sm:$0xff] }
  0x1b   : > { %379 = vperm.xlu0 %1425, %v370_v19   ;;  %v1356_v36 = vld [vmem:[%s1581_s26 + $0x50] sm:$0xff]  ;;  %v1357_v37 = vld [vmem:[%s1581_s26 + $0x58] sm:$0xf] }
  0x1c   : > { %1331 = vmatmul.mubr.msk.f32.vlgmr.msra.gmra.mrb[0].mxu0 %vm387_vm0, %v366_v15  ;;  %1340 = vmatmul.mubr.msk.f32.vlgmr.msra.gmra.mrb[0].mxu1 %vm387_vm0, %v1334_v16 }
  0x1d   : > { %467 = vmatprep.mubr.f32.mxu0 %v1523_v0  ;;  %662 = vmatprep.mubr.f32.mxu1 %v1523_v0 }
  0x1e   : > { %1383 = vmatpush1.bf16.msra.mxu0 %v1366_v9  ;;  %1391 = vmatpush1.bf16.msra.mxu1 %v1366_v9 }
  0x1f   : > { %1385 = vmatprep.subr.bf16.mxu0 %v1368_v10  ;;  %1393 = vmatprep.subr.bf16.mxu1 %v1368_v10 }
  0x20   : > { %1332 = vmatmul.mubr.msk.f32.gmra.mrb[2].mxu0 %vm387_vm0, %v367_v17  ;;  %1341 = vmatmul.mubr.msk.f32.gmra.mrb[2].mxu1 %vm387_vm0, %v1335_v18 }
  0x21   : > { %473 = vmatprep.mubr.f32.mxu0 %v1523_v0  ;;  %668 = vmatprep.mubr.f32.mxu1 %v1523_v0 }
  0x22   : > { %1387 = vmatpush1.bf16.msra.mxu0 %v1370_v13  ;;  %1395 = vmatpush1.bf16.msra.mxu1 %v1370_v13 }
  0x23   : > { %570 = vperm.xlu0 %1425, %v1337_v23  }
  0x24   : > { %1333 = vmatmul.mubr.msk.f32.gmra.mrb[4].mxu0 %vm387_vm0, %v368_v21  ;;  %1342 = vmatmul.mubr.msk.f32.gmra.mrb[4].mxu1 %vm387_vm0, %v1336_v22 }
  0x25   : > { %848 = vmatprep.mubr.f32.mxu0 %v1523_v0  ;;  %1040 = vmatprep.mubr.f32.mxu1 %v1523_v0 }
  0x27   : > { %575 = vperm.xlu0 %1425, %v1338_v26  }
  0x28   : > { %1349 = vmatmul.mubr.msk.f32.vlgmr.msra.gmra.mrb[6].mxu0 %vm387_vm0, %v1343_v24  ;;  %1358 = vmatmul.mubr.msk.f32.vlgmr.msra.gmra.mrb[6].mxu1 %vm387_vm0, %v1352_v25 }
  0x29   : > { %854 = vmatprep.mubr.f32.mxu0 %v1523_v0  ;;  %1046 = vmatprep.mubr.f32.mxu1 %v1523_v0 }
  0x2b   : > { %580 = vperm.xlu0 %1425, %v1339_v29  }
  0x2c   : > { %1350 = vmatmul.mubr.msk.f32.gmra.mrb[8].mxu0 %vm387_vm0, %v1344_v27  ;;  %1359 = vmatmul.mubr.msk.f32.gmra.mrb[8].mxu1 %vm387_vm0, %v1353_v28 }
  0x2d   : > { %860 = vmatprep.mubr.f32.mxu0 %v1523_v0  ;;  %1052 = vmatprep.mubr.f32.mxu1 %v1523_v0 }
  0x2f   : > { %762 = vperm.xlu0 %1425, %v1346_v32  }
  0x30   : > { %1351 = vmatmul.mubr.msk.f32.gmra.mrb[10].mxu0 %vm387_vm0, %v1345_v30  ;;  %1360 = vmatmul.mubr.msk.f32.gmra.mrb[10].mxu1 %vm387_vm0, %v1354_v31 }
  0x33   : > { %767 = vperm.xlu0 %1425, %v1347_v33  }
  0x37   : > { %772 = vperm.xlu0 %1425, %v1348_v34  }
  0x3b   : > { %954 = vperm.xlu0 %1425, %v1355_v35  }
  0x3f   : > { %959 = vperm.xlu0 %1425, %v1356_v36  }
  0x43   : > { %964 = vperm.xlu0 %1425, %v1357_v37  }
  0x96   : > { %v375_v39 = vpop.permute.xlu0 %374  ;;  %v385_v61 = vpop.permute.xlu1 %384 }
  0x9a   : > { %v380_v40 = vpop.permute.xlu0 %379 }
  0xa2   : > { %v571_v41 = vpop.permute.xlu0 %570 }
  0xa6   : > { %v576_v42 = vpop.permute.xlu0 %575 }
  0xaa   : > { %v581_v43 = vpop.permute.xlu0 %580 }
  0xae   : > { %v763_v44 = vpop.permute.xlu0 %762 }
  0xb2   : > { %v1648_v45 = vpop.permute.xlu0 %767 }
  0xb6   : > { %v1652_v51 = vpop.permute.xlu0 %772 }
  0xba   : > { %v955_v14 = vpop.permute.xlu0 %954 }
  0xef   : > { %v463_v46 = vpop.f32.mrb[0].mxu0  ;;  %v658_v47 = vpop.f32.mrb[0].mxu1 }
  0xf0   : > { %v465_v48 = vpop.f32.mrb[1].mxu0  ;;  %v660_v49 = vpop.f32.mrb[1].mxu1  ;;  %v1654_v52 = vadd.f32 %v463_v46, %v375_v39  ;;  %v1691_v21 = vadd.f32 %v658_v47, %v571_v41 }
  0xf1   : > { %v1650_v50 = vadd.f32 %v465_v48, %v375_v39  ;;  %v1677_v11 = vadd.f32 %v660_v49, %v571_v41 }
  0xf3   : > { %v469_v53 = vpop.f32.mrb[2].mxu0  ;;  %v664_v54 = vpop.f32.mrb[2].mxu1  ;;  %v481_v55 = vsel %vm480_vm2, %v1650_v50, -inf  ;;  %v675_v28 = vsel %vm480_vm2, %v1677_v11, -inf }
  0xf4   : > { %v471_v56 = vpop.f32.mrb[3].mxu0  ;;  %v666_v57 = vpop.f32.mrb[3].mxu1  ;;  %v482_v58 = vmax.f32 %v1654_v52, %v481_v55  ;;  %v1663_v62 = vadd.f32 %v469_v53, %v380_v40  ;;  %v1665_v63 = vadd.f32 %v664_v54, %v576_v42  ;;  %v676_v35 = vmax.f32 %v1691_v21, %v675_v28 }
  0xf5   : > { %v1659_v59 = vadd.f32 %v471_v56, %v380_v40  ;;  %v1661_v60 = vadd.f32 %v666_v57, %v576_v42  ;;  %v960_v40 = vpop.permute.xlu0 %959 }
  0xf6   : > { %483 = vmax.xlane.f32.xlu1 %v482_v58 }
  0xf7   : > { %v475_v1 = vpop.f32.mrb[4].mxu0  ;;  %v670_v2 = vpop.f32.mrb[4].mxu1  ;;  %v485_v3 = vsel %vm480_vm2, %v1659_v59, -inf  ;;  %v679_v4 = vsel %vm480_vm2, %v1661_v60, -inf }
  0xf8   : > { %v1671_v5 = vadd.f32 %v475_v1, %v385_v61  ;;  %v1673_v6 = vadd.f32 %v670_v2, %v581_v43  ;;  %v477_v7 = vpop.f32.mrb[5].mxu0  ;;  %v672_v8 = vpop.f32.mrb[5].mxu1  ;;  %v486_v9 = vmax.f32 %v1663_v62, %v485_v3  ;;  %v680_v10 = vmax.f32 %v1665_v63, %v679_v4 }
  0xf9   : > { %v1679_v12 = vadd.f32 %v477_v7, %v385_v61  ;;  %v1681_v13 = vadd.f32 %v672_v8, %v581_v43  ;;  %v965_v58 = vpop.permute.xlu0 %964 }
  0xfa   : > { %487 = vmax.xlane.f32.xlu0 %v486_v9  ;;  %681 = vmax.xlane.f32.xlu1 %v680_v10  ;;  %v490_v15 = vsel %vm489_vm3, %v1671_v5, -inf  ;;  %v683_v16 = vsel %vm489_vm3, %v1673_v6, -inf  ;;  %v1764_v9 = vld [vmem:[%s1640_s7] sm:$0xff] }
  0xfb   : > { %v850_v17 = vpop.f32.mrb[6].mxu0  ;;  %v1042_v18 = vpop.f32.mrb[6].mxu1  ;;  %v492_v19 = vsel %vm491_vm4, %v1679_v12, -inf  ;;  %v684_v20 = vsel %vm491_vm4, %v1681_v13, -inf }
  0xfc   : > { %v852_v22 = vpop.f32.mrb[7].mxu0  ;;  %v1044_v23 = vpop.f32.mrb[7].mxu1  ;;  %v493_v24 = vmax.f32 %v490_v15, %v492_v19  ;;  %v685_v25 = vmax.f32 %v683_v16, %v684_v20  ;;  %v1699_v29 = vadd.f32 %v850_v17, %v763_v44  ;;  %v1710_v41 = vadd.f32 %v1042_v18, %v955_v14  ;;  %v1770_v15 = vld [vmem:[%s1640_s7 + $0x8] sm:$0xff]  ;;  %v1779_v19 = vld [vmem:[%s1640_s7 + $0x10] sm:$0xf] }
  0xfd   : > { %v1693_v26 = vadd.f32 %v852_v22, %v763_v44  ;;  %v1695_v27 = vadd.f32 %v1044_v23, %v955_v14 }
  0xfe   : > { %494 = vmax.xlane.f32.xlu0 %v493_v24  ;;  %686 = vmax.xlane.f32.xlu1 %v685_v25 }
  0xff   : > { %v856_v30 = vpop.f32.mrb[8].mxu0  ;;  %v1048_v31 = vpop.f32.mrb[8].mxu1  ;;  %v867_v32 = vsel %vm480_vm2, %v1693_v26, -inf  ;;  %v1059_v39 = vsel %vm480_vm2, %v1695_v27, -inf }
 0x100   : > { %v858_v33 = vpop.f32.mrb[9].mxu0  ;;  %v1050_v34 = vpop.f32.mrb[9].mxu1  ;;  %v868_v36 = vmax.f32 %v1699_v29, %v867_v32  ;;  %v1060_v47 = vmax.f32 %v1710_v41, %v1059_v39  ;;  %v1721_v53 = vadd.f32 %v856_v30, %v1648_v45  ;;  %v1732_v57 = vadd.f32 %v1048_v31, %v960_v40 }
 0x101   : > { %v1706_v37 = vadd.f32 %v858_v33, %v1648_v45  ;;  %v1716_v48 = vadd.f32 %v1050_v34, %v960_v40 }
 0x102   : > { %677 = vmax.xlane.f32.xlu0 %v676_v35  ;;  %869 = vmax.xlane.f32.xlu1 %v868_v36 }
 0x103   : > { %v862_v42 = vpop.f32.mrb[10].mxu0  ;;  %v1054_v43 = vpop.f32.mrb[10].mxu1  ;;  %v871_v49 = vsel %vm480_vm2, %v1706_v37, -inf  ;;  %v1063_v38 = vsel %vm480_vm2, %v1716_v48, -inf }
 0x104   : > { %v864_v44 = vpop.f32.mrb[11].mxu0  ;;  %v1056_v46 = vpop.f32.mrb[11].mxu1  ;;  %v872_v54 = vmax.f32 %v1721_v53, %v871_v49  ;;  %v1725_v55 = vadd.f32 %v862_v42, %v1652_v51  ;;  %v1064_v61 = vmax.f32 %v1732_v57, %v1063_v38  ;;  %v1735_v45 = vadd.f32 %v1054_v43, %v965_v58 }
 0x105   : > { %v1728_v56 = vadd.f32 %v864_v44, %v1652_v51  ;;  %v1737_v1 = vadd.f32 %v1056_v46, %v965_v58 }
 0x106   : > { %1061 = vmax.xlane.f32.xlu1 %v1060_v47  ;;  %v875_v2 = vsel %vm489_vm3, %v1725_v55, -inf  ;;  %v1067_v4 = vsel %vm489_vm3, %v1735_v45, -inf }
 0x107   : > { %v876_v51 = vsel %vm491_vm4, %v1728_v56, -inf  ;;  %v1068_v7 = vsel %vm491_vm4, %v1737_v1, -inf }
 0x108   : > { %v877_v3 = vmax.f32 %v875_v2, %v876_v51  ;;  %v1069_v8 = vmax.f32 %v1067_v4, %v1068_v7 }
 0x10a   : > { %873 = vmax.xlane.f32.xlu1 %v872_v54 }
 0x10e   : > { %1065 = vmax.xlane.f32.xlu1 %v1064_v61 }
 0x112   : > { %878 = vmax.xlane.f32.xlu1 %v877_v3 }
 0x116   : > { %1070 = vmax.xlane.f32.xlu1 %v1069_v8 }
 0x183   : > { %v484_v10 = vpop.xlane.xlu1 %483 }
 0x184   : > { %v1767_v14 = vmax.f32 %v1764_v9, %v484_v10 }
 0x186   : > { %v499_v0 = vsub.f32 %v1764_v9, %v1767_v14  ;;  %513 = vperm.xlu1 %1426, %v1767_v14  }
 0x187   : > { %v488_v16 = vpop.xlane.xlu0 %487  ;;  %v682_v17 = vpop.xlane.xlu1 %681 }
 0x188   : > { %v1776_v18 = vmax.f32 %v1770_v15, %v488_v16 }
 0x18a   : > { %v500_v20 = vsub.f32 %v1770_v15, %v1776_v18  ;;  %v1784_v22 = vmax.f32 %v1776_v18, %v682_v17  ;;  %518 = vperm.xlu0 %1425, %v1776_v18  }
 0x18b   : > { %v495_v23 = vpop.xlane.xlu0 %494  ;;  %v687_v24 = vpop.xlane.xlu1 %686 }
 0x18c   : > { %v692_v25 = vsub.f32 %v1776_v18, %v1784_v22  ;;  %v1790_v28 = vmax.f32 %v1779_v19, %v495_v23 }
 0x18e   : > { %v501_v30 = vsub.f32 %v1779_v19, %v1790_v28  ;;  %v1795_v31 = vmax.f32 %v1790_v28, %v687_v24  ;;  %710 = vperm.xlu0 %1425, %v1784_v22   ;;  %v696_v15 = vmul.f32 1.442695, %v692_v25 }
 0x18f   : > { %v678_v32 = vpop.xlane.xlu0 %677  ;;  %v870_v33 = vpop.xlane.xlu1 %869 }
 0x190   : > { %v693_v34 = vsub.f32 %v1790_v28, %v1795_v31  ;;  %v1801_v35 = vmax.f32 %v1767_v14, %v678_v32 }
 0x192   : > { %v691_v36 = vsub.f32 %v1767_v14, %v1801_v35  ;;  %v1806_v39 = vmax.f32 %v1801_v35, %v870_v33  ;;  %705 = vperm.xlu1 %1426, %v1801_v35   ;;  %v698_v19 = vmul.f32 1.442695, %v693_v34 }
 0x193   : > { %v1062_v40 = vpop.xlane.xlu1 %1061 }
 0x194   : > { %v883_v42 = vsub.f32 %v1801_v35, %v1806_v39  ;;  %v1812_v43 = vmax.f32 %v1806_v39, %v1062_v40 }
 0x196   : > { %v1075_v44 = vsub.f32 %v1806_v39, %v1812_v43  ;;  %1137 = vst.msk [vmem:[%s1640_s7] sm:$0xff] %vm344_vm1, %v1812_v43  ;;  %523 = vperm.xlu1 %1426, %v1790_v28   ;;  %v886_v9 = vmul.f32 1.442695, %v883_v42 }
 0x197   : > { %v874_v46 = vpop.xlane.xlu1 %873 }
 0x198   : > { %v1821_v47 = vmax.f32 %v1784_v22, %v874_v46 }
 0x19a   : > { %v884_v49 = vsub.f32 %v1784_v22, %v1821_v47  ;;  %715 = vperm.xlu1 %1426, %v1795_v31   ;;  %902 = vperm.xlu0 %1425, %v1821_v47  }
 0x19b   : > { %v1066_v54 = vpop.xlane.xlu1 %1065 }
 0x19c   : > { %v1828_v38 = vmax.f32 %v1821_v47, %v1066_v54 }
 0x19e   : > { %v1076_v58 = vsub.f32 %v1821_v47, %v1828_v38  ;;  %1138 = vst.msk [vmem:[%s1640_s7 + $0x8] sm:$0xff] %vm344_vm1, %v1828_v38  ;;  %897 = vperm.xlu1 %1426, %v1806_v39   ;;  %1094 = vperm.xlu0 %1425, %v1828_v38  }
 0x19f   : > { %v879_v61 = vpop.xlane.xlu1 %878 }
 0x1a0   : > { %v1838_v2 = vmax.f32 %v1795_v31, %v879_v61 }
 0x1a2   : > { %v885_v51 = vsub.f32 %v1795_v31, %v1838_v2  ;;  %1089 = vperm.xlu1 %1426, %v1812_v43  }
 0x1a3   : > { %v1071_v3 = vpop.xlane.xlu1 %1070 }
 0x1a4   : > { %v1844_v4 = vmax.f32 %v1838_v2, %v1071_v3  ;;  %v890_v35 = vmul.f32 1.442695, %v885_v51 }
 0x1a6   : > { %1140 = vst.msk [vmem:[%s1640_s7 + $0x10] sm:$0xf] %vm347_vm5, %v1844_v4  ;;  %907 = vperm.xlu1 %1426, %v1838_v2   ;;  %v1077_v31 = vsub.f32 %v1838_v2, %v1844_v4 }
 0x205   : > { %v514_v7 = vpop.permute.xlu1 %513 }
 0x206   : > { %v526_v8 = vsub.f32 %v1654_v52, %v514_v7  ;;  %v527_v10 = vsub.f32 %v1650_v50, %v514_v7 }
 0x208   : > { %v532_v16 = vmul.f32 1.442695, %v526_v8  ;;  %v534_v17 = vmul.f32 1.442695, %v527_v10 }
 0x209   : > { %v519_v23 = vpop.permute.xlu0 %518 }
 0x20a   : > { %1427 = vpow2.f32 %v532_v16  ;;  %v529_v24 = vsub.f32 %v1659_v59, %v519_v23  ;;  %v528_v61 = vsub.f32 %v1663_v62, %v519_v23 }
 0x20b   : > { %1429 = vpow2.f32 %v534_v17 }
 0x20c   : > { %v538_v3 = vmul.f32 1.442695, %v529_v24  ;;  %v536_v17 = vmul.f32 1.442695, %v528_v61 }
 0x20d   : > { %v711_v32 = vpop.permute.xlu0 %710 }
 0x20e   : > { %v720_v33 = vsub.f32 %v1665_v63, %v711_v32  ;;  %v721_v40 = vsub.f32 %v1661_v60, %v711_v32 }
 0x210   : > { %v728_v46 = vmul.f32 1.442695, %v720_v33  ;;  %v730_v54 = vmul.f32 1.442695, %v721_v40 }
 0x211   : > { %v706_v52 = vpop.permute.xlu1 %705 }
 0x212   : > { %v718_v50 = vsub.f32 %v1691_v21, %v706_v52  ;;  %v719_v7 = vsub.f32 %v1677_v11, %v706_v52  ;;  %1431 = vpow2.f32 %v730_v54 }
 0x213   : > { %1433 = vpow2.f32 %v728_v46 }
 0x214   : > { %v1428_v8 = vpop.eup %1427  ;;  %v724_v10 = vmul.f32 1.442695, %v718_v50  ;;  %v726_v59 = vmul.f32 1.442695, %v719_v7  ;;  %1435 = vpow2.f32 %v538_v3 }
 0x215   : > { %v1430_v16 = vpop.eup %1429  ;;  %v524_v63 = vpop.permute.xlu1 %523 }
 0x216   : > { %1437 = vpow2.f32 %v724_v10  ;;  %v530_v60 = vsub.f32 %v1671_v5, %v524_v63  ;;  %v531_v62 = vsub.f32 %v1679_v12, %v524_v63  ;;  %v544_v23 = vsel %vm480_vm2, %v1430_v16, 0.0 }
 0x217   : > { %1439 = vpow2.f32 %v726_v59  ;;  %v545_v21 = vadd.f32 %v1428_v8, %v544_v23 }
 0x218   : > { %v540_v24 = vmul.f32 1.442695, %v530_v60  ;;  %v542_v11 = vmul.f32 1.442695, %v531_v62  ;;  %1441 = vpow2.f32 %v536_v17 }
 0x219   : > { %546 = vadd.xlane.f32.xlu1 %v545_v21  ;;  %v716_v32 = vpop.permute.xlu1 %715 }
 0x21a   : > { %1443 = vpow2.f32 %v540_v24  ;;  %v722_v33 = vsub.f32 %v1673_v6, %v716_v32  ;;  %v723_v40 = vsub.f32 %v1681_v13, %v716_v32 }
 0x21b   : > { %1445 = vpow2.f32 %v542_v11 }
 0x21c   : > { %v732_v46 = vmul.f32 1.442695, %v722_v33  ;;  %v1432_v54 = vpop.eup %1431  ;;  %v734_v5 = vmul.f32 1.442695, %v723_v40 }
 0x21d   : > { %v898_v61 = vpop.permute.xlu1 %897  ;;  %v1434_v12 = vpop.eup %1433  ;;  %v740_v7 = vsel %vm480_vm2, %v1432_v54, 0.0 }
 0x21e   : > { %v910_v3 = vsub.f32 %v1699_v29, %v898_v61  ;;  %v1436_v52 = vpop.eup %1435  ;;  %v911_v50 = vsub.f32 %v1693_v26, %v898_v61  ;;  %1447 = vpow2.f32 %v732_v46  ;;  %v741_v16 = vadd.f32 %v1434_v12, %v740_v7 }
 0x21f   : > { %1449 = vpow2.f32 %v734_v5  ;;  %v548_v24 = vsel %vm480_vm2, %v1436_v52, 0.0 }
 0x220   : > { %v1438_v8 = vpop.eup %1437  ;;  %v916_v10 = vmul.f32 1.442695, %v910_v3  ;;  %v918_v6 = vmul.f32 1.442695, %v911_v50  ;;  %742 = vadd.xlane.f32.xlu0 %v741_v16 }
 0x221   : > { %v1440_v59 = vpop.eup %1439  ;;  %v1090_v13 = vpop.permute.xlu1 %1089 }
 0x222   : > { %v1102_v17 = vsub.f32 %v1710_v41, %v1090_v13  ;;  %v1103_v63 = vsub.f32 %v1695_v27, %v1090_v13  ;;  %v736_v60 = vsel %vm480_vm2, %v1440_v59, 0.0  ;;  %v1442_v29 = vpop.eup %1441  ;;  %1451 = vpow2.f32 %v916_v10 }
 0x223   : > { %v737_v62 = vadd.f32 %v1438_v8, %v736_v60  ;;  %1453 = vpow2.f32 %v918_v6  ;;  %v549_v46 = vadd.f32 %v1442_v29, %v548_v24 }
 0x224   : > { %v1444_v26 = vpop.eup %1443  ;;  %v1108_v23 = vmul.f32 1.442695, %v1102_v17  ;;  %v1110_v21 = vmul.f32 1.442695, %v1103_v63 }
 0x225   : > { %v1446_v11 = vpop.eup %1445  ;;  %738 = vadd.xlane.f32.xlu1 %v737_v62  ;;  %v908_v32 = vpop.permute.xlu1 %907  ;;  %v552_v33 = vsel %vm489_vm3, %v1444_v26, 0.0 }
 0x226   : > { %1455 = vpow2.f32 %v1108_v23  ;;  %v914_v27 = vsub.f32 %v1725_v55, %v908_v32  ;;  %v915_v41 = vsub.f32 %v1728_v56, %v908_v32  ;;  %v553_v40 = vsel %vm491_vm4, %v1446_v11, 0.0  ;;  %v903_v26 = vpop.permute.xlu0 %902 }
 0x227   : > { %1457 = vpow2.f32 %v1110_v21  ;;  %v554_v54 = vadd.f32 %v553_v40, %v552_v33  ;;  %v913_v23 = vsub.f32 %v1706_v37, %v903_v26  ;;  %v912_v24 = vsub.f32 %v1721_v53, %v903_v26 }
 0x228   : > { %v924_v5 = vmul.f32 1.442695, %v914_v27  ;;  %v926_v61 = vmul.f32 1.442695, %v915_v41  ;;  %v1448_v12 = vpop.eup %1447 }
 0x229   : > { %550 = vadd.xlane.f32.xlu1 %v549_v46  ;;  %555 = vadd.xlane.f32.xlu0 %v554_v54  ;;  %v1450_v3 = vpop.eup %1449  ;;  %v744_v52 = vsel %vm489_vm3, %v1448_v12, 0.0  ;;  %v922_v11 = vmul.f32 1.442695, %v913_v23  ;;  %v920_v33 = vmul.f32 1.442695, %v912_v24 }
 0x22a   : > { %1459 = vpow2.f32 %v924_v5  ;;  %v745_v50 = vsel %vm491_vm4, %v1450_v3, 0.0  ;;  %v1095_v21 = vpop.permute.xlu0 %1094  ;;  %v694_v3 = vmul.f32 1.442695, %v691_v36  ;;  %v1082_v23 = vmul.f32 1.442695, %v1077_v31 }
 0x22b   : > { %1461 = vpow2.f32 %v926_v61  ;;  %v746_v55 = vadd.f32 %v745_v50, %v744_v52  ;;  %v1105_v32 = vsub.f32 %v1716_v48, %v1095_v21  ;;  %v1104_v27 = vsub.f32 %v1732_v57, %v1095_v21  ;;  %v363_v50 = vld [vmem:[%s1748_s10] sm:$0xff] }
 0x22c   : > { %v1452_v7 = vpop.eup %1451  ;;  %1463 = vpow2.f32 %v922_v11  ;;  %v502_v57 = vmul.f32 1.442695, %v499_v0 }
 0x22d   : > { %v1454_v56 = vpop.eup %1453  ;;  %747 = vadd.xlane.f32.xlu0 %v746_v55  ;;  %v1114_v41 = vmul.f32 1.442695, %v1105_v32  ;;  %1465 = vpow2.f32 %v920_v33  ;;  %v1112_v40 = vmul.f32 1.442695, %v1104_v27  ;;  %v504_v55 = vmul.f32 1.442695, %v500_v20 }
 0x22e   : > { %v928_v10 = vsel %vm480_vm2, %v1454_v56, 0.0 }
 0x22f   : > { %v929_v6 = vadd.f32 %v1452_v7, %v928_v10  ;;  %1467 = vpow2.f32 %v1114_v41  ;;  %v506_v7 = vmul.f32 1.442695, %v501_v30  ;;  %v888_v30 = vmul.f32 1.442695, %v884_v49  ;;  %v365_v10 = vld [vmem:[%s1748_s10 + $0x10] sm:$0xf] }
 0x230   : > { %v1456_v8 = vpop.eup %1455  ;;  %1469 = vpow2.f32 %v1112_v40 }
 0x231   : > { %v1458_v59 = vpop.eup %1457  ;;  %930 = vadd.xlane.f32.xlu0 %v929_v6  ;;  %1471 = vpow2.f32 %v502_v57  ;;  %v1078_v6 = vmul.f32 1.442695, %v1075_v44 }
 0x232   : > { %v1120_v16 = vsel %vm480_vm2, %v1458_v59, 0.0  ;;  %1473 = vpow2.f32 %v694_v3  ;;  %v364_v59 = vld [vmem:[%s1748_s10 + $0x8] sm:$0xff] }
 0x233   : > { %v1121_v13 = vadd.f32 %v1456_v8, %v1120_v16  ;;  %1475 = vpow2.f32 %v504_v55  ;;  %v1080_v55 = vmul.f32 1.442695, %v1076_v58 }
 0x234   : > { %v1460_v17 = vpop.eup %1459  ;;  %1477 = vpow2.f32 %v506_v7 }
 0x235   : > { %v1462_v63 = vpop.eup %1461  ;;  %v936_v60 = vsel %vm489_vm3, %v1460_v17, 0.0  ;;  %1122 = vadd.xlane.f32.xlu0 %v1121_v13  ;;  %1479 = vpow2.f32 %v886_v9 }
 0x236   : > { %v937_v29 = vsel %vm491_vm4, %v1462_v63, 0.0  ;;  %v1464_v46 = vpop.eup %1463  ;;  %1481 = vpow2.f32 %v696_v15 }
 0x237   : > { %v938_v62 = vadd.f32 %v937_v29, %v936_v60  ;;  %v1466_v54 = vpop.eup %1465  ;;  %v932_v37 = vsel %vm480_vm2, %v1464_v46, 0.0  ;;  %1483 = vpow2.f32 %v698_v19 }
 0x238   : > { %v933_v61 = vadd.f32 %v1466_v54, %v932_v37  ;;  %1485 = vpow2.f32 %v888_v30 }
 0x239   : > { %939 = vadd.xlane.f32.xlu0 %v938_v62  ;;  %v1468_v5 = vpop.eup %1467  ;;  %1487 = vpow2.f32 %v890_v35 }
 0x23a   : > { %1099 = vperm.xlu1 %1426, %v1844_v4   ;;  %v1470_v53 = vpop.eup %1469  ;;  %v1124_v12 = vsel %vm480_vm2, %v1468_v5, 0.0  ;;  %1489 = vpow2.f32 %v1078_v6 }
 0x23b   : > { %v1125_v48 = vadd.f32 %v1470_v53, %v1124_v12  ;;  %v1472_v52 = vpop.eup %1471  ;;  %1491 = vpow2.f32 %v1082_v23 }
 0x23c   : > { %v508_v56 = vmul.f32 %v1472_v52, %v363_v50  ;;  %v1474_v36 = vpop.eup %1473 }
 0x23d   : > { %v1476_v42 = vpop.eup %1475 }
 0x23e   : > { %v1478_v8 = vpop.eup %1477  ;;  %v509_v49 = vmul.f32 %v1476_v42, %v364_v59 }
 0x23f   : > { %v1480_v34 = vpop.eup %1479  ;;  %v510_v22 = vmul.f32 %v1478_v8, %v365_v10 }
 0x240   : > { %v1482_v17 = vpop.eup %1481 }
 0x241   : > { %v1484_v29 = vpop.eup %1483 }
 0x242   : > { %v1486_v24 = vpop.eup %1485 }
 0x243   : > { %v1488_v27 = vpop.eup %1487 }
 0x244   : > { %v1490_v54 = vpop.eup %1489 }
 0x25e   : > { %934 = vadd.xlane.f32.xlu1 %v933_v61 }
 0x262   : > { %1126 = vadd.xlane.f32.xlu1 %v1125_v48 }
 0x2a6   : > { %v547_v0 = vpop.xlane.xlu1 %546 }
 0x2a7   : > { %v557_v14 = vadd.f32 %v547_v0, %v508_v56 }
 0x2a9   : > { %v700_v20 = vmul.f32 %v1474_v36, %v557_v14 }
 0x2ad   : > { %v743_v18 = vpop.xlane.xlu0 %742 }
 0x2b2   : > { %v739_v25 = vpop.xlane.xlu1 %738 }
 0x2b3   : > { %v749_v28 = vadd.f32 %v739_v25, %v700_v20 }
 0x2b5   : > { %v892_v16 = vmul.f32 %v1480_v34, %v749_v28 }
 0x2b6   : > { %v556_v51 = vpop.xlane.xlu0 %555  ;;  %v551_v13 = vpop.xlane.xlu1 %550 }
 0x2b7   : > { %v559_v63 = vadd.f32 %v556_v51, %v510_v22  ;;  %v558_v60 = vadd.f32 %v551_v13, %v509_v49 }
 0x2b9   : > { %v701_v62 = vmul.f32 %v1482_v17, %v558_v60  ;;  %v702_v26 = vmul.f32 %v1484_v29, %v559_v63 }
 0x2ba   : > { %v1100_v21 = vpop.permute.xlu1 %1099  ;;  %v748_v11 = vpop.xlane.xlu0 %747 }
 0x2bb   : > { %v1106_v39 = vsub.f32 %v1735_v45, %v1100_v21  ;;  %v1107_v43 = vsub.f32 %v1737_v1, %v1100_v21  ;;  %v750_v44 = vadd.f32 %v743_v18, %v701_v62  ;;  %v751_v2 = vadd.f32 %v748_v11, %v702_v26  ;;  %v1492_v1 = vpop.eup %1491 }
 0x2bd   : > { %v1116_v4 = vmul.f32 1.442695, %v1106_v39  ;;  %v1118_v32 = vmul.f32 1.442695, %v1107_v43  ;;  %v893_v33 = vmul.f32 %v1486_v24, %v750_v44  ;;  %v894_v41 = vmul.f32 %v1488_v27, %v751_v2 }
 0x2be   : > { %v931_v40 = vpop.xlane.xlu0 %930 }
 0x2bf   : > { %1493 = vpow2.f32 %v1116_v4  ;;  %v941_v46 = vadd.f32 %v931_v40, %v892_v16 }
 0x2c0   : > { %1495 = vpow2.f32 %v1118_v32 }
 0x2c1   : > { %v1084_v37 = vmul.f32 %v1490_v54, %v941_v46  ;;  %1497 = vpow2.f32 %v1080_v55 }
 0x2c2   : > { %v1123_v45 = vpop.xlane.xlu0 %1122 }
 0x2c3   : > { %v1133_v5 = vadd.f32 %v1123_v45, %v1084_v37 }
 0x2c5   : > { %1141 = vst.msk [vmem:[%s1748_s10] sm:$0xff] %vm344_vm1, %v1133_v5 }
 0x2c6   : > { %v940_v61 = vpop.xlane.xlu0 %939 }
 0x2c7   : > { %v943_v12 = vadd.f32 %v940_v61, %v894_v41 }
 0x2c9   : > { %v1494_v53 = vpop.eup %1493  ;;  %v1086_v52 = vmul.f32 %v1492_v1, %v943_v12 }
 0x2ca   : > { %v1496_v48 = vpop.eup %1495  ;;  %v1128_v57 = vsel %vm489_vm3, %v1494_v53, 0.0 }
 0x2cb   : > { %v1129_v3 = vsel %vm491_vm4, %v1496_v48, 0.0  ;;  %v1498_v9 = vpop.eup %1497 }
 0x2cc   : > { %v1130_v50 = vadd.f32 %v1129_v3, %v1128_v57 }
 0x2ce   : > { %1131 = vadd.xlane.f32.xlu0 %v1130_v50 }
 0x2eb   : > { %v935_v7 = vpop.xlane.xlu1 %934 }
 0x2ec   : > { %v942_v56 = vadd.f32 %v935_v7, %v893_v33 }
 0x2ee   : > { %v1085_v0 = vmul.f32 %v1498_v9, %v942_v56 }
 0x2ef   : > { %v1127_v14 = vpop.xlane.xlu1 %1126 }
 0x2f0   : > { %v1134_v36 = vadd.f32 %v1127_v14, %v1085_v0 }
 0x2f2   : > { %1142 = vst.msk [vmem:[%s1748_s10 + $0x8] sm:$0xff] %vm344_vm1, %v1134_v36 }
 0x35b   : > { %v1132_v15 = vpop.xlane.xlu0 %1131 }
 0x35c   : > { %v1135_v20 = vadd.f32 %v1132_v15, %v1086_v52 }
 0x35e   : > { %1143 = vst.msk [vmem:[%s1748_s10 + $0x10] sm:$0xf] %vm347_vm5, %v1135_v20 }
 0x35f PF: > { %s15_s17 = sadd.s32 1, %s1521_s17   ;;  %s1949_s15 = smov %s1517_s16 }
 0x360   : > { %p12_p5 = scmp.ge.s32.totalorder %s15_s17, 4   ;;  %s1950_s16 = smov %s1952_s18 }
 0x362   :  { %14 = sbr.rel (!%p12_p5) target bundleno = 2 (0x2), region = 90 }

// kernel: _forward_impl.7
= control target key start
LH: loop header
LB: loop body
LE: loop exit
PB: predicated region body
PF: predicated region fallthrough
CT: control target
= control target key end

     0   :  { %s1079_s15 = smov 0   ;;  %s1081_s16 = smov 0   ;;  %s1233_s0 = inlined_call_operand.vmem [shape: f32[2,80,32], index: 0, kind: input, shape index: {}]   ;;  %s1234_s1 = inlined_call_operand.vmem [shape: f32[2,80,1], index: 1, kind: input, shape index: {}]   ;;  %s1235_s2 = inlined_call_operand.vmem [shape: f32[2,80,1], index: 2, kind: input, shape index: {}]   ;;  %s1236_s3 = inlined_call_operand.vmem [shape: f32[2,32,256], index: 3, kind: input, shape index: {}]   ;;  %s1237_s4 = inlined_call_operand.vmem [shape: f32[2,80,256], index: 4, kind: output, shape index: {}]  }
   0x1   :  { %s1083_s17 = smov 0  }
   0x2 LB: > { %s33_s18 = sadd.s32 1, %s1046_s16  ;;  %p926_p0 = scmp.ge.s32.totalorder %s1050_s17, 1  ;;  %s1050_s17 = sphi %s1083_s17, %s14_s17   ;;  %s1046_s16 = sphi %s1081_s16, %s1239_s16   ;;  %s1042_s15 = sphi %s1079_s15, %s1238_s15  }
   0x3   : > { %p35_p1 = scmp.ge.s32.totalorder %s33_s18, 2  ;;  %p243_p2 = scmp.lt.s32.totalorder %s1050_s17, 3 }
   0x5   : > { %s1241_s18 = smov (%p35_p1, %s33_s18), 0  ;;  %p244_p3 = pnand %p926_p0, %p243_p2 }
   0x6   : > { %p310_p4 = scmp.lt.s32.totalorder (!%p244_p3), %s1042_s15, 1  ;;  %v1052_v0 = vmov (!%p244_p3), 0.0   ;;  %v1053_v1 = vmov (!%p244_p3), 0   ;;  %vm383_vm0 = vcmask (!%p244_p3), 261120  }
   0x7   : > { %247 = sbr.rel (%p244_p3) target bundleno = 278 (0x116), region = 36  ;;  %478 = vmatprep.mubr.f32.mxu0 (!%p244_p3), %v1052_v0  ;;  %508 = vmatprep.mubr.f32.mxu1 (!%p244_p3), %v1052_v0 }
   0x8   : > { %987 = vset.pattern.permute.xlu1 (!%p244_p3), %v1053_v1  ;;  %986 = vset.pattern.permute.xlu0 (!%p244_p3), %v1053_v1 }
   0xe   : > { %s1243_s15 = smov (!%p310_p4, %s1042_s15), 1 }
   0xf   : > { %s945_s19 = sshll.u32 %s1243_s15, 6  ;;  %s1106_s23 = smul.u32 80, %s1243_s15 }
  0x10   : > { %s347_s22 = scalar_lea.vmem %s1236_s3, %s945_s19  ;;  %s959_s7 = smul.u32 160, %s1243_s15 }
  0x11   : > { %v376_v2 = vld [vmem:[%s347_s22 + $0x8] sm:$0xff]  ;;  %v378_v3 = vld [vmem:[%s347_s22 + $0x18] sm:$0xff]  ;;  %v375_v4 = vld [vmem:[%s347_s22] sm:$0xff]  ;;  %s1112_s26 = scalar_lea.vmem %s1234_s1, %s1106_s23  ;;  %s1118_s29 = scalar_lea.vmem %s1233_s0, %s1106_s23 }
  0x12   : > { %v946_v5 = vpack.c.bf16 %v378_v3, %v376_v2  ;;  %v377_v6 = vld [vmem:[%s347_s22 + $0x10] sm:$0xff]  ;;  %v380_v7 = vld [vmem:[%s347_s22 + $0x28] sm:$0xff]  ;;  %v382_v8 = vld [vmem:[%s347_s22 + $0x38] sm:$0xff]  ;;  %s337_s6 = scalar_lea.vmem %s1235_s2, %s1106_s23  ;;  %s1188_s10 = scalar_lea.vmem %s1237_s4, %s959_s7 }
  0x13   : > { %v948_v9 = vpack.c.bf16 %v377_v6, %v375_v4  ;;  %v950_v10 = vpack.c.bf16 %v382_v8, %v380_v7  ;;  %v379_v11 = vld [vmem:[%s347_s22 + $0x20] sm:$0xff]  ;;  %v381_v12 = vld [vmem:[%s347_s22 + $0x30] sm:$0xff]  ;;  %v370_v17 = vld [vmem:[%s1118_s29 + $0x28] sm:$0xff] }
  0x14   : > { %947 = vmatprep.subr.bf16.mxu0 %v946_v5  ;;  %954 = vmatprep.subr.bf16.mxu1 %v946_v5  ;;  %v952_v13 = vpack.c.bf16 %v381_v12, %v379_v11  ;;  %v541_v14 = vld [vmem:[%s1112_s26 + $0x10] sm:$0xff]  ;;  %v539_v15 = vld [vmem:[%s1112_s26] sm:$0xff]  ;;  %v542_v18 = vld [vmem:[%s1112_s26 + $0x18] sm:$0xff] }
  0x15   : > { %949 = vmatpush1.bf16.msra.mxu0 %v948_v9  ;;  %956 = vmatpush1.bf16.msra.mxu1 %v948_v9  ;;  %v365_v16 = vld [vmem:[%s1118_s29] sm:$0xff]  ;;  %v540_v19 = vld [vmem:[%s1112_s26 + $0x8] sm:$0xff]  ;;  %v371_v21 = vld [vmem:[%s1118_s29 + $0x30] sm:$0xff] }
  0x16   : > { %951 = vmatprep.subr.bf16.mxu0 %v950_v10  ;;  %955 = vmatprep.subr.bf16.mxu1 %v950_v10  ;;  %v366_v20 = vld [vmem:[%s1118_s29 + $0x8] sm:$0xff]  ;;  %v543_v23 = vld [vmem:[%s1112_s26 + $0x20] sm:$0xff]  ;;  %v367_v24 = vld [vmem:[%s1118_s29 + $0x10] sm:$0xff] }
  0x17   : > { %561 = vperm.xlu1 %987, %v541_v14   ;;  %551 = vperm.xlu0 %986, %v539_v15   ;;  %v544_v22 = vld [vmem:[%s1112_s26 + $0x28] sm:$0xff]  ;;  %v372_v25 = vld [vmem:[%s1118_s29 + $0x38] sm:$0xff]  ;;  %v545_v27 = vld [vmem:[%s1112_s26 + $0x30] sm:$0xff] }
  0x18   : > { %v546_v26 = vld [vmem:[%s1112_s26 + $0x38] sm:$0xff]  ;;  %v373_v29 = vld [vmem:[%s1118_s29 + $0x40] sm:$0xff]  ;;  %v548_v30 = vld [vmem:[%s1112_s26 + $0x48] sm:$0xff] }
  0x19   : > { %953 = vmatpush1.bf16.msra.mxu0 %v952_v13  ;;  %957 = vmatpush1.bf16.msra.mxu1 %v952_v13  ;;  %v368_v28 = vld [vmem:[%s1118_s29 + $0x18] sm:$0xff]  ;;  %v547_v31 = vld [vmem:[%s1112_s26 + $0x40] sm:$0xff]  ;;  %v374_v33 = vld [vmem:[%s1118_s29 + $0x48] sm:$0xff] }
  0x1a   : > { %v369_v32 = vld [vmem:[%s1118_s29 + $0x20] sm:$0xff]  ;;  %v660_v34 = vld [vmem:[%s337_s6 + $0x8] sm:$0xff]  ;;  %v662_v36 = vld [vmem:[%s337_s6 + $0x18] sm:$0xff] }
  0x1b   : > { %566 = vperm.xlu1 %987, %v542_v18   ;;  %556 = vperm.xlu0 %986, %v540_v19   ;;  %v659_v35 = vld [vmem:[%s337_s6] sm:$0xff]  ;;  %v661_v37 = vld [vmem:[%s337_s6 + $0x10] sm:$0xff]  ;;  %v664_v38 = vld [vmem:[%s337_s6 + $0x28] sm:$0xff] }
  0x1c   : > { %933 = vmatmul.mubr.msk.f32.vlgmr.msra.gmra.mrb[0].mxu0 %vm383_vm0, %v365_v16  ;;  %938 = vmatmul.mubr.msk.f32.vlgmr.msra.gmra.mrb[0].mxu1 %vm383_vm0, %v370_v17  ;;  %v663_v39 = vld [vmem:[%s337_s6 + $0x20] sm:$0xff]  ;;  %v666_v40 = vld [vmem:[%s337_s6 + $0x38] sm:$0xff]  ;;  %v665_v41 = vld [vmem:[%s337_s6 + $0x30] sm:$0xff] }
  0x1d   : > { %484 = vmatprep.mubr.f32.mxu0 %v1052_v0  ;;  %514 = vmatprep.mubr.f32.mxu1 %v1052_v0  ;;  %v668_v42 = vld [vmem:[%s337_s6 + $0x48] sm:$0xff]  ;;  %v667_v43 = vld [vmem:[%s337_s6 + $0x40] sm:$0xff] }
  0x1f   : > { %576 = vperm.xlu1 %987, %v544_v22   ;;  %571 = vperm.xlu0 %986, %v543_v23  }
  0x20   : > { %934 = vmatmul.mubr.msk.f32.gmra.mrb[2].mxu0 %vm383_vm0, %v366_v20  ;;  %939 = vmatmul.mubr.msk.f32.gmra.mrb[2].mxu1 %vm383_vm0, %v371_v21 }
  0x21   : > { %490 = vmatprep.mubr.f32.mxu0 %v1052_v0  ;;  %520 = vmatprep.mubr.f32.mxu1 %v1052_v0 }
  0x23   : > { %586 = vperm.xlu1 %987, %v546_v26   ;;  %581 = vperm.xlu0 %986, %v545_v27  }
  0x24   : > { %935 = vmatmul.mubr.msk.f32.gmra.mrb[4].mxu0 %vm383_vm0, %v367_v24  ;;  %940 = vmatmul.mubr.msk.f32.gmra.mrb[4].mxu1 %vm383_vm0, %v372_v25 }
  0x25   : > { %496 = vmatprep.mubr.f32.mxu0 %v1052_v0  ;;  %526 = vmatprep.mubr.f32.mxu1 %v1052_v0 }
  0x27   : > { %596 = vperm.xlu1 %987, %v548_v30   ;;  %591 = vperm.xlu0 %986, %v547_v31  }
  0x28   : > { %936 = vmatmul.mubr.msk.f32.gmra.mrb[6].mxu0 %vm383_vm0, %v368_v28  ;;  %941 = vmatmul.mubr.msk.f32.gmra.mrb[6].mxu1 %vm383_vm0, %v373_v29 }
  0x29   : > { %502 = vmatprep.mubr.f32.mxu0 %v1052_v0  ;;  %532 = vmatprep.mubr.f32.mxu1 %v1052_v0 }
  0x2b   : > { %676 = vperm.xlu1 %987, %v660_v34   ;;  %671 = vperm.xlu0 %986, %v659_v35  }
  0x2c   : > { %937 = vmatmul.mubr.msk.f32.gmra.mrb[8].mxu0 %vm383_vm0, %v369_v32  ;;  %942 = vmatmul.mubr.msk.f32.gmra.mrb[8].mxu1 %vm383_vm0, %v374_v33 }
  0x2f   : > { %686 = vperm.xlu1 %987, %v662_v36   ;;  %681 = vperm.xlu0 %986, %v661_v37  }
  0x33   : > { %696 = vperm.xlu1 %987, %v664_v38   ;;  %691 = vperm.xlu0 %986, %v663_v39  }
  0x37   : > { %706 = vperm.xlu1 %987, %v666_v40   ;;  %701 = vperm.xlu0 %986, %v665_v41  }
  0x3b   : > { %716 = vperm.xlu1 %987, %v668_v42   ;;  %711 = vperm.xlu0 %986, %v667_v43  }
  0x96   : > { %v562_v44 = vpop.permute.xlu1 %561  ;;  %v552_v45 = vpop.permute.xlu0 %551 }
  0x9a   : > { %v1162_v46 = vpop.permute.xlu1 %566  ;;  %v557_v47 = vpop.permute.xlu0 %556 }
  0x9e   : > { %v577_v48 = vpop.permute.xlu1 %576  ;;  %v1164_v49 = vpop.permute.xlu0 %571 }
  0xa2   : > { %v587_v50 = vpop.permute.xlu1 %586  ;;  %v582_v51 = vpop.permute.xlu0 %581 }
  0xa6   : > { %v1166_v52 = vpop.permute.xlu1 %596  ;;  %v1168_v53 = vpop.permute.xlu0 %591 }
  0xaa   : > { %v1170_v54 = vpop.permute.xlu1 %676  ;;  %v1172_v55 = vpop.permute.xlu0 %671 }
  0xae   : > { %v1174_v12 = vpop.permute.xlu1 %686  ;;  %v1176_v13 = vpop.permute.xlu0 %681 }
  0xb2   : > { %v1181_v36 = vpop.permute.xlu0 %691  ;;  %v697_v40 = vpop.permute.xlu1 %696 }
  0xef   : > { %v480_v56 = vpop.f32.mrb[0].mxu0  ;;  %v510_v57 = vpop.f32.mrb[0].mxu1 }
  0xf0   : > { %v599_v58 = vsub.f32 %v480_v56, %v552_v45  ;;  %v609_v59 = vsub.f32 %v510_v57, %v577_v48  ;;  %v482_v60 = vpop.f32.mrb[1].mxu0  ;;  %v512_v61 = vpop.f32.mrb[1].mxu1 }
  0xf1   : > { %v600_v62 = vsub.f32 %v482_v60, %v552_v45  ;;  %v610_v63 = vsub.f32 %v512_v61, %v577_v48 }
  0xf2   : > { %v619_v0 = vmul.f32 1.442695, %v599_v58  ;;  %v639_v1 = vmul.f32 1.442695, %v609_v59 }
  0xf3   : > { %v621_v2 = vmul.f32 1.442695, %v600_v62  ;;  %v641_v3 = vmul.f32 1.442695, %v610_v63  ;;  %v486_v4 = vpop.f32.mrb[2].mxu0  ;;  %v516_v5 = vpop.f32.mrb[2].mxu1 }
  0xf4   : > { %988 = vpow2.f32 %v619_v0  ;;  %v601_v6 = vsub.f32 %v486_v4, %v557_v47  ;;  %v611_v7 = vsub.f32 %v516_v5, %v582_v51  ;;  %v488_v8 = vpop.f32.mrb[3].mxu0  ;;  %v518_v9 = vpop.f32.mrb[3].mxu1 }
  0xf5   : > { %990 = vpow2.f32 %v639_v1  ;;  %v602_v10 = vsub.f32 %v488_v8, %v557_v47  ;;  %v612_v11 = vsub.f32 %v518_v9, %v582_v51  ;;  %v702_v4 = vpop.permute.xlu0 %701 }
  0xf6   : > { %992 = vpow2.f32 %v621_v2  ;;  %v623_v14 = vmul.f32 1.442695, %v601_v6  ;;  %v643_v15 = vmul.f32 1.442695, %v611_v7 }
  0xf7   : > { %994 = vpow2.f32 %v641_v3  ;;  %v625_v16 = vmul.f32 1.442695, %v602_v10  ;;  %v645_v17 = vmul.f32 1.442695, %v612_v11  ;;  %v492_v18 = vpop.f32.mrb[4].mxu0  ;;  %v522_v19 = vpop.f32.mrb[4].mxu1 }
  0xf8   : > { %996 = vpow2.f32 %v623_v14  ;;  %v603_v20 = vsub.f32 %v492_v18, %v562_v44  ;;  %v613_v21 = vsub.f32 %v522_v19, %v587_v50  ;;  %v494_v22 = vpop.f32.mrb[5].mxu0  ;;  %v524_v23 = vpop.f32.mrb[5].mxu1 }
  0xf9   : > { %998 = vpow2.f32 %v643_v15  ;;  %v604_v24 = vsub.f32 %v494_v22, %v562_v44  ;;  %v614_v25 = vsub.f32 %v524_v23, %v587_v50  ;;  %v707_v14 = vpop.permute.xlu1 %706  ;;  %v712_v22 = vpop.permute.xlu0 %711 }
  0xfa   : > { %1000 = vpow2.f32 %v625_v16  ;;  %v627_v26 = vmul.f32 1.442695, %v603_v20  ;;  %v647_v27 = vmul.f32 1.442695, %v613_v21 }
  0xfb   : > { %1002 = vpow2.f32 %v645_v17  ;;  %v629_v28 = vmul.f32 1.442695, %v604_v24  ;;  %v649_v29 = vmul.f32 1.442695, %v614_v25  ;;  %v498_v30 = vpop.f32.mrb[6].mxu0  ;;  %v528_v31 = vpop.f32.mrb[6].mxu1 }
  0xfc   : > { %1004 = vpow2.f32 %v627_v26  ;;  %v605_v32 = vsub.f32 %v498_v30, %v1162_v46  ;;  %v615_v33 = vsub.f32 %v528_v31, %v1168_v53  ;;  %v500_v34 = vpop.f32.mrb[7].mxu0  ;;  %v530_v35 = vpop.f32.mrb[7].mxu1 }
  0xfd   : > { %1006 = vpow2.f32 %v647_v27  ;;  %v606_v37 = vsub.f32 %v500_v34, %v1162_v46  ;;  %v616_v38 = vsub.f32 %v530_v35, %v1168_v53  ;;  %v717_v30 = vpop.permute.xlu1 %716 }
  0xfe   : > { %v989_v39 = vpop.eup %988  ;;  %1008 = vpow2.f32 %v629_v28  ;;  %v631_v41 = vmul.f32 1.442695, %v605_v32  ;;  %v651_v42 = vmul.f32 1.442695, %v615_v33 }
  0xff   : > { %v991_v43 = vpop.eup %990  ;;  %v719_v44 = vmul.f32 %v989_v39, %v1172_v55  ;;  %1010 = vpow2.f32 %v649_v29  ;;  %v633_v45 = vmul.f32 1.442695, %v606_v37  ;;  %v653_v47 = vmul.f32 1.442695, %v616_v38  ;;  %v504_v46 = vpop.f32.mrb[8].mxu0 }
 0x100   : > { %v534_v48 = vpop.f32.mrb[8].mxu1  ;;  %v993_v50 = vpop.eup %992  ;;  %v729_v51 = vmul.f32 %v991_v43, %v697_v40  ;;  %1012 = vpow2.f32 %v631_v41  ;;  %v607_v53 = vsub.f32 %v504_v46, %v1164_v49 }
 0x101   : > { %v617_v56 = vsub.f32 %v534_v48, %v1166_v52  ;;  %v506_v57 = vpop.f32.mrb[9].mxu0  ;;  %v536_v58 = vpop.f32.mrb[9].mxu1  ;;  %739 = vst [vmem:[%s1188_s10] sm:$0xff] %v719_v44  ;;  %v720_v60 = vmul.f32 %v993_v50, %v1172_v55  ;;  %1014 = vpow2.f32 %v651_v42 }
 0x102   : > { %v995_v59 = vpop.eup %994  ;;  %v608_v61 = vsub.f32 %v506_v57, %v1164_v49  ;;  %v618_v62 = vsub.f32 %v536_v58, %v1166_v52  ;;  %749 = vst [vmem:[%s1188_s10 + $0x50] sm:$0xff] %v729_v51  ;;  %1016 = vpow2.f32 %v633_v45  ;;  %v635_v1 = vmul.f32 1.442695, %v607_v53 }
 0x103   : > { %v997_v63 = vpop.eup %996  ;;  %v730_v0 = vmul.f32 %v995_v59, %v697_v40  ;;  %v655_v2 = vmul.f32 1.442695, %v617_v56  ;;  %740 = vst [vmem:[%s1188_s10 + $0x8] sm:$0xff] %v720_v60  ;;  %1018 = vpow2.f32 %v653_v47 }
 0x104   : > { %v999_v3 = vpop.eup %998  ;;  %v721_v5 = vmul.f32 %v997_v63, %v1170_v54  ;;  %v637_v55 = vmul.f32 1.442695, %v608_v61  ;;  %v657_v49 = vmul.f32 1.442695, %v618_v62  ;;  %1020 = vpow2.f32 %v635_v1 }
 0x105   : > { %v1001_v6 = vpop.eup %1000  ;;  %750 = vst [vmem:[%s1188_s10 + $0x58] sm:$0xff] %v730_v0  ;;  %v731_v52 = vmul.f32 %v999_v3, %v702_v4  ;;  %1022 = vpow2.f32 %v655_v2 }
 0x106   : > { %v1003_v7 = vpop.eup %1002  ;;  %741 = vst [vmem:[%s1188_s10 + $0x10] sm:$0xff] %v721_v5  ;;  %v722_v8 = vmul.f32 %v1001_v6, %v1170_v54  ;;  %1024 = vpow2.f32 %v637_v55 }
 0x107   : > { %v1005_v9 = vpop.eup %1004  ;;  %751 = vst [vmem:[%s1188_s10 + $0x60] sm:$0xff] %v731_v52  ;;  %v732_v10 = vmul.f32 %v1003_v7, %v702_v4  ;;  %1026 = vpow2.f32 %v657_v49 }
 0x108   : > { %v1007_v11 = vpop.eup %1006  ;;  %742 = vst [vmem:[%s1188_s10 + $0x18] sm:$0xff] %v722_v8  ;;  %v723_v15 = vmul.f32 %v1005_v9, %v1176_v13 }
 0x109   : > { %v1009_v16 = vpop.eup %1008  ;;  %752 = vst [vmem:[%s1188_s10 + $0x68] sm:$0xff] %v732_v10  ;;  %v733_v17 = vmul.f32 %v1007_v11, %v707_v14 }
 0x10a   : > { %v1011_v18 = vpop.eup %1010  ;;  %743 = vst [vmem:[%s1188_s10 + $0x20] sm:$0xff] %v723_v15  ;;  %v724_v54 = vmul.f32 %v1009_v16, %v1176_v13 }
 0x10b   : > { %v1013_v19 = vpop.eup %1012  ;;  %753 = vst [vmem:[%s1188_s10 + $0x70] sm:$0xff] %v733_v17  ;;  %v734_v20 = vmul.f32 %v1011_v18, %v707_v14 }
 0x10c   : > { %v1015_v21 = vpop.eup %1014  ;;  %744 = vst [vmem:[%s1188_s10 + $0x28] sm:$0xff] %v724_v54  ;;  %v725_v23 = vmul.f32 %v1013_v19, %v1174_v12 }
 0x10d   : > { %v1017_v24 = vpop.eup %1016  ;;  %754 = vst [vmem:[%s1188_s10 + $0x78] sm:$0xff] %v734_v20  ;;  %v735_v25 = vmul.f32 %v1015_v21, %v712_v22 }
 0x10e   : > { %v1019_v26 = vpop.eup %1018  ;;  %745 = vst [vmem:[%s1188_s10 + $0x30] sm:$0xff] %v725_v23  ;;  %v726_v27 = vmul.f32 %v1017_v24, %v1174_v12 }
 0x10f   : > { %v1021_v13 = vpop.eup %1020  ;;  %755 = vst [vmem:[%s1188_s10 + $0x80] sm:$0xff] %v735_v25  ;;  %v736_v28 = vmul.f32 %v1019_v26, %v712_v22 }
 0x110   : > { %v1023_v29 = vpop.eup %1022  ;;  %746 = vst [vmem:[%s1188_s10 + $0x38] sm:$0xff] %v726_v27  ;;  %v727_v31 = vmul.f32 %v1021_v13, %v1181_v36 }
 0x111   : > { %v1025_v32 = vpop.eup %1024  ;;  %756 = vst [vmem:[%s1188_s10 + $0x88] sm:$0xff] %v736_v28  ;;  %v737_v33 = vmul.f32 %v1023_v29, %v717_v30 }
 0x112   : > { %v1027_v34 = vpop.eup %1026  ;;  %747 = vst [vmem:[%s1188_s10 + $0x40] sm:$0xff] %v727_v31  ;;  %v728_v35 = vmul.f32 %v1025_v32, %v1181_v36 }
 0x113   : > { %757 = vst [vmem:[%s1188_s10 + $0x90] sm:$0xff] %v737_v33  ;;  %v738_v37 = vmul.f32 %v1027_v34, %v717_v30 }
 0x114   : > { %748 = vst [vmem:[%s1188_s10 + $0x48] sm:$0xff] %v728_v35 }
 0x115   : > { %758 = vst [vmem:[%s1188_s10 + $0x98] sm:$0xff] %v738_v37 }
 0x116 PF: > { %s14_s17 = sadd.s32 1, %s1050_s17   ;;  %s1238_s15 = smov %s1046_s16 }
 0x117   : > { %p11_p5 = scmp.ge.s32.totalorder %s14_s17, 4   ;;  %s1239_s16 = smov %s1241_s18 }
 0x119   :  { %13 = sbr.rel (!%p11_p5) target bundleno = 2 (0x2), region = 75 }

// kernel: _forward_impl.6
= control target key start
LH: loop header
LB: loop body
LE: loop exit
PB: predicated region body
PF: predicated region fallthrough
CT: control target
= control target key end

     0   :  { %s1533_s15 = smov 0   ;;  %s1535_s16 = smov 0   ;;  %s1906_s0 = inlined_call_operand.vmem [shape: f32[2,4,20,32], index: 0, kind: input, shape index: {}]   ;;  %s1907_s1 = inlined_call_operand.vmem [shape: f32[2,4,20,1], index: 1, kind: input, shape index: {}]   ;;  %s1908_s2 = inlined_call_operand.vmem [shape: f32[2,32,256], index: 2, kind: input, shape index: {}]   ;;  %s1909_s3 = inlined_call_operand.vmem [shape: f32[2,20,1], index: 3, kind: output, shape index: {0}]   ;;  %s1910_s4 = inlined_call_operand.vmem [shape: f32[2,20,1], index: 4, kind: output, shape index: {1}]  }
   0x1   :  { %s1537_s17 = smov 0  }
   0x2 LB: > { %s34_s18 = sadd.s32 1, %s1499_s16  ;;  %p1306_p0 = scmp.ge.s32.totalorder %s1503_s17, 1  ;;  %s1503_s17 = sphi %s1537_s17, %s15_s17   ;;  %s1499_s16 = sphi %s1535_s16, %s1913_s16   ;;  %s1495_s15 = sphi %s1533_s15, %s1912_s15  }
   0x3   : > { %p36_p1 = scmp.ge.s32.totalorder %s34_s18, 2  ;;  %p229_p2 = scmp.lt.s32.totalorder %s1503_s17, 3 }
   0x5   : > { %s1915_s18 = smov (%p36_p1, %s34_s18), 0  ;;  %p230_p3 = pnand %p1306_p0, %p229_p2 }
   0x6   : > { %p291_p4 = scmp.lt.s32.totalorder (!%p230_p3), %s1495_s15, 1  ;;  %v1505_v0 = vmov (!%p230_p3), 0.0   ;;  %v1506_v1 = vmov (!%p230_p3), 0   ;;  %vm387_vm0 = vcmask (!%p230_p3), 261120   ;;  %vm344_vm1 = vcmask (!%p230_p3), 7168  }
   0x7   : > { %233 = sbr.rel (%p230_p3) target bundleno = 854 (0x356), region = 32  ;;  %461 = vmatprep.mubr.f32.mxu0 (!%p230_p3), %v1505_v0  ;;  %650 = vmatprep.mubr.f32.mxu1 (!%p230_p3), %v1505_v0  ;;  %v1507_v38 = vmov (!%p230_p3), -inf   ;;  %vm486_vm2 = vcmask (!%p230_p3), 1043456   ;;  %vm347_vm3 = vcmask (!%p230_p3), 3072  }
   0x8   : > { %1407 = vset.pattern.permute.xlu0 (!%p230_p3), %v1506_v1  ;;  %1408 = vset.pattern.permute.xlu1 (!%p230_p3), %v1506_v1 }
   0xe   : > { %s1917_s15 = smov (!%p291_p4, %s1495_s15), 1 }
   0xf   : > { %s1345_s19 = sshll.u32 %s1917_s15, 6  ;;  %s1378_s23 = smul.u32 96, %s1917_s15 }
  0x10   : > { %s318_s22 = scalar_lea.vmem %s1908_s2, %s1345_s19  ;;  %s1379_s30 = smul.u32 24, %s1917_s15 }
  0x11   : > { %v353_v2 = vld [vmem:[%s318_s22 + $0x8] sm:$0xff]  ;;  %v355_v3 = vld [vmem:[%s318_s22 + $0x18] sm:$0xff]  ;;  %v352_v4 = vld [vmem:[%s318_s22] sm:$0xff]  ;;  %s1563_s26 = scalar_lea.vmem %s1907_s1, %s1378_s23  ;;  %s1568_s29 = scalar_lea.vmem %s1906_s0, %s1378_s23 }
  0x12   : > { %v1346_v5 = vpack.c.bf16 %v355_v3, %v353_v2  ;;  %v354_v6 = vld [vmem:[%s318_s22 + $0x10] sm:$0xff]  ;;  %v357_v7 = vld [vmem:[%s318_s22 + $0x28] sm:$0xff]  ;;  %v359_v8 = vld [vmem:[%s318_s22 + $0x38] sm:$0xff]  ;;  %s1622_s7 = scalar_lea.vmem %s1909_s3, %s1379_s30  ;;  %s1718_s10 = scalar_lea.vmem %s1910_s4, %s1379_s30 }
  0x13   : > { %v1348_v9 = vpack.c.bf16 %v354_v6, %v352_v4  ;;  %v1350_v10 = vpack.c.bf16 %v359_v8, %v357_v7  ;;  %v356_v11 = vld [vmem:[%s318_s22 + $0x20] sm:$0xff]  ;;  %v358_v12 = vld [vmem:[%s318_s22 + $0x30] sm:$0xff]  ;;  %v1316_v16 = vld [vmem:[%s1568_s29 + $0x18] sm:$0xff]  ;;  %345 = vst.msk [vmem:[%s1622_s7] sm:$0xff] %vm344_vm1, %v1507_v38 }
  0x14   : > { %1347 = vmatprep.subr.bf16.mxu0 %v1346_v5  ;;  %1355 = vmatprep.subr.bf16.mxu1 %v1346_v5  ;;  %v1352_v13 = vpack.c.bf16 %v358_v12, %v356_v11  ;;  %v369_v14 = vld [vmem:[%s1563_s26] sm:$0xff]  ;;  %v367_v17 = vld [vmem:[%s1568_s29 + $0x8] sm:$0xff]  ;;  %v371_v20 = vld [vmem:[%s1563_s26 + $0x10] sm:$0xf]  ;;  %346 = vst.msk [vmem:[%s1622_s7 + $0x8] sm:$0xff] %vm344_vm1, %v1507_v38 }
  0x15   : > { %1349 = vmatpush1.bf16.msra.mxu0 %v1348_v9  ;;  %1357 = vmatpush1.bf16.msra.mxu1 %v1348_v9  ;;  %v366_v15 = vld [vmem:[%s1568_s29] sm:$0xff]  ;;  %v370_v19 = vld [vmem:[%s1563_s26 + $0x8] sm:$0xff]  ;;  %v368_v21 = vld [vmem:[%s1568_s29 + $0x10] sm:$0xf]  ;;  %348 = vst.msk [vmem:[%s1622_s7 + $0x10] sm:$0xf] %vm347_vm3, %v1507_v38 }
  0x16   : > { %1351 = vmatprep.subr.bf16.mxu0 %v1350_v10  ;;  %1359 = vmatprep.subr.bf16.mxu1 %v1350_v10  ;;  %v1317_v18 = vld [vmem:[%s1568_s29 + $0x20] sm:$0xff]  ;;  %v1318_v22 = vld [vmem:[%s1568_s29 + $0x28] sm:$0xf]  ;;  %v1325_v24 = vld [vmem:[%s1568_s29 + $0x30] sm:$0xff]  ;;  %349 = vst.msk [vmem:[%s1718_s10] sm:$0xff] %vm344_vm1, %v1505_v0 }
  0x17   : > { %374 = vperm.xlu0 %1407, %v369_v14   ;;  %384 = vperm.xlu1 %1408, %v371_v20   ;;  %v1321_v23 = vld [vmem:[%s1563_s26 + $0x28] sm:$0xf]  ;;  %v1319_v26 = vld [vmem:[%s1563_s26 + $0x18] sm:$0xff]  ;;  %v1335_v28 = vld [vmem:[%s1568_s29 + $0x50] sm:$0xff]  ;;  %350 = vst.msk [vmem:[%s1718_s10 + $0x8] sm:$0xff] %vm344_vm1, %v1505_v0 }
  0x18   : > { %v1334_v25 = vld [vmem:[%s1568_s29 + $0x48] sm:$0xff]  ;;  %v1326_v27 = vld [vmem:[%s1568_s29 + $0x38] sm:$0xff]  ;;  %v1320_v29 = vld [vmem:[%s1563_s26 + $0x20] sm:$0xff]  ;;  %351 = vst.msk [vmem:[%s1718_s10 + $0x10] sm:$0xf] %vm347_vm3, %v1505_v0 }
  0x19   : > { %1353 = vmatpush1.bf16.msra.mxu0 %v1352_v13  ;;  %1361 = vmatpush1.bf16.msra.mxu1 %v1352_v13  ;;  %v1327_v30 = vld [vmem:[%s1568_s29 + $0x40] sm:$0xf]  ;;  %v1336_v31 = vld [vmem:[%s1568_s29 + $0x58] sm:$0xf]  ;;  %v1328_v33 = vld [vmem:[%s1563_s26 + $0x30] sm:$0xff] }
  0x1a   : > { %1363 = vmatprep.subr.bf16.mxu0 %v1346_v5  ;;  %1371 = vmatprep.subr.bf16.mxu1 %v1346_v5  ;;  %v1330_v32 = vld [vmem:[%s1563_s26 + $0x40] sm:$0xf]  ;;  %v1329_v34 = vld [vmem:[%s1563_s26 + $0x38] sm:$0xff]  ;;  %v1337_v36 = vld [vmem:[%s1563_s26 + $0x48] sm:$0xff] }
  0x1b   : > { %379 = vperm.xlu0 %1407, %v370_v19   ;;  %v1339_v35 = vld [vmem:[%s1563_s26 + $0x58] sm:$0xf]  ;;  %v1338_v37 = vld [vmem:[%s1563_s26 + $0x50] sm:$0xff] }
  0x1c   : > { %1313 = vmatmul.mubr.msk.f32.vlgmr.msra.gmra.mrb[0].mxu0 %vm387_vm0, %v366_v15  ;;  %1322 = vmatmul.mubr.msk.f32.vlgmr.msra.gmra.mrb[0].mxu1 %vm387_vm0, %v1316_v16 }
  0x1d   : > { %467 = vmatprep.mubr.f32.mxu0 %v1505_v0  ;;  %656 = vmatprep.mubr.f32.mxu1 %v1505_v0 }
  0x1e   : > { %1365 = vmatpush1.bf16.msra.mxu0 %v1348_v9  ;;  %1373 = vmatpush1.bf16.msra.mxu1 %v1348_v9 }
  0x1f   : > { %1367 = vmatprep.subr.bf16.mxu0 %v1350_v10  ;;  %1375 = vmatprep.subr.bf16.mxu1 %v1350_v10 }
  0x20   : > { %1314 = vmatmul.mubr.msk.f32.gmra.mrb[2].mxu0 %vm387_vm0, %v367_v17  ;;  %1323 = vmatmul.mubr.msk.f32.gmra.mrb[2].mxu1 %vm387_vm0, %v1317_v18 }
  0x21   : > { %473 = vmatprep.mubr.f32.mxu0 %v1505_v0  ;;  %662 = vmatprep.mubr.f32.mxu1 %v1505_v0 }
  0x22   : > { %1369 = vmatpush1.bf16.msra.mxu0 %v1352_v13  ;;  %1377 = vmatpush1.bf16.msra.mxu1 %v1352_v13 }
  0x23   : > { %574 = vperm.xlu0 %1407, %v1321_v23  }
  0x24   : > { %1315 = vmatmul.mubr.msk.f32.gmra.mrb[4].mxu0 %vm387_vm0, %v368_v21  ;;  %1324 = vmatmul.mubr.msk.f32.gmra.mrb[4].mxu1 %vm387_vm0, %v1318_v22 }
  0x25   : > { %838 = vmatprep.mubr.f32.mxu0 %v1505_v0  ;;  %1026 = vmatprep.mubr.f32.mxu1 %v1505_v0 }
  0x27   : > { %564 = vperm.xlu0 %1407, %v1319_v26  }
  0x28   : > { %1331 = vmatmul.mubr.msk.f32.vlgmr.msra.gmra.mrb[6].mxu0 %vm387_vm0, %v1325_v24  ;;  %1340 = vmatmul.mubr.msk.f32.vlgmr.msra.gmra.mrb[6].mxu1 %vm387_vm0, %v1334_v25 }
  0x29   : > { %844 = vmatprep.mubr.f32.mxu0 %v1505_v0  ;;  %1032 = vmatprep.mubr.f32.mxu1 %v1505_v0 }
  0x2b   : > { %569 = vperm.xlu0 %1407, %v1320_v29  }
  0x2c   : > { %1332 = vmatmul.mubr.msk.f32.gmra.mrb[8].mxu0 %vm387_vm0, %v1326_v27  ;;  %1341 = vmatmul.mubr.msk.f32.gmra.mrb[8].mxu1 %vm387_vm0, %v1335_v28 }
  0x2d   : > { %850 = vmatprep.mubr.f32.mxu0 %v1505_v0  ;;  %1038 = vmatprep.mubr.f32.mxu1 %v1505_v0 }
  0x2f   : > { %762 = vperm.xlu0 %1407, %v1330_v32  }
  0x30   : > { %1333 = vmatmul.mubr.msk.f32.gmra.mrb[10].mxu0 %vm387_vm0, %v1327_v30  ;;  %1342 = vmatmul.mubr.msk.f32.gmra.mrb[10].mxu1 %vm387_vm0, %v1336_v31 }
  0x33   : > { %752 = vperm.xlu0 %1407, %v1328_v33  }
  0x37   : > { %757 = vperm.xlu0 %1407, %v1329_v34  }
  0x3b   : > { %950 = vperm.xlu0 %1407, %v1339_v35  }
  0x3f   : > { %940 = vperm.xlu0 %1407, %v1337_v36  }
  0x43   : > { %945 = vperm.xlu0 %1407, %v1338_v37  }
  0x96   : > { %v375_v39 = vpop.permute.xlu0 %374  ;;  %v385_v62 = vpop.permute.xlu1 %384 }
  0x9a   : > { %v380_v40 = vpop.permute.xlu0 %379 }
  0xa2   : > { %v575_v41 = vpop.permute.xlu0 %574 }
  0xa6   : > { %v565_v42 = vpop.permute.xlu0 %564 }
  0xaa   : > { %v570_v43 = vpop.permute.xlu0 %569 }
  0xae   : > { %v1630_v44 = vpop.permute.xlu0 %762 }
  0xb2   : > { %v753_v45 = vpop.permute.xlu0 %752 }
  0xb6   : > { %v758_v46 = vpop.permute.xlu0 %757 }
  0xba   : > { %v951_v63 = vpop.permute.xlu0 %950 }
  0xbe   : > { %v941_v25 = vpop.permute.xlu0 %940 }
  0xef   : > { %v463_v47 = vpop.f32.mrb[0].mxu0  ;;  %v652_v48 = vpop.f32.mrb[0].mxu1 }
  0xf0   : > { %v1632_v49 = vadd.f32 %v463_v47, %v375_v39  ;;  %v465_v50 = vpop.f32.mrb[1].mxu0  ;;  %v654_v51 = vpop.f32.mrb[1].mxu1  ;;  %v1636_v53 = vadd.f32 %v652_v48, %v565_v42 }
  0xf1   : > { %v1634_v52 = vadd.f32 %v465_v50, %v375_v39  ;;  %v1638_v54 = vadd.f32 %v654_v51, %v565_v42  ;;  %v946_v42 = vpop.permute.xlu0 %945 }
  0xf3   : > { %v469_v55 = vpop.f32.mrb[2].mxu0  ;;  %v658_v56 = vpop.f32.mrb[2].mxu1  ;;  %v480_v57 = vmax.f32 %v1632_v49, %v1634_v52  ;;  %v669_v6 = vmax.f32 %v1636_v53, %v1638_v54 }
  0xf4   : > { %v1642_v58 = vadd.f32 %v469_v55, %v380_v40  ;;  %v471_v59 = vpop.f32.mrb[3].mxu0  ;;  %v660_v60 = vpop.f32.mrb[3].mxu1  ;;  %v1646_v1 = vadd.f32 %v658_v56, %v570_v43 }
  0xf5   : > { %v1644_v61 = vadd.f32 %v471_v59, %v380_v40  ;;  %481 = vmax.xlane.f32.xlu1 %v480_v57  ;;  %v1648_v2 = vadd.f32 %v660_v60, %v570_v43 }
  0xf7   : > { %v475_v3 = vpop.f32.mrb[4].mxu0  ;;  %v664_v4 = vpop.f32.mrb[4].mxu1  ;;  %v483_v5 = vmax.f32 %v1642_v58, %v1644_v61  ;;  %v672_v16 = vmax.f32 %v1646_v1, %v1648_v2 }
  0xf8   : > { %v1654_v7 = vadd.f32 %v475_v3, %v385_v62  ;;  %v477_v8 = vpop.f32.mrb[5].mxu0  ;;  %v666_v9 = vpop.f32.mrb[5].mxu1  ;;  %v1656_v10 = vadd.f32 %v664_v4, %v575_v41  ;;  %v1740_v4 = vld [vmem:[%s1622_s7 + $0x8] sm:$0xff] }
  0xf9   : > { %v1658_v11 = vadd.f32 %v477_v8, %v385_v62  ;;  %v1660_v12 = vadd.f32 %v666_v9, %v575_v41  ;;  %484 = vmax.xlane.f32.xlu0 %v483_v5  ;;  %670 = vmax.xlane.f32.xlu1 %v669_v6  ;;  %v1734_v62 = vld [vmem:[%s1622_s7] sm:$0xff] }
  0xfa   : > { %v487_v13 = vsel %vm486_vm2, %v1654_v7, -inf  ;;  %v675_v23 = vsel %vm486_vm2, %v1656_v10, -inf }
  0xfb   : > { %v840_v14 = vpop.f32.mrb[6].mxu0  ;;  %v1028_v15 = vpop.f32.mrb[6].mxu1  ;;  %v488_v17 = vsel %vm486_vm2, %v1658_v11, -inf  ;;  %v676_v24 = vsel %vm486_vm2, %v1660_v12, -inf }
  0xfc   : > { %v1668_v18 = vadd.f32 %v840_v14, %v753_v45  ;;  %v842_v19 = vpop.f32.mrb[7].mxu0  ;;  %v1030_v20 = vpop.f32.mrb[7].mxu1  ;;  %v489_v21 = vmax.f32 %v487_v13, %v488_v17  ;;  %v1676_v26 = vadd.f32 %v1028_v15, %v941_v25  ;;  %v677_v33 = vmax.f32 %v675_v23, %v676_v24  ;;  %v1758_v15 = vld [vmem:[%s1622_s7 + $0x10] sm:$0xf] }
  0xfd   : > { %v1670_v22 = vadd.f32 %v842_v19, %v753_v45  ;;  %673 = vmax.xlane.f32.xlu1 %v672_v16  ;;  %v1678_v27 = vadd.f32 %v1030_v20, %v941_v25 }
  0xfe   : > { %490 = vmax.xlane.f32.xlu0 %v489_v21 }
  0xff   : > { %v846_v28 = vpop.f32.mrb[8].mxu0  ;;  %v1034_v29 = vpop.f32.mrb[8].mxu1  ;;  %v857_v30 = vmax.f32 %v1668_v18, %v1670_v22  ;;  %v1045_v39 = vmax.f32 %v1676_v26, %v1678_v27 }
 0x100   : > { %v848_v31 = vpop.f32.mrb[9].mxu0  ;;  %v1036_v32 = vpop.f32.mrb[9].mxu1  ;;  %v1682_v34 = vadd.f32 %v846_v28, %v758_v46  ;;  %v1691_v43 = vadd.f32 %v1034_v29, %v946_v42 }
 0x101   : > { %858 = vmax.xlane.f32.xlu1 %v857_v30  ;;  %v1684_v35 = vadd.f32 %v848_v31, %v758_v46  ;;  %v1693_v45 = vadd.f32 %v1036_v32, %v946_v42 }
 0x102   : > { %678 = vmax.xlane.f32.xlu0 %v677_v33 }
 0x103   : > { %v852_v36 = vpop.f32.mrb[10].mxu0  ;;  %v1040_v37 = vpop.f32.mrb[10].mxu1  ;;  %v860_v46 = vmax.f32 %v1682_v34, %v1684_v35  ;;  %v1048_v50 = vmax.f32 %v1691_v43, %v1693_v45 }
 0x104   : > { %v854_v40 = vpop.f32.mrb[11].mxu0  ;;  %v1042_v41 = vpop.f32.mrb[11].mxu1  ;;  %v1698_v47 = vadd.f32 %v852_v36, %v1630_v44  ;;  %v1705_v38 = vadd.f32 %v1040_v37, %v951_v63 }
 0x105   : > { %1046 = vmax.xlane.f32.xlu1 %v1045_v39  ;;  %v1701_v48 = vadd.f32 %v854_v40, %v1630_v44  ;;  %v1707_v51 = vadd.f32 %v1042_v41, %v951_v63 }
 0x106   : > { %v863_v55 = vsel %vm486_vm2, %v1698_v47, -inf  ;;  %v1051_v57 = vsel %vm486_vm2, %v1705_v38, -inf }
 0x107   : > { %v864_v56 = vsel %vm486_vm2, %v1701_v48, -inf  ;;  %v1052_v59 = vsel %vm486_vm2, %v1707_v51, -inf }
 0x108   : > { %v865_v44 = vmax.f32 %v863_v55, %v864_v56  ;;  %v1053_v60 = vmax.f32 %v1051_v57, %v1052_v59 }
 0x109   : > { %861 = vmax.xlane.f32.xlu1 %v860_v46 }
 0x10d   : > { %1049 = vmax.xlane.f32.xlu1 %v1048_v50 }
 0x111   : > { %866 = vmax.xlane.f32.xlu1 %v865_v44 }
 0x115   : > { %1054 = vmax.xlane.f32.xlu1 %v1053_v60 }
 0x182   : > { %v482_v63 = vpop.xlane.xlu1 %481 }
 0x183   : > { %v1737_v3 = vmax.f32 %v1734_v62, %v482_v63 }
 0x185   : > { %v495_v0 = vsub.f32 %v1734_v62, %v1737_v3  ;;  %509 = vperm.xlu1 %1408, %v1737_v3  }
 0x186   : > { %v485_v5 = vpop.xlane.xlu0 %484  ;;  %v671_v6 = vpop.xlane.xlu1 %670 }
 0x187   : > { %v1746_v8 = vmax.f32 %v1740_v4, %v485_v5  ;;  %v1749_v9 = vmax.f32 %v1737_v3, %v671_v6 }
 0x189   : > { %v496_v13 = vsub.f32 %v1740_v4, %v1746_v8  ;;  %v683_v14 = vsub.f32 %v1737_v3, %v1749_v9  ;;  %514 = vperm.xlu0 %1407, %v1746_v8   ;;  %697 = vperm.xlu1 %1408, %v1749_v9  }
 0x18a   : > { %v674_v16 = vpop.xlane.xlu1 %673 }
 0x18b   : > { %v1761_v17 = vmax.f32 %v1746_v8, %v674_v16  ;;  %v491_v19 = vpop.xlane.xlu0 %490 }
 0x18c   : > { %v1764_v20 = vmax.f32 %v1758_v15, %v491_v19 }
 0x18d   : > { %v684_v21 = vsub.f32 %v1746_v8, %v1761_v17  ;;  %702 = vperm.xlu0 %1407, %v1761_v17  }
 0x18e   : > { %v497_v23 = vsub.f32 %v1758_v15, %v1764_v20  ;;  %519 = vperm.xlu1 %1408, %v1764_v20   ;;  %v859_v24 = vpop.xlane.xlu1 %858 }
 0x18f   : > { %v1773_v25 = vmax.f32 %v1749_v9, %v859_v24  ;;  %v679_v28 = vpop.xlane.xlu0 %678  ;;  %v688_v3 = vmul.f32 1.442695, %v684_v21 }
 0x190   : > { %v1776_v29 = vmax.f32 %v1764_v20, %v679_v28 }
 0x191   : > { %v871_v30 = vsub.f32 %v1749_v9, %v1773_v25 }
 0x192   : > { %v685_v31 = vsub.f32 %v1764_v20, %v1776_v29  ;;  %707 = vperm.xlu1 %1408, %v1776_v29   ;;  %v1047_v32 = vpop.xlane.xlu1 %1046  ;;  %v364_v20 = vld [vmem:[%s1718_s10 + $0x8] sm:$0xff] }
 0x193   : > { %v1784_v33 = vmax.f32 %v1773_v25, %v1047_v32 }
 0x195   : > { %v1059_v36 = vsub.f32 %v1773_v25, %v1784_v33  ;;  %1119 = vst.msk [vmem:[%s1622_s7] sm:$0xff] %vm344_vm1, %v1784_v33 }
 0x196   : > { %885 = vperm.xlu1 %1408, %v1773_v25   ;;  %v862_v37 = vpop.xlane.xlu1 %861 }
 0x197   : > { %v1793_v39 = vmax.f32 %v1761_v17, %v862_v37 }
 0x199   : > { %v872_v40 = vsub.f32 %v1761_v17, %v1793_v39 }
 0x19a   : > { %890 = vperm.xlu1 %1408, %v1793_v39   ;;  %v1050_v41 = vpop.xlane.xlu1 %1049 }
 0x19b   : > { %v1799_v42 = vmax.f32 %v1793_v39, %v1050_v41  ;;  %v876_v9 = vmul.f32 1.442695, %v872_v40  ;;  %v365_v40 = vld [vmem:[%s1718_s10 + $0x10] sm:$0xf] }
 0x19d   : > { %1120 = vst.msk [vmem:[%s1622_s7 + $0x8] sm:$0xff] %vm344_vm1, %v1799_v42 }
 0x19e   : > { %v867_v46 = vpop.xlane.xlu1 %866 }
 0x19f   : > { %v1805_v50 = vmax.f32 %v1776_v29, %v867_v46 }
 0x1a1   : > { %v873_v55 = vsub.f32 %v1776_v29, %v1805_v50  ;;  %895 = vperm.xlu0 %1407, %v1805_v50  }
 0x1a2   : > { %v1055_v56 = vpop.xlane.xlu1 %1054 }
 0x1a3   : > { %v1811_v44 = vmax.f32 %v1805_v50, %v1055_v56  ;;  %v878_v8 = vmul.f32 1.442695, %v873_v55 }
 0x1a5   : > { %1122 = vst.msk [vmem:[%s1622_s7 + $0x10] sm:$0xf] %vm347_vm3, %v1811_v44  ;;  %1073 = vperm.xlu0 %1407, %v1784_v33   ;;  %1083 = vperm.xlu1 %1408, %v1811_v44  }
 0x204   : > { %v510_v59 = vpop.permute.xlu1 %509 }
 0x205   : > { %v522_v60 = vsub.f32 %v1632_v49, %v510_v59  ;;  %v523_v63 = vsub.f32 %v1634_v52, %v510_v59 }
 0x207   : > { %v528_v5 = vmul.f32 1.442695, %v522_v60  ;;  %v530_v6 = vmul.f32 1.442695, %v523_v63 }
 0x208   : > { %v515_v16 = vpop.permute.xlu0 %514  ;;  %v698_v19 = vpop.permute.xlu1 %697 }
 0x209   : > { %1409 = vpow2.f32 %v528_v5  ;;  %v524_v24 = vsub.f32 %v1642_v58, %v515_v16  ;;  %v525_v28 = vsub.f32 %v1644_v61, %v515_v16  ;;  %v710_v32 = vsub.f32 %v1636_v53, %v698_v19 }
 0x20a   : > { %1411 = vpow2.f32 %v530_v6  ;;  %v711_v37 = vsub.f32 %v1638_v54, %v698_v19 }
 0x20b   : > { %v532_v41 = vmul.f32 1.442695, %v524_v24  ;;  %v534_v46 = vmul.f32 1.442695, %v525_v28  ;;  %v716_v56 = vmul.f32 1.442695, %v710_v32 }
 0x20c   : > { %v718_v49 = vmul.f32 1.442695, %v711_v37  ;;  %v703_v57 = vpop.permute.xlu0 %702 }
 0x20d   : > { %1413 = vpow2.f32 %v532_v41  ;;  %v712_v52 = vsub.f32 %v1646_v1, %v703_v57  ;;  %v713_v59 = vsub.f32 %v1648_v2, %v703_v57  ;;  %v520_v60 = vpop.permute.xlu1 %519 }
 0x20e   : > { %1415 = vpow2.f32 %v534_v46  ;;  %v526_v58 = vsub.f32 %v1654_v7, %v520_v60  ;;  %v527_v61 = vsub.f32 %v1658_v11, %v520_v60 }
 0x20f   : > { %1417 = vpow2.f32 %v716_v56  ;;  %v720_v53 = vmul.f32 1.442695, %v712_v52  ;;  %v722_v63 = vmul.f32 1.442695, %v713_v59 }
 0x210   : > { %1419 = vpow2.f32 %v718_v49  ;;  %v536_v54 = vmul.f32 1.442695, %v526_v58  ;;  %v538_v5 = vmul.f32 1.442695, %v527_v61 }
 0x211   : > { %1421 = vpow2.f32 %v720_v53  ;;  %v708_v6 = vpop.permute.xlu1 %707 }
 0x212   : > { %1423 = vpow2.f32 %v722_v63  ;;  %v714_v16 = vsub.f32 %v1656_v10, %v708_v6  ;;  %v715_v1 = vsub.f32 %v1660_v12, %v708_v6 }
 0x213   : > { %v1410_v2 = vpop.eup %1409  ;;  %1425 = vpow2.f32 %v536_v54 }
 0x214   : > { %v1412_v57 = vpop.eup %1411  ;;  %1427 = vpow2.f32 %v538_v5  ;;  %v724_v7 = vmul.f32 1.442695, %v714_v16  ;;  %v726_v19 = vmul.f32 1.442695, %v715_v1 }
 0x215   : > { %v886_v11 = vpop.permute.xlu1 %885  ;;  %v540_v24 = vadd.f32 %v1412_v57, %v1410_v2 }
 0x216   : > { %1429 = vpow2.f32 %v724_v7  ;;  %v898_v28 = vsub.f32 %v1668_v18, %v886_v11  ;;  %v899_v32 = vsub.f32 %v1670_v22, %v886_v11 }
 0x217   : > { %v1414_v37 = vpop.eup %1413  ;;  %1431 = vpow2.f32 %v726_v19  ;;  %541 = vadd.xlane.f32.xlu1 %v540_v24 }
 0x218   : > { %v1416_v41 = vpop.eup %1415  ;;  %v904_v10 = vmul.f32 1.442695, %v898_v28  ;;  %v906_v46 = vmul.f32 1.442695, %v899_v32 }
 0x219   : > { %v1418_v12 = vpop.eup %1417  ;;  %v543_v22 = vadd.f32 %v1416_v41, %v1414_v37  ;;  %v891_v54 = vpop.permute.xlu1 %890 }
 0x21a   : > { %v1420_v56 = vpop.eup %1419  ;;  %1433 = vpow2.f32 %v904_v10 }
 0x21b   : > { %v1422_v49 = vpop.eup %1421  ;;  %v728_v52 = vadd.f32 %v1420_v56, %v1418_v12  ;;  %1435 = vpow2.f32 %v906_v46 }
 0x21c   : > { %v1424_v59 = vpop.eup %1423 }
 0x21d   : > { %v1426_v60 = vpop.eup %1425  ;;  %729 = vadd.xlane.f32.xlu1 %v728_v52  ;;  %v731_v58 = vadd.f32 %v1424_v59, %v1422_v49 }
 0x21e   : > { %v1428_v61 = vpop.eup %1427  ;;  %v546_v18 = vsel %vm486_vm2, %v1426_v60, 0.0 }
 0x21f   : > { %732 = vadd.xlane.f32.xlu0 %v731_v58  ;;  %v547_v53 = vsel %vm486_vm2, %v1428_v61, 0.0 }
 0x220   : > { %v1430_v63 = vpop.eup %1429  ;;  %v896_v5 = vpop.permute.xlu0 %895  ;;  %v548_v2 = vadd.f32 %v547_v53, %v546_v18 }
 0x221   : > { %v1432_v6 = vpop.eup %1431  ;;  %544 = vadd.xlane.f32.xlu1 %v543_v22  ;;  %v902_v16 = vsub.f32 %v1698_v47, %v896_v5  ;;  %v903_v1 = vsub.f32 %v1701_v48, %v896_v5  ;;  %v734_v57 = vsel %vm486_vm2, %v1430_v63, 0.0 }
 0x222   : > { %v735_v7 = vsel %vm486_vm2, %v1432_v6, 0.0 }
 0x223   : > { %v912_v19 = vmul.f32 1.442695, %v902_v16  ;;  %549 = vadd.xlane.f32.xlu0 %v548_v2  ;;  %v914_v11 = vmul.f32 1.442695, %v903_v1  ;;  %v736_v47 = vadd.f32 %v735_v7, %v734_v57  ;;  %v900_v16 = vsub.f32 %v1682_v34, %v891_v54 }
 0x224   : > { %v1074_v24 = vpop.permute.xlu0 %1073  ;;  %v1084_v28 = vpop.permute.xlu1 %1083  ;;  %v901_v1 = vsub.f32 %v1684_v35, %v891_v54  ;;  %v686_v34 = vmul.f32 1.442695, %v683_v14  ;;  %v500_v35 = vmul.f32 1.442695, %v496_v13  ;;  %v502_v54 = vmul.f32 1.442695, %v497_v23 }
 0x225   : > { %v1434_v32 = vpop.eup %1433  ;;  %v1086_v37 = vsub.f32 %v1676_v26, %v1074_v24  ;;  %v1087_v41 = vsub.f32 %v1678_v27, %v1074_v24  ;;  %v1090_v10 = vsub.f32 %v1705_v38, %v1084_v28  ;;  %v1091_v48 = vsub.f32 %v1707_v51, %v1084_v28 }
 0x226   : > { %v1436_v46 = vpop.eup %1435  ;;  %1437 = vpow2.f32 %v912_v19  ;;  %v908_v2 = vmul.f32 1.442695, %v900_v16  ;;  %v910_v57 = vmul.f32 1.442695, %v901_v1  ;;  %v498_v24 = vmul.f32 1.442695, %v495_v0 }
 0x227   : > { %v1092_v12 = vmul.f32 1.442695, %v1086_v37  ;;  %v1094_v56 = vmul.f32 1.442695, %v1087_v41  ;;  %737 = vadd.xlane.f32.xlu0 %v736_v47  ;;  %1439 = vpow2.f32 %v914_v11  ;;  %v1100_v49 = vmul.f32 1.442695, %v1090_v10 }
 0x228   : > { %v1102_v52 = vmul.f32 1.442695, %v1091_v48  ;;  %v916_v59 = vadd.f32 %v1436_v46, %v1434_v32  ;;  %v874_v28 = vmul.f32 1.442695, %v871_v30  ;;  %v363_v0 = vld [vmem:[%s1718_s10] sm:$0xff] }
 0x229   : > { %1441 = vpow2.f32 %v1092_v12  ;;  %v690_v13 = vmul.f32 1.442695, %v685_v31  ;;  %v1062_v10 = vmul.f32 1.442695, %v1059_v36 }
 0x22a   : > { %1443 = vpow2.f32 %v1094_v56 }
 0x22b   : > { %917 = vadd.xlane.f32.xlu0 %v916_v59  ;;  %1445 = vpow2.f32 %v1100_v49 }
 0x22c   : > { %1447 = vpow2.f32 %v1102_v52 }
 0x22d   : > { %1449 = vpow2.f32 %v908_v2 }
 0x22e   : > { %1451 = vpow2.f32 %v910_v57 }
 0x22f   : > { %1453 = vpow2.f32 %v498_v24 }
 0x230   : > { %v1438_v26 = vpop.eup %1437  ;;  %1455 = vpow2.f32 %v686_v34 }
 0x231   : > { %v1440_v27 = vpop.eup %1439  ;;  %v922_v61 = vsel %vm486_vm2, %v1438_v26, 0.0  ;;  %1457 = vpow2.f32 %v500_v35 }
 0x232   : > { %1078 = vperm.xlu1 %1408, %v1799_v42   ;;  %v923_v18 = vsel %vm486_vm2, %v1440_v27, 0.0  ;;  %1459 = vpow2.f32 %v502_v54 }
 0x233   : > { %v1442_v38 = vpop.eup %1441  ;;  %v924_v53 = vadd.f32 %v923_v18, %v922_v61  ;;  %1461 = vpow2.f32 %v874_v28 }
 0x234   : > { %v1444_v60 = vpop.eup %1443  ;;  %1463 = vpow2.f32 %v688_v3 }
 0x235   : > { %v1104_v51 = vadd.f32 %v1444_v60, %v1442_v38  ;;  %v1446_v58 = vpop.eup %1445  ;;  %1465 = vpow2.f32 %v690_v13 }
 0x236   : > { %v1448_v22 = vpop.eup %1447  ;;  %v1110_v63 = vsel %vm486_vm2, %v1446_v58, 0.0  ;;  %1467 = vpow2.f32 %v876_v9 }
 0x237   : > { %1105 = vadd.xlane.f32.xlu0 %v1104_v51  ;;  %v1111_v5 = vsel %vm486_vm2, %v1448_v22, 0.0  ;;  %v1450_v7 = vpop.eup %1449  ;;  %1469 = vpow2.f32 %v878_v8 }
 0x238   : > { %v1112_v6 = vadd.f32 %v1111_v5, %v1110_v63  ;;  %v1452_v19 = vpop.eup %1451  ;;  %1471 = vpow2.f32 %v1062_v10 }
 0x239   : > { %v919_v11 = vadd.f32 %v1452_v19, %v1450_v7  ;;  %v1454_v62 = vpop.eup %1453 }
 0x23a   : > { %v504_v4 = vmul.f32 %v1454_v62, %v363_v0  ;;  %v1456_v23 = vpop.eup %1455 }
 0x23b   : > { %925 = vadd.xlane.f32.xlu0 %v924_v53  ;;  %v1458_v21 = vpop.eup %1457 }
 0x23c   : > { %v1460_v31 = vpop.eup %1459  ;;  %v505_v47 = vmul.f32 %v1458_v21, %v364_v20 }
 0x23d   : > { %v1462_v41 = vpop.eup %1461  ;;  %v506_v29 = vmul.f32 %v1460_v31, %v365_v40 }
 0x23e   : > { %v1464_v55 = vpop.eup %1463 }
 0x23f   : > { %1113 = vadd.xlane.f32.xlu0 %v1112_v6  ;;  %v1466_v59 = vpop.eup %1465 }
 0x240   : > { %v1468_v38 = vpop.eup %1467 }
 0x241   : > { %v1470_v22 = vpop.eup %1469 }
 0x242   : > { %v1472_v6 = vpop.eup %1471 }
 0x256   : > { %920 = vadd.xlane.f32.xlu1 %v919_v11 }
 0x2a4   : > { %v542_v14 = vpop.xlane.xlu1 %541 }
 0x2a5   : > { %v551_v15 = vadd.f32 %v542_v14, %v504_v4 }
 0x2a7   : > { %v692_v30 = vmul.f32 %v1456_v23, %v551_v15 }
 0x2aa   : > { %v730_v32 = vpop.xlane.xlu1 %729 }
 0x2ab   : > { %v739_v37 = vadd.f32 %v730_v32, %v692_v30 }
 0x2ac   : > { %v733_v17 = vpop.xlane.xlu0 %732 }
 0x2ad   : > { %v880_v46 = vmul.f32 %v1462_v41, %v739_v37 }
 0x2ae   : > { %v545_v48 = vpop.xlane.xlu1 %544 }
 0x2af   : > { %v552_v12 = vadd.f32 %v545_v48, %v505_v47 }
 0x2b0   : > { %v550_v56 = vpop.xlane.xlu0 %549 }
 0x2b1   : > { %v693_v49 = vmul.f32 %v1464_v55, %v552_v12  ;;  %v553_v52 = vadd.f32 %v550_v56, %v506_v29 }
 0x2b2   : > { %v1079_v26 = vpop.permute.xlu1 %1078 }
 0x2b3   : > { %v1088_v27 = vsub.f32 %v1691_v43, %v1079_v26  ;;  %v1089_v25 = vsub.f32 %v1693_v45, %v1079_v26  ;;  %v694_v33 = vmul.f32 %v1466_v59, %v553_v52  ;;  %v740_v36 = vadd.f32 %v733_v17, %v693_v49 }
 0x2b4   : > { %v738_v60 = vpop.xlane.xlu0 %737  ;;  %v1911_v43 = vsub.f32 %v1805_v50, %v1811_v44  ;;  %v1060_v50 = vsub.f32 %v1793_v39, %v1799_v42 }
 0x2b5   : > { %v1096_v51 = vmul.f32 1.442695, %v1088_v27  ;;  %v1098_v58 = vmul.f32 1.442695, %v1089_v25  ;;  %v741_v61 = vadd.f32 %v738_v60, %v694_v33  ;;  %v881_v18 = vmul.f32 %v1468_v38, %v740_v36 }
 0x2b6   : > { %v1066_v45 = vmul.f32 1.442695, %v1911_v43  ;;  %v1064_v44 = vmul.f32 1.442695, %v1060_v50 }
 0x2b7   : > { %1473 = vpow2.f32 %v1096_v51  ;;  %v882_v53 = vmul.f32 %v1470_v22, %v741_v61 }
 0x2b8   : > { %1475 = vpow2.f32 %v1098_v58  ;;  %v918_v63 = vpop.xlane.xlu0 %917 }
 0x2b9   : > { %v927_v5 = vadd.f32 %v918_v63, %v880_v46  ;;  %1477 = vpow2.f32 %v1066_v45 }
 0x2ba   : > { %1479 = vpow2.f32 %v1064_v44 }
 0x2bb   : > { %v1068_v16 = vmul.f32 %v1472_v6, %v927_v5 }
 0x2c1   : > { %v1474_v1 = vpop.eup %1473 }
 0x2c2   : > { %v1476_v2 = vpop.eup %1475 }
 0x2c3   : > { %v1107_v57 = vadd.f32 %v1476_v2, %v1474_v1  ;;  %v1478_v34 = vpop.eup %1477 }
 0x2c4   : > { %v1106_v7 = vpop.xlane.xlu0 %1105  ;;  %v1480_v3 = vpop.eup %1479 }
 0x2c5   : > { %1108 = vadd.xlane.f32.xlu1 %v1107_v57  ;;  %v1115_v19 = vadd.f32 %v1106_v7, %v1068_v16 }
 0x2c7   : > { %1123 = vst.msk [vmem:[%s1718_s10] sm:$0xff] %vm344_vm1, %v1115_v19 }
 0x2c8   : > { %v926_v11 = vpop.xlane.xlu0 %925 }
 0x2c9   : > { %v929_v24 = vadd.f32 %v926_v11, %v882_v53 }
 0x2cb   : > { %v1070_v35 = vmul.f32 %v1478_v34, %v929_v24 }
 0x2cc   : > { %v1114_v54 = vpop.xlane.xlu0 %1113 }
 0x2cd   : > { %v1117_v28 = vadd.f32 %v1114_v54, %v1070_v35 }
 0x2cf   : > { %1125 = vst.msk [vmem:[%s1718_s10 + $0x10] sm:$0xf] %vm347_vm3, %v1117_v28 }
 0x2e3   : > { %v921_v62 = vpop.xlane.xlu1 %920 }
 0x2e4   : > { %v928_v0 = vadd.f32 %v921_v62, %v881_v18 }
 0x2e6   : > { %v1069_v4 = vmul.f32 %v1480_v3, %v928_v0 }
 0x352   : > { %v1109_v13 = vpop.xlane.xlu1 %1108 }
 0x353   : > { %v1116_v14 = vadd.f32 %v1109_v13, %v1069_v4 }
 0x355   : > { %1124 = vst.msk [vmem:[%s1718_s10 + $0x8] sm:$0xff] %vm344_vm1, %v1116_v14 }
 0x356 PF: > { %s15_s17 = sadd.s32 1, %s1503_s17   ;;  %s1912_s15 = smov %s1499_s16 }
 0x357   : > { %p12_p5 = scmp.ge.s32.totalorder %s15_s17, 4   ;;  %s1913_s16 = smov %s1915_s18 }
 0x359   :  { %14 = sbr.rel (!%p12_p5) target bundleno = 2 (0x2), region = 90 }

// kernel: _forward_impl.11
= control target key start
LH: loop header
LB: loop body
LE: loop exit
PB: predicated region body
PF: predicated region fallthrough
CT: control target
= control target key end

     0   :  { %s1011_s15 = smov 0   ;;  %s1013_s16 = smov 0   ;;  %s1115_s0 = inlined_call_operand.vmem [shape: f32[2,80,32], index: 0, kind: input, shape index: {}]   ;;  %s1116_s1 = inlined_call_operand.vmem [shape: f32[2,80,1], index: 1, kind: input, shape index: {}]   ;;  %s1117_s2 = inlined_call_operand.vmem [shape: f32[2,80,1], index: 2, kind: input, shape index: {}]   ;;  %s1118_s3 = inlined_call_operand.vmem [shape: f32[2,32,63], index: 3, kind: input, shape index: {}]   ;;  %s1119_s4 = inlined_call_operand.vmem [shape: f32[2,80,63], index: 4, kind: output, shape index: {}]  }
   0x1   :  { %s1015_s17 = smov 0  }
   0x2 LB: > { %s33_s18 = sadd.s32 1, %s979_s16  ;;  %p844_p0 = scmp.ge.s32.totalorder %s983_s17, 1  ;;  %s983_s17 = sphi %s1015_s17, %s14_s17   ;;  %s979_s16 = sphi %s1013_s16, %s1121_s16   ;;  %s975_s15 = sphi %s1011_s15, %s1120_s15  }
   0x3   : > { %p35_p1 = scmp.ge.s32.totalorder %s33_s18, 2  ;;  %p241_p2 = scmp.lt.s32.totalorder %s983_s17, 3 }
   0x5   : > { %s1123_s18 = smov (%p35_p1, %s33_s18), 0  ;;  %p242_p3 = pnand %p844_p0, %p241_p2 }
   0x6   : > { %p305_p4 = scmp.lt.s32.totalorder (!%p242_p3), %s975_s15, 1  ;;  %v985_v0 = vmov (!%p242_p3), 0   ;;  %vm369_vm0 = vcmask (!%p242_p3), 261120   ;;  %vm675_vm1 = vcmask (!%p242_p3), 515072  }
   0x7   : > { %245 = sbr.rel (%p242_p3) target bundleno = 267 (0x10b), region = 36  ;;  %940 = vset.pattern.permute.xlu1 (!%p242_p3), %v985_v0  ;;  %939 = vset.pattern.permute.xlu0 (!%p242_p3), %v985_v0 }
   0xe   : > { %s1125_s15 = smov (!%p305_p4, %s975_s15), 1 }
   0xf   : > { %s1029_s19 = smul.u32 80, %s1125_s15  ;;  %s863_s20 = sshll.u32 %s1125_s15, 5 }
  0x10   : > { %s341_s23 = scalar_lea.vmem %s1118_s3, %s863_s20 }
  0x11   : > { %s1038_s26 = scalar_lea.vmem %s1115_s0, %s1029_s19  ;;  %v365_v1 = vld [vmem:[%s341_s23] sm:$0xff]  ;;  %v366_v2 = vld [vmem:[%s341_s23 + $0x8] sm:$0xff]  ;;  %v367_v3 = vld [vmem:[%s341_s23 + $0x10] sm:$0xff]  ;;  %s1044_s29 = scalar_lea.vmem %s1116_s1, %s1029_s19 }
  0x12   : > { %v901_v4 = vpack.c.bf16 %v366_v2, %v365_v1  ;;  %v368_v5 = vld [vmem:[%s341_s23 + $0x18] sm:$0xff]  ;;  %v355_v6 = vld [vmem:[%s1038_s26] sm:$0xff]  ;;  %v361_v7 = vld [vmem:[%s1038_s26 + $0x30] sm:$0xff]  ;;  %s332_s6 = scalar_lea.vmem %s1117_s2, %s1029_s19  ;;  %s1084_s9 = scalar_lea.vmem %s1119_s4, %s1029_s19 }
  0x13   : > { %v905_v8 = vpack.c.bf16 %v368_v5, %v367_v3  ;;  %886 = vmatprep.mubr.msk.f32.mxu0 %vm369_vm0, %v355_v6  ;;  %895 = vmatprep.mubr.msk.f32.mxu1 %vm369_vm0, %v361_v7  ;;  %v517_v9 = vld [vmem:[%s1044_s29 + $0x10] sm:$0xff]  ;;  %v515_v10 = vld [vmem:[%s1044_s29] sm:$0xff]  ;;  %v518_v11 = vld [vmem:[%s1044_s29 + $0x18] sm:$0xff] }
  0x14   : > { %902 = vmatprep.subr.bf16.mxu0 %v901_v4  ;;  %909 = vmatprep.subr.bf16.mxu1 %v901_v4  ;;  %v516_v12 = vld [vmem:[%s1044_s29 + $0x8] sm:$0xff]  ;;  %v362_v14 = vld [vmem:[%s1038_s26 + $0x38] sm:$0xff]  ;;  %v357_v15 = vld [vmem:[%s1038_s26 + $0x10] sm:$0xff] }
  0x15   : > { %904 = vmatpush3.bf16.msra.mxu0 %v901_v4  ;;  %911 = vmatpush3.bf16.msra.mxu1 %v901_v4  ;;  %v356_v13 = vld [vmem:[%s1038_s26 + $0x8] sm:$0xff]  ;;  %v363_v16 = vld [vmem:[%s1038_s26 + $0x40] sm:$0xff]  ;;  %v358_v19 = vld [vmem:[%s1038_s26 + $0x18] sm:$0xff] }
  0x16   : > { %906 = vmatprep.subr.bf16.mxu0 %v905_v8  ;;  %910 = vmatprep.subr.bf16.mxu1 %v905_v8  ;;  %v520_v17 = vld [vmem:[%s1044_s29 + $0x28] sm:$0xff]  ;;  %v519_v18 = vld [vmem:[%s1044_s29 + $0x20] sm:$0xff]  ;;  %v522_v22 = vld [vmem:[%s1044_s29 + $0x38] sm:$0xff] }
  0x17   : > { %537 = vperm.xlu1 %940, %v517_v9   ;;  %527 = vperm.xlu0 %939, %v515_v10   ;;  %v364_v20 = vld [vmem:[%s1038_s26 + $0x48] sm:$0xff]  ;;  %v359_v21 = vld [vmem:[%s1038_s26 + $0x20] sm:$0xff]  ;;  %v521_v23 = vld [vmem:[%s1044_s29 + $0x30] sm:$0xff] }
  0x18   : > { %v360_v24 = vld [vmem:[%s1038_s26 + $0x28] sm:$0xff]  ;;  %v523_v26 = vld [vmem:[%s1044_s29 + $0x40] sm:$0xff]  ;;  %v608_v29 = vld [vmem:[%s332_s6 + $0x18] sm:$0xff] }
  0x19   : > { %908 = vmatpush3.bf16.msra.mxu0 %v905_v8  ;;  %912 = vmatpush3.bf16.msra.mxu1 %v905_v8  ;;  %v524_v25 = vld [vmem:[%s1044_s29 + $0x48] sm:$0xff]  ;;  %v605_v28 = vld [vmem:[%s332_s6] sm:$0xff]  ;;  %v607_v30 = vld [vmem:[%s332_s6 + $0x10] sm:$0xff] }
  0x1a   : > { %v606_v27 = vld [vmem:[%s332_s6 + $0x8] sm:$0xff]  ;;  %v609_v32 = vld [vmem:[%s332_s6 + $0x20] sm:$0xff]  ;;  %v612_v33 = vld [vmem:[%s332_s6 + $0x38] sm:$0xff] }
  0x1b   : > { %542 = vperm.xlu1 %940, %v518_v11   ;;  %532 = vperm.xlu0 %939, %v516_v12   ;;  %v610_v31 = vld [vmem:[%s332_s6 + $0x28] sm:$0xff]  ;;  %v611_v34 = vld [vmem:[%s332_s6 + $0x30] sm:$0xff]  ;;  %v613_v36 = vld [vmem:[%s332_s6 + $0x40] sm:$0xff] }
  0x1c   : > { %887 = vmatmul.mubr.msk.f32.vlgmr.msra.gmra.mrb[0].mxu0 %vm369_vm0, %v356_v13  ;;  %896 = vmatmul.mubr.msk.f32.vlgmr.msra.gmra.mrb[0].mxu1 %vm369_vm0, %v362_v14  ;;  %v614_v35 = vld [vmem:[%s332_s6 + $0x48] sm:$0xff] }
  0x1d   : > { %889 = vmatprep.mubr.msk.f32.mxu0 %vm369_vm0, %v357_v15  ;;  %898 = vmatprep.mubr.msk.f32.mxu1 %vm369_vm0, %v363_v16 }
  0x1f   : > { %552 = vperm.xlu1 %940, %v520_v17   ;;  %547 = vperm.xlu0 %939, %v519_v18  }
  0x20   : > { %890 = vmatmul.mubr.msk.f32.gmra.mrb[2].mxu0 %vm369_vm0, %v358_v19  ;;  %899 = vmatmul.mubr.msk.f32.gmra.mrb[2].mxu1 %vm369_vm0, %v364_v20 }
  0x21   : > { %892 = vmatprep.mubr.msk.f32.mxu0 %vm369_vm0, %v359_v21 }
  0x23   : > { %562 = vperm.xlu1 %940, %v522_v22   ;;  %557 = vperm.xlu0 %939, %v521_v23  }
  0x24   : > { %893 = vmatmul.mubr.msk.f32.gmra.mrb[4].mxu0 %vm369_vm0, %v360_v24 }
  0x27   : > { %572 = vperm.xlu1 %940, %v524_v25   ;;  %567 = vperm.xlu0 %939, %v523_v26  }
  0x2b   : > { %622 = vperm.xlu1 %940, %v606_v27   ;;  %617 = vperm.xlu0 %939, %v605_v28  }
  0x2f   : > { %632 = vperm.xlu1 %940, %v608_v29   ;;  %627 = vperm.xlu0 %939, %v607_v30  }
  0x33   : > { %642 = vperm.xlu1 %940, %v610_v31   ;;  %637 = vperm.xlu0 %939, %v609_v32  }
  0x37   : > { %652 = vperm.xlu1 %940, %v612_v33   ;;  %647 = vperm.xlu0 %939, %v611_v34  }
  0x3b   : > { %662 = vperm.xlu1 %940, %v614_v35   ;;  %657 = vperm.xlu0 %939, %v613_v36  }
  0x96   : > { %v538_v37 = vpop.permute.xlu1 %537  ;;  %v528_v38 = vpop.permute.xlu0 %527 }
  0x9a   : > { %v543_v39 = vpop.permute.xlu1 %542  ;;  %v533_v40 = vpop.permute.xlu0 %532 }
  0x9e   : > { %v553_v41 = vpop.permute.xlu1 %552  ;;  %v548_v42 = vpop.permute.xlu0 %547 }
  0xa2   : > { %v563_v43 = vpop.permute.xlu1 %562  ;;  %v558_v44 = vpop.permute.xlu0 %557 }
  0xa6   : > { %v573_v45 = vpop.permute.xlu1 %572  ;;  %v568_v46 = vpop.permute.xlu0 %567 }
  0xaa   : > { %v623_v47 = vpop.permute.xlu1 %622  ;;  %v618_v48 = vpop.permute.xlu0 %617 }
  0xae   : > { %v633_v55 = vpop.permute.xlu1 %632  ;;  %v628_v58 = vpop.permute.xlu0 %627 }
  0xb2   : > { %v643_v9 = vpop.permute.xlu1 %642  ;;  %v638_v15 = vpop.permute.xlu0 %637 }
  0xb6   : > { %v653_v19 = vpop.permute.xlu1 %652  ;;  %v648_v22 = vpop.permute.xlu0 %647 }
  0xba   : > { %v663_v31 = vpop.permute.xlu1 %662  ;;  %v658_v36 = vpop.permute.xlu0 %657 }
  0xef   : > { %v888_v49 = vpop.f32.mrb[0].mxu0  ;;  %v897_v50 = vpop.f32.mrb[0].mxu1 }
  0xf0   : > { %v576_v51 = vsub.f32 %v888_v49, %v533_v40  ;;  %v582_v52 = vsub.f32 %v897_v50, %v563_v43  ;;  %v466_v53 = vpop.f32.mrb[1].mxu0  ;;  %v496_v54 = vpop.f32.mrb[1].mxu1 }
  0xf1   : > { %v575_v56 = vsub.f32 %v466_v53, %v528_v38  ;;  %v581_v57 = vsub.f32 %v496_v54, %v558_v44 }
  0xf2   : > { %v587_v59 = vmul.f32 1.442695, %v576_v51  ;;  %v599_v60 = vmul.f32 1.442695, %v582_v52 }
  0xf3   : > { %v585_v61 = vmul.f32 1.442695, %v575_v56  ;;  %v597_v62 = vmul.f32 1.442695, %v581_v57  ;;  %v891_v63 = vpop.f32.mrb[2].mxu0  ;;  %v900_v0 = vpop.f32.mrb[2].mxu1 }
  0xf4   : > { %941 = vpow2.f32 %v587_v59  ;;  %v578_v1 = vsub.f32 %v891_v63, %v543_v39  ;;  %v584_v2 = vsub.f32 %v900_v0, %v573_v45  ;;  %v476_v3 = vpop.f32.mrb[3].mxu0  ;;  %v506_v4 = vpop.f32.mrb[3].mxu1 }
  0xf5   : > { %943 = vpow2.f32 %v599_v60  ;;  %v577_v5 = vsub.f32 %v476_v3, %v538_v37  ;;  %v583_v6 = vsub.f32 %v506_v4, %v568_v46 }
  0xf6   : > { %945 = vpow2.f32 %v585_v61  ;;  %v591_v7 = vmul.f32 1.442695, %v578_v1  ;;  %v603_v8 = vmul.f32 1.442695, %v584_v2 }
  0xf7   : > { %947 = vpow2.f32 %v597_v62  ;;  %v589_v10 = vmul.f32 1.442695, %v577_v5  ;;  %v601_v11 = vmul.f32 1.442695, %v583_v6  ;;  %v894_v12 = vpop.f32.mrb[4].mxu0 }
  0xf8   : > { %949 = vpow2.f32 %v591_v7  ;;  %v580_v13 = vsub.f32 %v894_v12, %v553_v41  ;;  %v486_v14 = vpop.f32.mrb[5].mxu0 }
  0xf9   : > { %951 = vpow2.f32 %v603_v8  ;;  %v579_v16 = vsub.f32 %v486_v14, %v548_v42 }
  0xfa   : > { %953 = vpow2.f32 %v589_v10  ;;  %v595_v17 = vmul.f32 1.442695, %v580_v13 }
  0xfb   : > { %955 = vpow2.f32 %v601_v11  ;;  %v593_v18 = vmul.f32 1.442695, %v579_v16 }
  0xfc   : > { %957 = vpow2.f32 %v595_v17 }
  0xfd   : > { %959 = vpow2.f32 %v593_v18 }
  0xfe   : > { %v942_v20 = vpop.eup %941 }
  0xff   : > { %v944_v21 = vpop.eup %943  ;;  %v666_v23 = vmul.f32 %v942_v20, %v623_v47 }
 0x100   : > { %v946_v24 = vpop.eup %945  ;;  %v672_v25 = vmul.f32 %v944_v21, %v653_v19 }
 0x101   : > { %v948_v26 = vpop.eup %947  ;;  %677 = vst.msk [vmem:[%s1084_s9 + $0x8] sm:$0xff] %vm675_vm1, %v666_v23  ;;  %v665_v27 = vmul.f32 %v946_v24, %v618_v48 }
 0x102   : > { %v950_v28 = vpop.eup %949  ;;  %683 = vst.msk [vmem:[%s1084_s9 + $0x38] sm:$0xff] %vm675_vm1, %v672_v25  ;;  %v671_v29 = vmul.f32 %v948_v26, %v648_v22 }
 0x103   : > { %v952_v30 = vpop.eup %951  ;;  %676 = vst.msk [vmem:[%s1084_s9] sm:$0xff] %vm675_vm1, %v665_v27  ;;  %v668_v32 = vmul.f32 %v950_v28, %v633_v55 }
 0x104   : > { %v954_v33 = vpop.eup %953  ;;  %682 = vst.msk [vmem:[%s1084_s9 + $0x30] sm:$0xff] %vm675_vm1, %v671_v29  ;;  %v674_v34 = vmul.f32 %v952_v30, %v663_v31 }
 0x105   : > { %v956_v35 = vpop.eup %955  ;;  %679 = vst.msk [vmem:[%s1084_s9 + $0x18] sm:$0xff] %vm675_vm1, %v668_v32  ;;  %v667_v37 = vmul.f32 %v954_v33, %v628_v58 }
 0x106   : > { %v958_v38 = vpop.eup %957  ;;  %685 = vst.msk [vmem:[%s1084_s9 + $0x48] sm:$0xff] %vm675_vm1, %v674_v34  ;;  %v673_v39 = vmul.f32 %v956_v35, %v658_v36 }
 0x107   : > { %v960_v40 = vpop.eup %959  ;;  %678 = vst.msk [vmem:[%s1084_s9 + $0x10] sm:$0xff] %vm675_vm1, %v667_v37  ;;  %v670_v41 = vmul.f32 %v958_v38, %v643_v9 }
 0x108   : > { %684 = vst.msk [vmem:[%s1084_s9 + $0x40] sm:$0xff] %vm675_vm1, %v673_v39  ;;  %v669_v42 = vmul.f32 %v960_v40, %v638_v15 }
 0x109   : > { %681 = vst.msk [vmem:[%s1084_s9 + $0x28] sm:$0xff] %vm675_vm1, %v670_v41 }
 0x10a   : > { %680 = vst.msk [vmem:[%s1084_s9 + $0x20] sm:$0xff] %vm675_vm1, %v669_v42 }
 0x10b PF: > { %s14_s17 = sadd.s32 1, %s983_s17   ;;  %s1120_s15 = smov %s979_s16 }
 0x10c   : > { %p11_p5 = scmp.ge.s32.totalorder %s14_s17, 4   ;;  %s1121_s16 = smov %s1123_s18 }
 0x10e   :  { %13 = sbr.rel (!%p11_p5) target bundleno = 2 (0x2), region = 75 }

// kernel: _forward_impl.10
= control target key start
LH: loop header
LB: loop body
LE: loop exit
PB: predicated region body
PF: predicated region fallthrough
CT: control target
= control target key end

     0   :  { %s1529_s15 = smov 0   ;;  %s1531_s16 = smov 0   ;;  %s1867_s0 = inlined_call_operand.vmem [shape: f32[2,4,20,32], index: 0, kind: input, shape index: {}]   ;;  %s1868_s1 = inlined_call_operand.vmem [shape: f32[2,4,20,1], index: 1, kind: input, shape index: {}]   ;;  %s1869_s2 = inlined_call_operand.vmem [shape: f32[2,32,63], index: 2, kind: input, shape index: {}]   ;;  %s1870_s3 = inlined_call_operand.vmem [shape: f32[2,20,1], index: 3, kind: output, shape index: {0}]   ;;  %s1871_s4 = inlined_call_operand.vmem [shape: f32[2,20,1], index: 4, kind: output, shape index: {1}]  }
   0x1   :  { %s1533_s17 = smov 0  }
   0x2 LB: > { %s34_s18 = sadd.s32 1, %s1493_s16  ;;  %p1234_p0 = scmp.ge.s32.totalorder %s1497_s17, 1  ;;  %s1497_s17 = sphi %s1533_s17, %s15_s17   ;;  %s1493_s16 = sphi %s1531_s16, %s1873_s16   ;;  %s1489_s15 = sphi %s1529_s15, %s1872_s15  }
   0x3   : > { %p36_p1 = scmp.ge.s32.totalorder %s34_s18, 2  ;;  %p227_p2 = scmp.lt.s32.totalorder %s1497_s17, 3 }
   0x5   : > { %s1875_s18 = smov (%p36_p1, %s34_s18), 0  ;;  %p228_p3 = pnand %p1234_p0, %p227_p2 }
   0x6   : > { %p288_p4 = scmp.lt.s32.totalorder (!%p228_p3), %s1489_s15, 1  ;;  %v1499_v0 = vmov (!%p228_p3), 0.0|0.0   ;;  %vm1500_vm0 = vmmov (!%p228_p3), 0   ;;  %v1501_v1 = vmov (!%p228_p3), 0.0   ;;  %v1502_v2 = vmov (!%p228_p3), 0  }
   0x7   : > { %231 = sbr.rel (%p228_p3) target bundleno = 853 (0x355), region = 32  ;;  %1370 = vmatprep.subr.bf16.mxu0 (!%p228_p3), %v1499_v0  ;;  %1376 = vmatprep.subr.bf16.mxu1 (!%p228_p3), %v1499_v0  ;;  %vm378_vm1 = vcmask (!%p228_p3), 261120   ;;  %vm339_vm2 = vcmask (!%p228_p3), 7168   ;;  %v1503_v33 = vmov (!%p228_p3), -inf   ;;  %vm468_vm3 = vcmask (!%p228_p3), 515072  }
   0x8   : > { %1310 = vmatprep.mubr.msk.f32.mxu0 (!%p228_p3), %vm1500_vm0, %v1501_v1  ;;  %1327 = vmatprep.mubr.msk.f32.mxu1 (!%p228_p3), %vm1500_vm0, %v1501_v1  ;;  %vm475_vm4 = vcmask (!%p228_p3), 510976   ;;  %vm342_vm5 = vcmask (!%p228_p3), 3072  }
   0x9   : > { %1425 = vset.pattern.permute.xlu0 (!%p228_p3), %v1502_v2  ;;  %1426 = vset.pattern.permute.xlu1 (!%p228_p3), %v1502_v2 }
   0xe   : > { %s1877_s15 = smov (!%p288_p4, %s1489_s15), 1 }
   0xf   : > { %s1273_s19 = sshll.u32 %s1877_s15, 5  ;;  %s1394_s23 = smul.u32 96, %s1877_s15 }
  0x10   : > { %s314_s22 = scalar_lea.vmem %s1869_s2, %s1273_s19  ;;  %s1395_s30 = smul.u32 24, %s1877_s15 }
  0x11   : > { %v347_v3 = vld [vmem:[%s314_s22] sm:$0xff]  ;;  %v348_v4 = vld [vmem:[%s314_s22 + $0x8] sm:$0xff]  ;;  %v349_v5 = vld [vmem:[%s314_s22 + $0x10] sm:$0xff]  ;;  %s1561_s26 = scalar_lea.vmem %s1868_s1, %s1394_s23  ;;  %s1566_s29 = scalar_lea.vmem %s1867_s0, %s1394_s23 }
  0x12   : > { %v1371_v6 = vpack.c.bf16 %v348_v4, %v347_v3  ;;  %v350_v7 = vld [vmem:[%s314_s22 + $0x18] sm:$0xff]  ;;  %v360_v9 = vld [vmem:[%s1561_s26] sm:$0xff]  ;;  %v358_v12 = vld [vmem:[%s1566_s29 + $0x8] sm:$0xff]  ;;  %s1630_s7 = scalar_lea.vmem %s1870_s3, %s1395_s30  ;;  %s1685_s10 = scalar_lea.vmem %s1871_s4, %s1395_s30 }
  0x13   : > { %v1374_v8 = vpack.c.bf16 %v350_v7, %v349_v5  ;;  %365 = vperm.xlu0 %1425, %v360_v9   ;;  %v357_v10 = vld [vmem:[%s1566_s29] sm:$0xff]  ;;  %v1244_v11 = vld [vmem:[%s1566_s29 + $0x18] sm:$0xff]  ;;  %v361_v14 = vld [vmem:[%s1561_s26 + $0x8] sm:$0xff]  ;;  %340 = vst.msk [vmem:[%s1630_s7] sm:$0xff] %vm339_vm2, %v1503_v33 }
  0x14   : > { %1372 = vmatpush3.bf16.msra.mxu0 %v1371_v6  ;;  %1378 = vmatpush3.bf16.msra.mxu1 %v1371_v6  ;;  %v1245_v13 = vld [vmem:[%s1566_s29 + $0x20] sm:$0xff]  ;;  %v362_v15 = vld [vmem:[%s1561_s26 + $0x10] sm:$0xf]  ;;  %v1246_v17 = vld [vmem:[%s1566_s29 + $0x28] sm:$0xf]  ;;  %341 = vst.msk [vmem:[%s1630_s7 + $0x8] sm:$0xff] %vm339_vm2, %v1503_v33 }
  0x15   : > { %1373 = vmatprep.subr.bf16.mxu0 %v1499_v0  ;;  %1379 = vmatprep.subr.bf16.mxu1 %v1499_v0  ;;  %v359_v16 = vld [vmem:[%s1566_s29 + $0x10] sm:$0xf]  ;;  %v1247_v18 = vld [vmem:[%s1561_s26 + $0x18] sm:$0xff]  ;;  %v1262_v20 = vld [vmem:[%s1566_s29 + $0x48] sm:$0xff]  ;;  %343 = vst.msk [vmem:[%s1630_s7 + $0x10] sm:$0xf] %vm342_vm5, %v1503_v33 }
  0x16   : > { %375 = vperm.xlu1 %1426, %v362_v15   ;;  %v1253_v19 = vld [vmem:[%s1566_s29 + $0x30] sm:$0xff]  ;;  %v1248_v21 = vld [vmem:[%s1561_s26 + $0x20] sm:$0xff]  ;;  %v1254_v22 = vld [vmem:[%s1566_s29 + $0x38] sm:$0xff]  ;;  %344 = vst.msk [vmem:[%s1685_s10] sm:$0xff] %vm339_vm2, %v1501_v1 }
  0x17   : > { %370 = vperm.xlu0 %1425, %v361_v14   ;;  %v1263_v23 = vld [vmem:[%s1566_s29 + $0x50] sm:$0xff]  ;;  %v1249_v24 = vld [vmem:[%s1561_s26 + $0x28] sm:$0xf]  ;;  %v1255_v25 = vld [vmem:[%s1566_s29 + $0x40] sm:$0xf]  ;;  %345 = vst.msk [vmem:[%s1685_s10 + $0x8] sm:$0xff] %vm339_vm2, %v1501_v1 }
  0x18   : > { %1375 = vmatpush3.bf16.msra.mxu0 %v1374_v8  ;;  %1381 = vmatpush3.bf16.msra.mxu1 %v1374_v8  ;;  %v1264_v26 = vld [vmem:[%s1566_s29 + $0x58] sm:$0xf]  ;;  %v1256_v27 = vld [vmem:[%s1561_s26 + $0x30] sm:$0xff]  ;;  %v1258_v29 = vld [vmem:[%s1561_s26 + $0x40] sm:$0xf] }
  0x19   : > { %1382 = vmatprep.subr.bf16.mxu0 %v1499_v0  ;;  %1388 = vmatprep.subr.bf16.mxu1 %v1499_v0  ;;  %v1257_v28 = vld [vmem:[%s1561_s26 + $0x38] sm:$0xff]  ;;  %v1265_v30 = vld [vmem:[%s1561_s26 + $0x48] sm:$0xff]  ;;  %v1266_v31 = vld [vmem:[%s1561_s26 + $0x50] sm:$0xff]  ;;  %346 = vst.msk [vmem:[%s1685_s10 + $0x10] sm:$0xf] %vm342_vm5, %v1501_v1 }
  0x1a   : > { %v1267_v32 = vld [vmem:[%s1561_s26 + $0x58] sm:$0xf] }
  0x1b   : > { %1311 = vmatmul.mubr.msk.f32.vlgmr.msra.gmra.mrb[0].mxu0 %vm378_vm1, %v357_v10  ;;  %1328 = vmatmul.mubr.msk.f32.vlgmr.msra.gmra.mrb[0].mxu1 %vm378_vm1, %v1244_v11 }
  0x1c   : > { %1313 = vmatprep.mubr.msk.f32.mxu0 %vm1500_vm0, %v1501_v1  ;;  %1330 = vmatprep.mubr.msk.f32.mxu1 %vm1500_vm0, %v1501_v1 }
  0x1d   : > { %1384 = vmatpush3.bf16.msra.mxu0 %v1371_v6  ;;  %1390 = vmatpush3.bf16.msra.mxu1 %v1371_v6 }
  0x1e   : > { %1385 = vmatprep.subr.bf16.mxu0 %v1499_v0  ;;  %1391 = vmatprep.subr.bf16.mxu1 %v1499_v0 }
  0x1f   : > { %1314 = vmatmul.mubr.msk.f32.gmra.mrb[2].mxu0 %vm378_vm1, %v358_v12  ;;  %1331 = vmatmul.mubr.msk.f32.gmra.mrb[2].mxu1 %vm378_vm1, %v1245_v13 }
  0x20   : > { %1316 = vmatprep.mubr.msk.f32.mxu0 %vm1500_vm0, %v1501_v1  ;;  %1333 = vmatprep.mubr.msk.f32.mxu1 %vm1500_vm0, %v1501_v1 }
  0x21   : > { %1387 = vmatpush3.bf16.msra.mxu0 %v1374_v8  ;;  %1393 = vmatpush3.bf16.msra.mxu1 %v1374_v8 }
  0x22   : > { %540 = vperm.xlu0 %1425, %v1247_v18  }
  0x23   : > { %1317 = vmatmul.mubr.msk.f32.gmra.mrb[4].mxu0 %vm378_vm1, %v359_v16  ;;  %1334 = vmatmul.mubr.msk.f32.gmra.mrb[4].mxu1 %vm378_vm1, %v1246_v17 }
  0x24   : > { %1344 = vmatprep.mubr.msk.f32.mxu0 %vm1500_vm0, %v1501_v1  ;;  %1361 = vmatprep.mubr.msk.f32.mxu1 %vm1500_vm0, %v1501_v1 }
  0x26   : > { %545 = vperm.xlu0 %1425, %v1248_v21  }
  0x27   : > { %1345 = vmatmul.mubr.msk.f32.vlgmr.msra.gmra.mrb[6].mxu0 %vm378_vm1, %v1253_v19  ;;  %1362 = vmatmul.mubr.msk.f32.vlgmr.msra.gmra.mrb[6].mxu1 %vm378_vm1, %v1262_v20 }
  0x28   : > { %1347 = vmatprep.mubr.msk.f32.mxu0 %vm1500_vm0, %v1501_v1  ;;  %1364 = vmatprep.mubr.msk.f32.mxu1 %vm1500_vm0, %v1501_v1 }
  0x2a   : > { %550 = vperm.xlu0 %1425, %v1249_v24  }
  0x2b   : > { %1348 = vmatmul.mubr.msk.f32.gmra.mrb[8].mxu0 %vm378_vm1, %v1254_v22  ;;  %1365 = vmatmul.mubr.msk.f32.gmra.mrb[8].mxu1 %vm378_vm1, %v1263_v23 }
  0x2c   : > { %1350 = vmatprep.mubr.msk.f32.mxu0 %vm1500_vm0, %v1501_v1  ;;  %1367 = vmatprep.mubr.msk.f32.mxu1 %vm1500_vm0, %v1501_v1 }
  0x2e   : > { %712 = vperm.xlu0 %1425, %v1256_v27  }
  0x2f   : > { %1351 = vmatmul.mubr.msk.f32.gmra.mrb[10].mxu0 %vm378_vm1, %v1255_v25  ;;  %1368 = vmatmul.mubr.msk.f32.gmra.mrb[10].mxu1 %vm378_vm1, %v1264_v26 }
  0x32   : > { %717 = vperm.xlu0 %1425, %v1257_v28  }
  0x36   : > { %722 = vperm.xlu0 %1425, %v1258_v29  }
  0x3a   : > { %884 = vperm.xlu0 %1425, %v1265_v30  }
  0x3e   : > { %889 = vperm.xlu0 %1425, %v1266_v31   ;;  %v1703_v31 = vld [vmem:[%s1630_s7] sm:$0xff] }
  0x42   : > { %894 = vperm.xlu0 %1425, %v1267_v32  }
  0x92   : > { %v366_v34 = vpop.permute.xlu0 %365 }
  0x95   : > { %v376_v53 = vpop.permute.xlu1 %375 }
  0x96   : > { %v371_v35 = vpop.permute.xlu0 %370 }
  0xa1   : > { %v541_v36 = vpop.permute.xlu0 %540 }
  0xa5   : > { %v546_v37 = vpop.permute.xlu0 %545 }
  0xa9   : > { %v551_v38 = vpop.permute.xlu0 %550 }
  0xad   : > { %v713_v39 = vpop.permute.xlu0 %712 }
  0xb1   : > { %v718_v40 = vpop.permute.xlu0 %717 }
  0xb5   : > { %v723_v54 = vpop.permute.xlu0 %722 }
  0xb9   : > { %v885_v8 = vpop.permute.xlu0 %884 }
  0xbd   : > { %v890_v22 = vpop.permute.xlu0 %889 }
  0xc1   : > { %v895_v27 = vpop.permute.xlu0 %894 }
  0xee   : > { %v454_v41 = vpop.f32.mrb[0].mxu0  ;;  %v628_v42 = vpop.f32.mrb[0].mxu1 }
  0xef   : > { %v1636_v43 = vadd.f32 %v454_v41, %v366_v34  ;;  %v1312_v44 = vpop.f32.mrb[1].mxu0  ;;  %v1329_v45 = vpop.f32.mrb[1].mxu1  ;;  %v1652_v63 = vadd.f32 %v628_v42, %v541_v36  ;;  %v1709_v34 = vld [vmem:[%s1630_s7 + $0x8] sm:$0xff] }
  0xf1   : > { %v469_v46 = vsel %vm468_vm3, %v1636_v43, -inf  ;;  %v642_v10 = vsel %vm468_vm3, %v1652_v63, -inf }
  0xf2   : > { %v633_v47 = vpop.f32.mrb[2].mxu1  ;;  %470 = vmax.xlane.f32.xlu1 %v469_v46  ;;  %v459_v48 = vpop.f32.mrb[2].mxu0 }
  0xf3   : > { %v1640_v49 = vadd.f32 %v633_v47, %v546_v37  ;;  %v1642_v50 = vadd.f32 %v459_v48, %v371_v35  ;;  %v1315_v51 = vpop.f32.mrb[3].mxu0  ;;  %v1332_v52 = vpop.f32.mrb[3].mxu1 }
  0xf5   : > { %v645_v55 = vsel %vm468_vm3, %v1640_v49, -inf  ;;  %v472_v56 = vsel %vm468_vm3, %v1642_v50, -inf }
  0xf6   : > { %v638_v57 = vpop.f32.mrb[4].mxu1  ;;  %646 = vmax.xlane.f32.xlu1 %v645_v55  ;;  %473 = vmax.xlane.f32.xlu0 %v472_v56  ;;  %v464_v58 = vpop.f32.mrb[4].mxu0 }
  0xf7   : > { %v1648_v59 = vadd.f32 %v638_v57, %v551_v38  ;;  %v1650_v60 = vadd.f32 %v464_v58, %v376_v53  ;;  %v1318_v61 = vpop.f32.mrb[5].mxu0  ;;  %v1335_v62 = vpop.f32.mrb[5].mxu1  ;;  %v1718_v38 = vld [vmem:[%s1630_s7 + $0x10] sm:$0xf] }
  0xf9   : > { %v648_v0 = vsel %vm475_vm4, %v1648_v59, -inf  ;;  %v476_v2 = vsel %vm475_vm4, %v1650_v60, -inf }
  0xfa   : > { %v972_v3 = vpop.f32.mrb[6].mxu1  ;;  %649 = vmax.xlane.f32.xlu1 %v648_v0  ;;  %477 = vmax.xlane.f32.xlu0 %v476_v2  ;;  %v800_v4 = vpop.f32.mrb[6].mxu0 }
  0xfb   : > { %v1658_v5 = vadd.f32 %v800_v4, %v713_v39  ;;  %v1346_v6 = vpop.f32.mrb[7].mxu0  ;;  %v1363_v7 = vpop.f32.mrb[7].mxu1  ;;  %v1660_v9 = vadd.f32 %v972_v3, %v885_v8 }
  0xfd   : > { %v814_v11 = vsel %vm468_vm3, %v1658_v5, -inf  ;;  %v986_v17 = vsel %vm468_vm3, %v1660_v9, -inf }
  0xfe   : > { %v977_v12 = vpop.f32.mrb[8].mxu1  ;;  %643 = vmax.xlane.f32.xlu0 %v642_v10  ;;  %815 = vmax.xlane.f32.xlu1 %v814_v11  ;;  %v805_v13 = vpop.f32.mrb[8].mxu0 }
  0xff   : > { %v1349_v14 = vpop.f32.mrb[9].mxu0  ;;  %v1366_v15 = vpop.f32.mrb[9].mxu1  ;;  %v1668_v16 = vadd.f32 %v805_v13, %v718_v40  ;;  %v1672_v23 = vadd.f32 %v977_v12, %v890_v22 }
 0x101   : > { %v817_v24 = vsel %vm468_vm3, %v1668_v16, -inf  ;;  %v989_v26 = vsel %vm468_vm3, %v1672_v23, -inf }
 0x102   : > { %v982_v18 = vpop.f32.mrb[10].mxu1  ;;  %987 = vmax.xlane.f32.xlu1 %v986_v17  ;;  %v810_v19 = vpop.f32.mrb[10].mxu0 }
 0x103   : > { %v1352_v20 = vpop.f32.mrb[11].mxu0  ;;  %v1369_v21 = vpop.f32.mrb[11].mxu1  ;;  %v1676_v25 = vadd.f32 %v810_v19, %v723_v54  ;;  %v1696_v28 = vadd.f32 %v982_v18, %v895_v27 }
 0x105   : > { %v820_v29 = vsel %vm475_vm4, %v1676_v25, -inf  ;;  %v992_v30 = vsel %vm475_vm4, %v1696_v28, -inf }
 0x106   : > { %818 = vmax.xlane.f32.xlu1 %v817_v24 }
 0x10a   : > { %990 = vmax.xlane.f32.xlu1 %v989_v26 }
 0x10e   : > { %821 = vmax.xlane.f32.xlu1 %v820_v29 }
 0x112   : > { %993 = vmax.xlane.f32.xlu1 %v992_v30 }
 0x17f   : > { %v471_v32 = vpop.xlane.xlu1 %470 }
 0x180   : > { %v1706_v33 = vmax.f32 %v1703_v31, %v471_v32 }
 0x182   : > { %v482_v1 = vsub.f32 %v1703_v31, %v1706_v33  ;;  %496 = vperm.xlu1 %1426, %v1706_v33  }
 0x183   : > { %v647_v35 = vpop.xlane.xlu1 %646  ;;  %v474_v36 = vpop.xlane.xlu0 %473 }
 0x184   : > { %v1715_v37 = vmax.f32 %v1709_v34, %v474_v36 }
 0x186   : > { %v483_v39 = vsub.f32 %v1709_v34, %v1715_v37  ;;  %501 = vperm.xlu0 %1425, %v1715_v37   ;;  %v1724_v40 = vmax.f32 %v1715_v37, %v647_v35 }
 0x187   : > { %v650_v41 = vpop.xlane.xlu1 %649  ;;  %v478_v42 = vpop.xlane.xlu0 %477 }
 0x188   : > { %v1727_v44 = vmax.f32 %v1718_v38, %v478_v42  ;;  %v655_v45 = vsub.f32 %v1715_v37, %v1724_v40 }
 0x18a   : > { %v484_v46 = vsub.f32 %v1718_v38, %v1727_v44  ;;  %673 = vperm.xlu0 %1425, %v1724_v40   ;;  %v1735_v47 = vmax.f32 %v1727_v44, %v650_v41  ;;  %v659_v34 = vmul.f32 1.442695, %v655_v45 }
 0x18b   : > { %v644_v48 = vpop.xlane.xlu0 %643  ;;  %v816_v51 = vpop.xlane.xlu1 %815 }
 0x18c   : > { %v1738_v52 = vmax.f32 %v1706_v33, %v644_v48  ;;  %v656_v53 = vsub.f32 %v1727_v44, %v1735_v47 }
 0x18e   : > { %v654_v54 = vsub.f32 %v1706_v33, %v1738_v52  ;;  %v1745_v55 = vmax.f32 %v1738_v52, %v816_v51  ;;  %668 = vperm.xlu1 %1426, %v1738_v52   ;;  %v661_v38 = vmul.f32 1.442695, %v656_v53 }
 0x18f   : > { %v988_v56 = vpop.xlane.xlu1 %987 }
 0x190   : > { %v826_v57 = vsub.f32 %v1738_v52, %v1745_v55  ;;  %v1751_v58 = vmax.f32 %v1745_v55, %v988_v56 }
 0x192   : > { %v998_v61 = vsub.f32 %v1745_v55, %v1751_v58  ;;  %1047 = vst.msk [vmem:[%s1630_s7] sm:$0xff] %vm339_vm2, %v1751_v58  ;;  %506 = vperm.xlu1 %1426, %v1727_v44   ;;  %v829_v31 = vmul.f32 1.442695, %v826_v57 }
 0x193   : > { %v819_v62 = vpop.xlane.xlu1 %818 }
 0x194   : > { %v1760_v0 = vmax.f32 %v1724_v40, %v819_v62  ;;  %v1001_v44 = vmul.f32 1.442695, %v998_v61 }
 0x196   : > { %v827_v2 = vsub.f32 %v1724_v40, %v1760_v0  ;;  %845 = vperm.xlu0 %1425, %v1760_v0   ;;  %678 = vperm.xlu1 %1426, %v1735_v47  }
 0x197   : > { %v991_v3 = vpop.xlane.xlu1 %990 }
 0x198   : > { %v1767_v4 = vmax.f32 %v1760_v0, %v991_v3 }
 0x19a   : > { %v999_v6 = vsub.f32 %v1760_v0, %v1767_v4  ;;  %1048 = vst.msk [vmem:[%s1630_s7 + $0x8] sm:$0xff] %vm339_vm2, %v1767_v4  ;;  %1017 = vperm.xlu0 %1425, %v1767_v4   ;;  %840 = vperm.xlu1 %1426, %v1745_v55  }
 0x19b   : > { %v822_v7 = vpop.xlane.xlu1 %821 }
 0x19c   : > { %v1777_v8 = vmax.f32 %v1735_v47, %v822_v7 }
 0x19e   : > { %v828_v10 = vsub.f32 %v1735_v47, %v1777_v8  ;;  %1012 = vperm.xlu1 %1426, %v1751_v58  }
 0x19f   : > { %v994_v11 = vpop.xlane.xlu1 %993 }
 0x1a0   : > { %v1783_v12 = vmax.f32 %v1777_v8, %v994_v11 }
 0x1a2   : > { %1050 = vst.msk [vmem:[%s1630_s7 + $0x10] sm:$0xf] %vm342_vm5, %v1783_v12  ;;  %850 = vperm.xlu1 %1426, %v1777_v8   ;;  %v1000_v47 = vsub.f32 %v1777_v8, %v1783_v12 }
 0x1a4   : > { %v1005_v55 = vmul.f32 1.442695, %v1000_v47 }
 0x201   : > { %v497_v13 = vpop.permute.xlu1 %496 }
 0x202   : > { %v509_v14 = vsub.f32 %v1636_v43, %v497_v13 }
 0x204   : > { %v512_v15 = vmul.f32 1.442695, %v509_v14 }
 0x205   : > { %v502_v17 = vpop.permute.xlu0 %501 }
 0x206   : > { %1427 = vpow2.f32 %v512_v15  ;;  %v510_v20 = vsub.f32 %v1642_v50, %v502_v17 }
 0x208   : > { %v514_v27 = vmul.f32 1.442695, %v510_v20 }
 0x209   : > { %v674_v18 = vpop.permute.xlu0 %673 }
 0x20a   : > { %v682_v19 = vsub.f32 %v1640_v49, %v674_v18 }
 0x20c   : > { %v686_v21 = vmul.f32 1.442695, %v682_v19 }
 0x20d   : > { %v669_v22 = vpop.permute.xlu1 %668 }
 0x20e   : > { %1429 = vpow2.f32 %v686_v21  ;;  %v681_v24 = vsub.f32 %v1652_v63, %v669_v22 }
 0x210   : > { %v1428_v26 = vpop.eup %1427  ;;  %v684_v29 = vmul.f32 1.442695, %v681_v24 }
 0x211   : > { %v507_v30 = vpop.permute.xlu1 %506  ;;  %v518_v32 = vsel %vm468_vm3, %v1428_v26, 0.0 }
 0x212   : > { %1431 = vpow2.f32 %v684_v29  ;;  %v511_v43 = vsub.f32 %v1650_v60, %v507_v30  ;;  %519 = vadd.xlane.f32.xlu1 %v518_v32 }
 0x213   : > { %1433 = vpow2.f32 %v514_v27 }
 0x214   : > { %v516_v35 = vmul.f32 1.442695, %v511_v43 }
 0x215   : > { %v679_v49 = vpop.permute.xlu1 %678 }
 0x216   : > { %1435 = vpow2.f32 %v516_v35  ;;  %v683_v50 = vsub.f32 %v1648_v59, %v679_v49 }
 0x218   : > { %v1430_v36 = vpop.eup %1429  ;;  %v688_v41 = vmul.f32 1.442695, %v683_v50 }
 0x219   : > { %v841_v42 = vpop.permute.xlu1 %840  ;;  %v693_v63 = vsel %vm468_vm3, %v1430_v36, 0.0 }
 0x21a   : > { %v853_v48 = vsub.f32 %v1658_v5, %v841_v42  ;;  %694 = vadd.xlane.f32.xlu0 %v693_v63  ;;  %1437 = vpow2.f32 %v688_v41  ;;  %v354_v42 = vld [vmem:[%s1685_s10] sm:$0xff]  ;;  %v487_v63 = vmul.f32 1.442695, %v483_v39  ;;  %v831_v39 = vmul.f32 1.442695, %v827_v2 }
 0x21c   : > { %v1432_v51 = vpop.eup %1431  ;;  %v856_v56 = vmul.f32 1.442695, %v853_v48  ;;  %v489_v48 = vmul.f32 1.442695, %v484_v46  ;;  %v833_v46 = vmul.f32 1.442695, %v828_v10 }
 0x21d   : > { %v1013_v62 = vpop.permute.xlu1 %1012  ;;  %v690_v60 = vsel %vm468_vm3, %v1432_v51, 0.0  ;;  %v1434_v3 = vpop.eup %1433 }
 0x21e   : > { %v1025_v7 = vsub.f32 %v1660_v9, %v1013_v62  ;;  %691 = vadd.xlane.f32.xlu1 %v690_v60  ;;  %1439 = vpow2.f32 %v856_v56  ;;  %v521_v14 = vsel %vm468_vm3, %v1434_v3, 0.0  ;;  %v356_v62 = vld [vmem:[%s1685_s10 + $0x10] sm:$0xf]  ;;  %v355_v60 = vld [vmem:[%s1685_s10 + $0x8] sm:$0xff] }
 0x220   : > { %v1436_v59 = vpop.eup %1435  ;;  %v1028_v11 = vmul.f32 1.442695, %v1025_v7 }
 0x221   : > { %v851_v13 = vpop.permute.xlu1 %850  ;;  %v524_v15 = vsel %vm475_vm4, %v1436_v59, 0.0 }
 0x222   : > { %1441 = vpow2.f32 %v1028_v11  ;;  %v855_v5 = vsub.f32 %v1676_v25, %v851_v13  ;;  %522 = vadd.xlane.f32.xlu1 %v521_v14  ;;  %525 = vadd.xlane.f32.xlu0 %v524_v15  ;;  %v846_v25 = vpop.permute.xlu0 %845 }
 0x223   : > { %v854_v27 = vsub.f32 %v1668_v16, %v846_v25  ;;  %v485_v16 = vmul.f32 1.442695, %v482_v1 }
 0x224   : > { %v860_v17 = vmul.f32 1.442695, %v855_v5  ;;  %v1438_v18 = vpop.eup %1437 }
 0x225   : > { %v696_v19 = vsel %vm475_vm4, %v1438_v18, 0.0  ;;  %v858_v30 = vmul.f32 1.442695, %v854_v27 }
 0x226   : > { %1443 = vpow2.f32 %v860_v17  ;;  %697 = vadd.xlane.f32.xlu0 %v696_v19  ;;  %v1018_v29 = vpop.permute.xlu0 %1017 }
 0x227   : > { %v1026_v32 = vsub.f32 %v1672_v23, %v1018_v29  ;;  %1445 = vpow2.f32 %v858_v30  ;;  %v657_v23 = vmul.f32 1.442695, %v654_v54 }
 0x228   : > { %v1440_v9 = vpop.eup %1439 }
 0x229   : > { %v862_v20 = vsel %vm468_vm3, %v1440_v9, 0.0  ;;  %v1030_v43 = vmul.f32 1.442695, %v1026_v32 }
 0x22a   : > { %863 = vadd.xlane.f32.xlu0 %v862_v20 }
 0x22b   : > { %1447 = vpow2.f32 %v1030_v43 }
 0x22c   : > { %v1442_v21 = vpop.eup %1441  ;;  %1449 = vpow2.f32 %v485_v16 }
 0x22d   : > { %v1034_v22 = vsel %vm468_vm3, %v1442_v21, 0.0  ;;  %1451 = vpow2.f32 %v657_v23 }
 0x22e   : > { %1035 = vadd.xlane.f32.xlu0 %v1034_v22  ;;  %1453 = vpow2.f32 %v487_v63 }
 0x22f   : > { %1455 = vpow2.f32 %v489_v48 }
 0x230   : > { %v1444_v24 = vpop.eup %1443  ;;  %1457 = vpow2.f32 %v829_v31 }
 0x231   : > { %v868_v26 = vsel %vm475_vm4, %v1444_v24, 0.0  ;;  %v1446_v35 = vpop.eup %1445  ;;  %1459 = vpow2.f32 %v659_v34 }
 0x232   : > { %869 = vadd.xlane.f32.xlu0 %v868_v26  ;;  %v865_v49 = vsel %vm468_vm3, %v1446_v35, 0.0  ;;  %1461 = vpow2.f32 %v661_v38 }
 0x233   : > { %1022 = vperm.xlu1 %1426, %v1783_v12   ;;  %1463 = vpow2.f32 %v831_v39 }
 0x234   : > { %1465 = vpow2.f32 %v833_v46 }
 0x235   : > { %v1448_v50 = vpop.eup %1447  ;;  %1467 = vpow2.f32 %v1001_v44 }
 0x236   : > { %v1037_v36 = vsel %vm468_vm3, %v1448_v50, 0.0  ;;  %v1450_v41 = vpop.eup %1449  ;;  %1469 = vpow2.f32 %v1005_v55 }
 0x237   : > { %v491_v51 = vmul.f32 %v1450_v41, %v354_v42  ;;  %v1452_v54 = vpop.eup %1451 }
 0x238   : > { %v1454_v52 = vpop.eup %1453 }
 0x239   : > { %v1456_v57 = vpop.eup %1455  ;;  %v492_v3 = vmul.f32 %v1454_v52, %v355_v60 }
 0x23a   : > { %v1458_v40 = vpop.eup %1457  ;;  %v493_v2 = vmul.f32 %v1456_v57, %v356_v62 }
 0x23b   : > { %v1460_v11 = vpop.eup %1459 }
 0x23c   : > { %v1462_v15 = vpop.eup %1461 }
 0x23d   : > { %v1464_v9 = vpop.eup %1463 }
 0x23e   : > { %v1466_v21 = vpop.eup %1465 }
 0x23f   : > { %v1468_v25 = vpop.eup %1467 }
 0x240   : > { %v1470_v32 = vpop.eup %1469 }
 0x257   : > { %866 = vadd.xlane.f32.xlu1 %v865_v49 }
 0x25b   : > { %1038 = vadd.xlane.f32.xlu1 %v1037_v36  ;;  %v1003_v36 = vmul.f32 1.442695, %v999_v6 }
 0x29f   : > { %v520_v1 = vpop.xlane.xlu1 %519 }
 0x2a0   : > { %v527_v33 = vadd.f32 %v520_v1, %v491_v51 }
 0x2a2   : > { %v663_v56 = vmul.f32 %v1452_v54, %v527_v33 }
 0x2a7   : > { %v695_v37 = vpop.xlane.xlu0 %694 }
 0x2ab   : > { %v692_v45 = vpop.xlane.xlu1 %691 }
 0x2ac   : > { %v699_v53 = vadd.f32 %v692_v45, %v663_v56 }
 0x2ae   : > { %v835_v7 = vmul.f32 %v1458_v40, %v699_v53 }
 0x2af   : > { %v526_v10 = vpop.xlane.xlu0 %525  ;;  %v523_v59 = vpop.xlane.xlu1 %522 }
 0x2b0   : > { %v529_v13 = vadd.f32 %v526_v10, %v493_v2  ;;  %v528_v14 = vadd.f32 %v523_v59, %v492_v3 }
 0x2b2   : > { %v664_v5 = vmul.f32 %v1460_v11, %v528_v14  ;;  %v665_v17 = vmul.f32 %v1462_v15, %v529_v13 }
 0x2b3   : > { %v1023_v58 = vpop.permute.xlu1 %1022  ;;  %v698_v61 = vpop.xlane.xlu0 %697 }
 0x2b4   : > { %v1027_v18 = vsub.f32 %v1696_v28, %v1023_v58  ;;  %v700_v19 = vadd.f32 %v695_v37, %v664_v5  ;;  %v701_v20 = vadd.f32 %v698_v61, %v665_v17 }
 0x2b6   : > { %v1032_v8 = vmul.f32 1.442695, %v1027_v18  ;;  %v836_v12 = vmul.f32 %v1464_v9, %v700_v19  ;;  %v837_v22 = vmul.f32 %v1466_v21, %v701_v20 }
 0x2b7   : > { %v864_v24 = vpop.xlane.xlu0 %863 }
 0x2b8   : > { %1471 = vpow2.f32 %v1032_v8  ;;  %v871_v26 = vadd.f32 %v864_v24, %v835_v7 }
 0x2b9   : > { %1473 = vpow2.f32 %v1003_v36 }
 0x2ba   : > { %v1007_v27 = vmul.f32 %v1468_v25, %v871_v26 }
 0x2bb   : > { %v1036_v29 = vpop.xlane.xlu0 %1035 }
 0x2bc   : > { %v1043_v30 = vadd.f32 %v1036_v29, %v1007_v27 }
 0x2be   : > { %1051 = vst.msk [vmem:[%s1685_s10] sm:$0xff] %vm339_vm2, %v1043_v30 }
 0x2bf   : > { %v870_v28 = vpop.xlane.xlu0 %869 }
 0x2c0   : > { %v873_v43 = vadd.f32 %v870_v28, %v837_v22 }
 0x2c2   : > { %v1472_v35 = vpop.eup %1471  ;;  %v1009_v50 = vmul.f32 %v1470_v32, %v873_v43 }
 0x2c3   : > { %v1040_v49 = vsel %vm475_vm4, %v1472_v35, 0.0  ;;  %v1474_v41 = vpop.eup %1473 }
 0x2c4   : > { %1041 = vadd.xlane.f32.xlu0 %v1040_v49 }
 0x2e4   : > { %v867_v16 = vpop.xlane.xlu1 %866 }
 0x2e5   : > { %v872_v23 = vadd.f32 %v867_v16, %v836_v12 }
 0x2e7   : > { %v1008_v42 = vmul.f32 %v1474_v41, %v872_v23 }
 0x2e8   : > { %v1039_v63 = vpop.xlane.xlu1 %1038 }
 0x2e9   : > { %v1044_v48 = vadd.f32 %v1039_v63, %v1008_v42 }
 0x2eb   : > { %1052 = vst.msk [vmem:[%s1685_s10 + $0x8] sm:$0xff] %vm339_vm2, %v1044_v48 }
 0x351   : > { %v1042_v51 = vpop.xlane.xlu0 %1041 }
 0x352   : > { %v1045_v31 = vadd.f32 %v1042_v51, %v1009_v50 }
 0x354   : > { %1053 = vst.msk [vmem:[%s1685_s10 + $0x10] sm:$0xf] %vm342_vm5, %v1045_v31 }
 0x355 PF: > { %s15_s17 = sadd.s32 1, %s1497_s17   ;;  %s1872_s15 = smov %s1493_s16 }
 0x356   : > { %p12_p5 = scmp.ge.s32.totalorder %s15_s17, 4   ;;  %s1873_s16 = smov %s1875_s18 }
 0x358   :  { %14 = sbr.rel (!%p12_p5) target bundleno = 2 (0x2), region = 90 }

</bundles_post_ra>
